<compile_context>
chip_gen: v7x
topology: tpu7x:2x2x1
jax: 0.10.0
libtpu: 0.0.40
codegen_flags: <defaults>
</compile_context>

<pallas_src>
import jax
import jax.numpy as jnp
import numpy as np
from jax import lax
from jax.experimental import pallas as pl
from jax.experimental.pallas import tpu as pltpu


def _down_kernel(x_ref, w1_ref, b1_ref, w2_ref, b2_ref, o_ref,
                 xpad_ref, pat_ref, mid_ref):
    # x_ref  : (1, H, W, Cin)   bf16 unpadded input tile (one batch element)
    # w1_ref : (9*Cin, Cout)    bf16 im2col slab, K index = (ky*3 + kx)*Cin + ci
    # w2_ref : (9*Cout, Cout)   bf16 im2col slab
    # b*_ref : (1, Cout)        f32
    # o_ref  : (1, H//2, W//2, Cout) f32
    # scratch: xpad (H+2,W+2,Cin) bf16, pat (H,W,9*max(Cin,Cout)) bf16,
    #          mid  (H+2,W+2,Cout) f32 (padded conv1 out, then reused for conv2 out / pool)
    H, W, Cin = x_ref.shape[1], x_ref.shape[2], x_ref.shape[3]
    Cout = o_ref.shape[3]
    Hp, Wp = H + 2, W + 2
    H2, W2 = H // 2, W // 2
    f32 = jnp.float32
    bf16 = jnp.bfloat16

    # ---- stage input into a zero-padded bf16 VMEM buffer (pad fused into the kernel).
    # Zero only the 1-px border; the interior is fully overwritten every step.
    xpad_ref[pl.ds(0, 1), :, :] = jnp.zeros((1, Wp, Cin), bf16)
    xpad_ref[pl.ds(Hp - 1, 1), :, :] = jnp.zeros((1, Wp, Cin), bf16)
    xpad_ref[:, pl.ds(0, 1), :] = jnp.zeros((Hp, 1, Cin), bf16)
    xpad_ref[:, pl.ds(Wp - 1, 1), :] = jnp.zeros((Hp, 1, Cin), bf16)
    xpad_ref[pl.ds(1, H), pl.ds(1, W), :] = x_ref[0]

    # ---- conv1: build bf16 im2col patches once, then ONE wide-K MXU dot (K = 9*Cin) ----
    for ky in range(3):
        for kx in range(3):
            t = ky * 3 + kx
            pat_ref[:, :, pl.ds(t * Cin, Cin)] = xpad_ref[pl.ds(ky, H), pl.ds(kx, W), :]
    p1 = pat_ref[:, :, pl.ds(0, 9 * Cin)].reshape(H * W, 9 * Cin)
    h1 = jnp.dot(p1, w1_ref[...], preferred_element_type=f32)
    h1 = jnp.maximum(h1 + b1_ref[...], 0.0)                      # bias + ReLU in f32

    # ---- stage conv1 output (f32) into the zero-padded mid buffer for conv2 ----
    mid_ref[pl.ds(0, 1), :, :] = jnp.zeros((1, Wp, Cout), f32)
    mid_ref[pl.ds(Hp - 1, 1), :, :] = jnp.zeros((1, Wp, Cout), f32)
    mid_ref[:, pl.ds(0, 1), :] = jnp.zeros((Hp, 1, Cout), f32)
    mid_ref[:, pl.ds(Wp - 1, 1), :] = jnp.zeros((Hp, 1, Cout), f32)
    mid_ref[pl.ds(1, H), pl.ds(1, W), :] = h1.reshape(H, W, Cout)

    # ---- conv2: bf16 im2col -> ONE wide-K MXU dot (K = 9*Cout), bias, ReLU ----
    for ky in range(3):
        for kx in range(3):
            t = ky * 3 + kx
            pat_ref[:, :, pl.ds(t * Cout, Cout)] = (
                mid_ref[pl.ds(ky, H), pl.ds(kx, W), :].astype(bf16))
    p2 = pat_ref[:, :, pl.ds(0, 9 * Cout)].reshape(H * W, 9 * Cout)
    h2 = jnp.dot(p2, w2_ref[...], preferred_element_type=f32)
    h2 = jnp.maximum(h2 + b2_ref[...], 0.0)

    # ---- 2x2 max pool, stride 2, in f32; reuse `mid` as the pooling scratch ----
    mid_ref[pl.ds(0, H), pl.ds(0, W), :] = h2.reshape(H, W, Cout)
    rowmax = jnp.maximum(mid_ref[pl.ds(0, H2, 2), pl.ds(0, W), :],
                         mid_ref[pl.ds(1, H2, 2), pl.ds(0, W), :])   # (H2, W, Cout)
    mid_ref[pl.ds(0, H2), pl.ds(0, W), :] = rowmax
    o_ref[0] = jnp.maximum(mid_ref[pl.ds(0, H2), pl.ds(0, W2, 2), :],
                           mid_ref[pl.ds(0, H2), pl.ds(1, W2, 2), :]).astype(o_ref.dtype)


def down_pallas(x_nchw, w1, b1, w2, b2):
    """x_nchw: (B, Cin, H, W); w1: (Cout, Cin, 3, 3); w2: (Cout, Cout, 3, 3)."""
    B, Cin, H, W = x_nchw.shape
    Cout = w1.shape[0]
    H2, W2 = H // 2, W // 2

    # NHWC + bf16 activations/weights (f32 accumulation inside the kernel).
    x = jnp.transpose(x_nchw, (0, 2, 3, 1)).astype(jnp.bfloat16)                   # (B,H,W,Cin)
    w1k = jnp.transpose(w1, (2, 3, 1, 0)).reshape(9 * Cin, Cout).astype(jnp.bfloat16)
    w2k = jnp.transpose(w2, (2, 3, 1, 0)).reshape(9 * Cout, Cout).astype(jnp.bfloat16)
    b1k = b1.reshape(1, Cout).astype(jnp.float32)
    b2k = b2.reshape(1, Cout).astype(jnp.float32)

    # TODO(synk): for production UNet sizes (C >= 64, H = W >= 128) add a row-block grid
    # axis with a 2-row halo and Cout blocking so the working set fits v7x's 64 MiB VMEM.
    out_nhwc = pl.pallas_call(
        _down_kernel,
        out_shape=jax.ShapeDtypeStruct((B, H2, W2, Cout), jnp.float32),
        grid_spec=pltpu.PrefetchScalarGridSpec(
            num_scalar_prefetch=0,
            grid=(B,),
            in_specs=[
                pl.BlockSpec((1, H, W, Cin), lambda b: (b, 0, 0, 0)),
                pl.BlockSpec((9 * Cin, Cout), lambda b: (0, 0)),
                pl.BlockSpec((1, Cout), lambda b: (0, 0)),
                pl.BlockSpec((9 * Cout, Cout), lambda b: (0, 0)),
                pl.BlockSpec((1, Cout), lambda b: (0, 0)),
            ],
            out_specs=pl.BlockSpec((1, H2, W2, Cout), lambda b: (b, 0, 0, 0)),
            scratch_shapes=[
                pltpu.VMEM((H + 2, W + 2, Cin), jnp.bfloat16),             # padded input
                pltpu.VMEM((H, W, 9 * max(Cin, Cout)), jnp.bfloat16),      # im2col patches
                pltpu.VMEM((H + 2, W + 2, Cout), jnp.float32),             # conv1 out / pool
            ],
        ),
        compiler_params=pltpu.CompilerParams(
            dimension_semantics=("parallel",)),
    )(x, w1k, b1k, w2k, b2k)

    return jnp.transpose(out_nhwc, (0, 3, 1, 2))  # back to NCHW


def _reference(x, w1, b1, w2, b2):
    dn = ("NCHW", "OIHW", "NCHW")
    y = lax.conv_general_dilated(x, w1, (1, 1), "SAME", dimension_numbers=dn)
    y = jnp.maximum(y + b1[None, :, None, None], 0.0)
    y = lax.conv_general_dilated(y, w2, (1, 1), "SAME", dimension_numbers=dn)
    y = jnp.maximum(y + b2[None, :, None, None], 0.0)
    y = lax.reduce_window(y, -jnp.inf, lax.max,
                          (1, 1, 2, 2), (1, 1, 2, 2), "VALID")
    return y


if __name__ == "__main__":
    B, Cin, Cout, H, W = 2, 4, 8, 16, 16
    key = jax.random.PRNGKey(0)
    kx, k1, kb1, k2, kb2 = jax.random.split(key, 5)

    # deterministic synthetic parameters (shapes from nn.Conv2d(in_ch, out_ch, 3, 1, 1))
    x = jax.random.normal(kx, (B, Cin, H, W), jnp.float32)
    w1 = 0.1 * jax.random.normal(k1, (Cout, Cin, 3, 3), jnp.float32)
    b1 = 0.1 * jax.random.normal(kb1, (Cout,), jnp.float32)
    w2 = 0.1 * jax.random.normal(k2, (Cout, Cout, 3, 3), jnp.float32)
    b2 = 0.1 * jax.random.normal(kb2, (Cout,), jnp.float32)

    out = jax.block_until_ready(down_pallas(x, w1, b1, w2, b2))
    expected = jax.block_until_ready(_reference(x, w1, b1, w2, b2))

    assert out.shape == (B, Cout, H // 2, W // 2), out.shape
    # bf16 matmul operands with f32 accumulation -> bf16-level tolerance vs f32 reference.
    np.testing.assert_allclose(np.asarray(out), np.asarray(expected),
                               rtol=2e-2, atol=2e-2)
    print("KERNEL_OK")
</pallas_src>

<mosaic_0001>
module attributes {stable_mosaic.version = 11 : i64} {
  func.func @_down_kernel(%arg0: i32, %arg1: memref<1x16x16x4xbf16, #tpu.memory_space<vmem>>, %arg2: memref<36x8xbf16, #tpu.memory_space<vmem>>, %arg3: memref<1x8xf32, #tpu.memory_space<vmem>>, %arg4: memref<72x8xbf16, #tpu.memory_space<vmem>>, %arg5: memref<1x8xf32, #tpu.memory_space<vmem>>, %arg6: memref<1x8x8x8xf32, #tpu.memory_space<vmem>>, %arg7: memref<18x18x4xbf16, #tpu.memory_space<vmem>>, %arg8: memref<16x16x72xbf16, #tpu.memory_space<vmem>>, %arg9: memref<18x18x8xf32, #tpu.memory_space<vmem>>) attributes {dimension_semantics = [#tpu.dimension_semantics<parallel>], iteration_bounds = array<i64: 2>, scalar_prefetch = 0 : i64, scratch_operands = 3 : i64, tpu.core_type = #tpu.core_type<tc>, window_params = [{transform_indices = @transform_0, window_bounds = array<i64: 1, 16, 16, 4>}, {pipeline_mode = #tpu.pipeline_mode<synchronous>, transform_indices = @transform_1, window_bounds = array<i64: 36, 8>}, {pipeline_mode = #tpu.pipeline_mode<synchronous>, transform_indices = @transform_2, window_bounds = array<i64: 1, 8>}, {pipeline_mode = #tpu.pipeline_mode<synchronous>, transform_indices = @transform_3, window_bounds = array<i64: 72, 8>}, {pipeline_mode = #tpu.pipeline_mode<synchronous>, transform_indices = @transform_4, window_bounds = array<i64: 1, 8>}, {transform_indices = @transform_5, window_bounds = array<i64: 1, 8, 8, 8>}]} {
    %cst = arith.constant 0.000000e+00 : bf16
    %0 = vector.broadcast %cst : bf16 to vector<1x18x4xbf16>
    %c0 = arith.constant 0 : index
    %c0_0 = arith.constant 0 : index
    %c0_1 = arith.constant 0 : index
    %1 = vector.load %arg7[%c0, %c0_0, %c0_1] : memref<18x18x4xbf16, #tpu.memory_space<vmem>>, vector<1x18x4xbf16>
    tpu.vector_store %arg7[%c0, %c0_0, %c0_1], %0 {strides = array<i32>} : memref<18x18x4xbf16, #tpu.memory_space<vmem>>, vector<1x18x4xbf16>,
    %cst_2 = arith.constant 0.000000e+00 : bf16
    %2 = vector.broadcast %cst_2 : bf16 to vector<1x18x4xbf16>
    %c17 = arith.constant 17 : index
    %c0_3 = arith.constant 0 : index
    %c0_4 = arith.constant 0 : index
    %3 = vector.load %arg7[%c17, %c0_3, %c0_4] : memref<18x18x4xbf16, #tpu.memory_space<vmem>>, vector<1x18x4xbf16>
    tpu.vector_store %arg7[%c17, %c0_3, %c0_4], %2 {strides = array<i32>} : memref<18x18x4xbf16, #tpu.memory_space<vmem>>, vector<1x18x4xbf16>,
    %cst_5 = arith.constant 0.000000e+00 : bf16
    %4 = vector.broadcast %cst_5 : bf16 to vector<18x1x4xbf16>
    %c0_6 = arith.constant 0 : index
    %c0_7 = arith.constant 0 : index
    %c0_8 = arith.constant 0 : index
    %5 = vector.load %arg7[%c0_6, %c0_7, %c0_8] : memref<18x18x4xbf16, #tpu.memory_space<vmem>>, vector<18x1x4xbf16>
    tpu.vector_store %arg7[%c0_6, %c0_7, %c0_8], %4 {strides = array<i32>} : memref<18x18x4xbf16, #tpu.memory_space<vmem>>, vector<18x1x4xbf16>,
    %cst_9 = arith.constant 0.000000e+00 : bf16
    %6 = vector.broadcast %cst_9 : bf16 to vector<18x1x4xbf16>
    %c0_10 = arith.constant 0 : index
    %c17_11 = arith.constant 17 : index
    %c0_12 = arith.constant 0 : index
    %7 = vector.load %arg7[%c0_10, %c17_11, %c0_12] : memref<18x18x4xbf16, #tpu.memory_space<vmem>>, vector<18x1x4xbf16>
    tpu.vector_store %arg7[%c0_10, %c17_11, %c0_12], %6 {strides = array<i32>} : memref<18x18x4xbf16, #tpu.memory_space<vmem>>, vector<18x1x4xbf16>,
    %c0_13 = arith.constant 0 : index
    %c0_14 = arith.constant 0 : index
    %c0_15 = arith.constant 0 : index
    %c0_16 = arith.constant 0 : index
    %8 = vector.load %arg1[%c0_13, %c0_14, %c0_15, %c0_16] : memref<1x16x16x4xbf16, #tpu.memory_space<vmem>>, vector<1x16x16x4xbf16>
    %9 = vector.shape_cast %8 : vector<1x16x16x4xbf16> to vector<16x16x4xbf16>
    %c1 = arith.constant 1 : index
    %c1_17 = arith.constant 1 : index
    %c0_18 = arith.constant 0 : index
    %10 = vector.load %arg7[%c1, %c1_17, %c0_18] : memref<18x18x4xbf16, #tpu.memory_space<vmem>>, vector<16x16x4xbf16>
    tpu.vector_store %arg7[%c1, %c1_17, %c0_18], %9 {strides = array<i32>} : memref<18x18x4xbf16, #tpu.memory_space<vmem>>, vector<16x16x4xbf16>,
    %c0_19 = arith.constant 0 : index
    %c0_20 = arith.constant 0 : index
    %c0_21 = arith.constant 0 : index
    %11 = vector.load %arg7[%c0_19, %c0_20, %c0_21] : memref<18x18x4xbf16, #tpu.memory_space<vmem>>, vector<16x16x4xbf16>
    %c0_22 = arith.constant 0 : index
    %c0_23 = arith.constant 0 : index
    %c0_24 = arith.constant 0 : index
    %12 = vector.load %arg8[%c0_22, %c0_23, %c0_24] : memref<16x16x72xbf16, #tpu.memory_space<vmem>>, vector<16x16x4xbf16>
    tpu.vector_store %arg8[%c0_22, %c0_23, %c0_24], %11 {strides = array<i32>} : memref<16x16x72xbf16, #tpu.memory_space<vmem>>, vector<16x16x4xbf16>,
    %c0_25 = arith.constant 0 : index
    %c1_26 = arith.constant 1 : index
    %c0_27 = arith.constant 0 : index
    %13 = vector.load %arg7[%c0_25, %c1_26, %c0_27] : memref<18x18x4xbf16, #tpu.memory_space<vmem>>, vector<16x16x4xbf16>
    %c0_28 = arith.constant 0 : index
    %c0_29 = arith.constant 0 : index
    %c4 = arith.constant 4 : index
    %14 = vector.load %arg8[%c0_28, %c0_29, %c4] : memref<16x16x72xbf16, #tpu.memory_space<vmem>>, vector<16x16x4xbf16>
    tpu.vector_store %arg8[%c0_28, %c0_29, %c4], %13 {strides = array<i32>} : memref<16x16x72xbf16, #tpu.memory_space<vmem>>, vector<16x16x4xbf16>,
    %c0_30 = arith.constant 0 : index
    %c2 = arith.constant 2 : index
    %c0_31 = arith.constant 0 : index
    %15 = vector.load %arg7[%c0_30, %c2, %c0_31] : memref<18x18x4xbf16, #tpu.memory_space<vmem>>, vector<16x16x4xbf16>
    %c0_32 = arith.constant 0 : index
    %c0_33 = arith.constant 0 : index
    %c8 = arith.constant 8 : index
    %16 = vector.load %arg8[%c0_32, %c0_33, %c8] : memref<16x16x72xbf16, #tpu.memory_space<vmem>>, vector<16x16x4xbf16>
    tpu.vector_store %arg8[%c0_32, %c0_33, %c8], %15 {strides = array<i32>} : memref<16x16x72xbf16, #tpu.memory_space<vmem>>, vector<16x16x4xbf16>,
    %c1_34 = arith.constant 1 : index
    %c0_35 = arith.constant 0 : index
    %c0_36 = arith.constant 0 : index
    %17 = vector.load %arg7[%c1_34, %c0_35, %c0_36] : memref<18x18x4xbf16, #tpu.memory_space<vmem>>, vector<16x16x4xbf16>
    %c0_37 = arith.constant 0 : index
    %c0_38 = arith.constant 0 : index
    %c12 = arith.constant 12 : index
    %18 = vector.load %arg8[%c0_37, %c0_38, %c12] : memref<16x16x72xbf16, #tpu.memory_space<vmem>>, vector<16x16x4xbf16>
    tpu.vector_store %arg8[%c0_37, %c0_38, %c12], %17 {strides = array<i32>} : memref<16x16x72xbf16, #tpu.memory_space<vmem>>, vector<16x16x4xbf16>,
    %c1_39 = arith.constant 1 : index
    %c1_40 = arith.constant 1 : index
    %c0_41 = arith.constant 0 : index
    %19 = vector.load %arg7[%c1_39, %c1_40, %c0_41] : memref<18x18x4xbf16, #tpu.memory_space<vmem>>, vector<16x16x4xbf16>
    %c0_42 = arith.constant 0 : index
    %c0_43 = arith.constant 0 : index
    %c16 = arith.constant 16 : index
    %20 = vector.load %arg8[%c0_42, %c0_43, %c16] : memref<16x16x72xbf16, #tpu.memory_space<vmem>>, vector<16x16x4xbf16>
    tpu.vector_store %arg8[%c0_42, %c0_43, %c16], %19 {strides = array<i32>} : memref<16x16x72xbf16, #tpu.memory_space<vmem>>, vector<16x16x4xbf16>,
    %c1_44 = arith.constant 1 : index
    %c2_45 = arith.constant 2 : index
    %c0_46 = arith.constant 0 : index
    %21 = vector.load %arg7[%c1_44, %c2_45, %c0_46] : memref<18x18x4xbf16, #tpu.memory_space<vmem>>, vector<16x16x4xbf16>
    %c0_47 = arith.constant 0 : index
    %c0_48 = arith.constant 0 : index
    %c20 = arith.constant 20 : index
    %22 = vector.load %arg8[%c0_47, %c0_48, %c20] : memref<16x16x72xbf16, #tpu.memory_space<vmem>>, vector<16x16x4xbf16>
    tpu.vector_store %arg8[%c0_47, %c0_48, %c20], %21 {strides = array<i32>} : memref<16x16x72xbf16, #tpu.memory_space<vmem>>, vector<16x16x4xbf16>,
    %c2_49 = arith.constant 2 : index
    %c0_50 = arith.constant 0 : index
    %c0_51 = arith.constant 0 : index
    %23 = vector.load %arg7[%c2_49, %c0_50, %c0_51] : memref<18x18x4xbf16, #tpu.memory_space<vmem>>, vector<16x16x4xbf16>
    %c0_52 = arith.constant 0 : index
    %c0_53 = arith.constant 0 : index
    %c24 = arith.constant 24 : index
    %24 = vector.load %arg8[%c0_52, %c0_53, %c24] : memref<16x16x72xbf16, #tpu.memory_space<vmem>>, vector<16x16x4xbf16>
    tpu.vector_store %arg8[%c0_52, %c0_53, %c24], %23 {strides = array<i32>} : memref<16x16x72xbf16, #tpu.memory_space<vmem>>, vector<16x16x4xbf16>,
    %c2_54 = arith.constant 2 : index
    %c1_55 = arith.constant 1 : index
    %c0_56 = arith.constant 0 : index
    %25 = vector.load %arg7[%c2_54, %c1_55, %c0_56] : memref<18x18x4xbf16, #tpu.memory_space<vmem>>, vector<16x16x4xbf16>
    %c0_57 = arith.constant 0 : index
    %c0_58 = arith.constant 0 : index
    %c28 = arith.constant 28 : index
    %26 = vector.load %arg8[%c0_57, %c0_58, %c28] : memref<16x16x72xbf16, #tpu.memory_space<vmem>>, vector<16x16x4xbf16>
    tpu.vector_store %arg8[%c0_57, %c0_58, %c28], %25 {strides = array<i32>} : memref<16x16x72xbf16, #tpu.memory_space<vmem>>, vector<16x16x4xbf16>,
    %c2_59 = arith.constant 2 : index
    %c2_60 = arith.constant 2 : index
    %c0_61 = arith.constant 0 : index
    %27 = vector.load %arg7[%c2_59, %c2_60, %c0_61] : memref<18x18x4xbf16, #tpu.memory_space<vmem>>, vector<16x16x4xbf16>
    %c0_62 = arith.constant 0 : index
    %c0_63 = arith.constant 0 : index
    %c32 = arith.constant 32 : index
    %28 = vector.load %arg8[%c0_62, %c0_63, %c32] : memref<16x16x72xbf16, #tpu.memory_space<vmem>>, vector<16x16x4xbf16>
    tpu.vector_store %arg8[%c0_62, %c0_63, %c32], %27 {strides = array<i32>} : memref<16x16x72xbf16, #tpu.memory_space<vmem>>, vector<16x16x4xbf16>,
    %c0_64 = arith.constant 0 : index
    %c0_65 = arith.constant 0 : index
    %c0_66 = arith.constant 0 : index
    %29 = vector.load %arg8[%c0_64, %c0_65, %c0_66] : memref<16x16x72xbf16, #tpu.memory_space<vmem>>, vector<16x16x36xbf16>
    %30 = vector.shape_cast %29 : vector<16x16x36xbf16> to vector<256x36xbf16>
    %c0_67 = arith.constant 0 : index
    %c0_68 = arith.constant 0 : index
    %31 = vector.load %arg2[%c0_67, %c0_68] : memref<36x8xbf16, #tpu.memory_space<vmem>>, vector<36x8xbf16>
    %cst_69 = arith.constant dense<0.000000e+00> : vector<256x8xf32>
    %32 = tpu.matmul %30, %31, %cst_69 {dimension_numbers = #tpu.dot_dimension_numbers<[1], [0], [0], [1], [0, 0, 1, 1], [], []>} : vector<256x36xbf16>, vector<36x8xbf16>, vector<256x8xf32> -> vector<256x8xf32>
    %c0_70 = arith.constant 0 : index
    %c0_71 = arith.constant 0 : index
    %33 = vector.load %arg3[%c0_70, %c0_71] : memref<1x8xf32, #tpu.memory_space<vmem>>, vector<1x8xf32>
    %34 = vector.broadcast %33 : vector<1x8xf32> to vector<256x8xf32>
    %35 = arith.addf %32, %34 : vector<256x8xf32>
    %cst_72 = arith.constant 0.000000e+00 : f32
    %36 = vector.broadcast %cst_72 : f32 to vector<256x8xf32>
    %37 = arith.maximumf %35, %36 : vector<256x8xf32>
    %cst_73 = arith.constant 0.000000e+00 : f32
    %38 = vector.broadcast %cst_73 : f32 to vector<1x18x8xf32>
    %c0_74 = arith.constant 0 : index
    %c0_75 = arith.constant 0 : index
    %c0_76 = arith.constant 0 : index
    %39 = vector.load %arg9[%c0_74, %c0_75, %c0_76] : memref<18x18x8xf32, #tpu.memory_space<vmem>>, vector<1x18x8xf32>
    tpu.vector_store %arg9[%c0_74, %c0_75, %c0_76], %38 {strides = array<i32>} : memref<18x18x8xf32, #tpu.memory_space<vmem>>, vector<1x18x8xf32>,
    %cst_77 = arith.constant 0.000000e+00 : f32
    %40 = vector.broadcast %cst_77 : f32 to vector<1x18x8xf32>
    %c17_78 = arith.constant 17 : index
    %c0_79 = arith.constant 0 : index
    %c0_80 = arith.constant 0 : index
    %41 = vector.load %arg9[%c17_78, %c0_79, %c0_80] : memref<18x18x8xf32, #tpu.memory_space<vmem>>, vector<1x18x8xf32>
    tpu.vector_store %arg9[%c17_78, %c0_79, %c0_80], %40 {strides = array<i32>} : memref<18x18x8xf32, #tpu.memory_space<vmem>>, vector<1x18x8xf32>,
    %cst_81 = arith.constant 0.000000e+00 : f32
    %42 = vector.broadcast %cst_81 : f32 to vector<18x1x8xf32>
    %c0_82 = arith.constant 0 : index
    %c0_83 = arith.constant 0 : index
    %c0_84 = arith.constant 0 : index
    %43 = vector.load %arg9[%c0_82, %c0_83, %c0_84] : memref<18x18x8xf32, #tpu.memory_space<vmem>>, vector<18x1x8xf32>
    tpu.vector_store %arg9[%c0_82, %c0_83, %c0_84], %42 {strides = array<i32>} : memref<18x18x8xf32, #tpu.memory_space<vmem>>, vector<18x1x8xf32>,
    %cst_85 = arith.constant 0.000000e+00 : f32
    %44 = vector.broadcast %cst_85 : f32 to vector<18x1x8xf32>
    %c0_86 = arith.constant 0 : index
    %c17_87 = arith.constant 17 : index
    %c0_88 = arith.constant 0 : index
    %45 = vector.load %arg9[%c0_86, %c17_87, %c0_88] : memref<18x18x8xf32, #tpu.memory_space<vmem>>, vector<18x1x8xf32>
    tpu.vector_store %arg9[%c0_86, %c17_87, %c0_88], %44 {strides = array<i32>} : memref<18x18x8xf32, #tpu.memory_space<vmem>>, vector<18x1x8xf32>,
    %46 = vector.shape_cast %37 : vector<256x8xf32> to vector<16x16x8xf32>
    %c1_89 = arith.constant 1 : index
    %c1_90 = arith.constant 1 : index
    %c0_91 = arith.constant 0 : index
    %47 = vector.load %arg9[%c1_89, %c1_90, %c0_91] : memref<18x18x8xf32, #tpu.memory_space<vmem>>, vector<16x16x8xf32>
    tpu.vector_store %arg9[%c1_89, %c1_90, %c0_91], %46 {strides = array<i32>} : memref<18x18x8xf32, #tpu.memory_space<vmem>>, vector<16x16x8xf32>,
    %c0_92 = arith.constant 0 : index
    %c0_93 = arith.constant 0 : index
    %c0_94 = arith.constant 0 : index
    %48 = vector.load %arg9[%c0_92, %c0_93, %c0_94] : memref<18x18x8xf32, #tpu.memory_space<vmem>>, vector<16x16x8xf32>
    %49 = arith.truncf %48 : vector<16x16x8xf32> to vector<16x16x8xbf16>
    %c0_95 = arith.constant 0 : index
    %c0_96 = arith.constant 0 : index
    %c0_97 = arith.constant 0 : index
    %50 = vector.load %arg8[%c0_95, %c0_96, %c0_97] : memref<16x16x72xbf16, #tpu.memory_space<vmem>>, vector<16x16x8xbf16>
    tpu.vector_store %arg8[%c0_95, %c0_96, %c0_97], %49 {strides = array<i32>} : memref<16x16x72xbf16, #tpu.memory_space<vmem>>, vector<16x16x8xbf16>,
    %c0_98 = arith.constant 0 : index
    %c1_99 = arith.constant 1 : index
    %c0_100 = arith.constant 0 : index
    %51 = vector.load %arg9[%c0_98, %c1_99, %c0_100] : memref<18x18x8xf32, #tpu.memory_space<vmem>>, vector<16x16x8xf32>
    %52 = arith.truncf %51 : vector<16x16x8xf32> to vector<16x16x8xbf16>
    %c0_101 = arith.constant 0 : index
    %c0_102 = arith.constant 0 : index
    %c8_103 = arith.constant 8 : index
    %53 = vector.load %arg8[%c0_101, %c0_102, %c8_103] : memref<16x16x72xbf16, #tpu.memory_space<vmem>>, vector<16x16x8xbf16>
    tpu.vector_store %arg8[%c0_101, %c0_102, %c8_103], %52 {strides = array<i32>} : memref<16x16x72xbf16, #tpu.memory_space<vmem>>, vector<16x16x8xbf16>,
    %c0_104 = arith.constant 0 : index
    %c2_105 = arith.constant 2 : index
    %c0_106 = arith.constant 0 : index
    %54 = vector.load %arg9[%c0_104, %c2_105, %c0_106] : memref<18x18x8xf32, #tpu.memory_space<vmem>>, vector<16x16x8xf32>
    %55 = arith.truncf %54 : vector<16x16x8xf32> to vector<16x16x8xbf16>
    %c0_107 = arith.constant 0 : index
    %c0_108 = arith.constant 0 : index
    %c16_109 = arith.constant 16 : index
    %56 = vector.load %arg8[%c0_107, %c0_108, %c16_109] : memref<16x16x72xbf16, #tpu.memory_space<vmem>>, vector<16x16x8xbf16>
    tpu.vector_store %arg8[%c0_107, %c0_108, %c16_109], %55 {strides = array<i32>} : memref<16x16x72xbf16, #tpu.memory_space<vmem>>, vector<16x16x8xbf16>,
    %c1_110 = arith.constant 1 : index
    %c0_111 = arith.constant 0 : index
    %c0_112 = arith.constant 0 : index
    %57 = vector.load %arg9[%c1_110, %c0_111, %c0_112] : memref<18x18x8xf32, #tpu.memory_space<vmem>>, vector<16x16x8xf32>
    %58 = arith.truncf %57 : vector<16x16x8xf32> to vector<16x16x8xbf16>
    %c0_113 = arith.constant 0 : index
    %c0_114 = arith.constant 0 : index
    %c24_115 = arith.constant 24 : index
    %59 = vector.load %arg8[%c0_113, %c0_114, %c24_115] : memref<16x16x72xbf16, #tpu.memory_space<vmem>>, vector<16x16x8xbf16>
    tpu.vector_store %arg8[%c0_113, %c0_114, %c24_115], %58 {strides = array<i32>} : memref<16x16x72xbf16, #tpu.memory_space<vmem>>, vector<16x16x8xbf16>,
    %c1_116 = arith.constant 1 : index
    %c1_117 = arith.constant 1 : index
    %c0_118 = arith.constant 0 : index
    %60 = vector.load %arg9[%c1_116, %c1_117, %c0_118] : memref<18x18x8xf32, #tpu.memory_space<vmem>>, vector<16x16x8xf32>
    %61 = arith.truncf %60 : vector<16x16x8xf32> to vector<16x16x8xbf16>
    %c0_119 = arith.constant 0 : index
    %c0_120 = arith.constant 0 : index
    %c32_121 = arith.constant 32 : index
    %62 = vector.load %arg8[%c0_119, %c0_120, %c32_121] : memref<16x16x72xbf16, #tpu.memory_space<vmem>>, vector<16x16x8xbf16>
    tpu.vector_store %arg8[%c0_119, %c0_120, %c32_121], %61 {strides = array<i32>} : memref<16x16x72xbf16, #tpu.memory_space<vmem>>, vector<16x16x8xbf16>,
    %c1_122 = arith.constant 1 : index
    %c2_123 = arith.constant 2 : index
    %c0_124 = arith.constant 0 : index
    %63 = vector.load %arg9[%c1_122, %c2_123, %c0_124] : memref<18x18x8xf32, #tpu.memory_space<vmem>>, vector<16x16x8xf32>
    %64 = arith.truncf %63 : vector<16x16x8xf32> to vector<16x16x8xbf16>
    %c0_125 = arith.constant 0 : index
    %c0_126 = arith.constant 0 : index
    %c40 = arith.constant 40 : index
    %65 = vector.load %arg8[%c0_125, %c0_126, %c40] : memref<16x16x72xbf16, #tpu.memory_space<vmem>>, vector<16x16x8xbf16>
    tpu.vector_store %arg8[%c0_125, %c0_126, %c40], %64 {strides = array<i32>} : memref<16x16x72xbf16, #tpu.memory_space<vmem>>, vector<16x16x8xbf16>,
    %c2_127 = arith.constant 2 : index
    %c0_128 = arith.constant 0 : index
    %c0_129 = arith.constant 0 : index
    %66 = vector.load %arg9[%c2_127, %c0_128, %c0_129] : memref<18x18x8xf32, #tpu.memory_space<vmem>>, vector<16x16x8xf32>
    %67 = arith.truncf %66 : vector<16x16x8xf32> to vector<16x16x8xbf16>
    %c0_130 = arith.constant 0 : index
    %c0_131 = arith.constant 0 : index
    %c48 = arith.constant 48 : index
    %68 = vector.load %arg8[%c0_130, %c0_131, %c48] : memref<16x16x72xbf16, #tpu.memory_space<vmem>>, vector<16x16x8xbf16>
    tpu.vector_store %arg8[%c0_130, %c0_131, %c48], %67 {strides = array<i32>} : memref<16x16x72xbf16, #tpu.memory_space<vmem>>, vector<16x16x8xbf16>,
    %c2_132 = arith.constant 2 : index
    %c1_133 = arith.constant 1 : index
    %c0_134 = arith.constant 0 : index
    %69 = vector.load %arg9[%c2_132, %c1_133, %c0_134] : memref<18x18x8xf32, #tpu.memory_space<vmem>>, vector<16x16x8xf32>
    %70 = arith.truncf %69 : vector<16x16x8xf32> to vector<16x16x8xbf16>
    %c0_135 = arith.constant 0 : index
    %c0_136 = arith.constant 0 : index
    %c56 = arith.constant 56 : index
    %71 = vector.load %arg8[%c0_135, %c0_136, %c56] : memref<16x16x72xbf16, #tpu.memory_space<vmem>>, vector<16x16x8xbf16>
    tpu.vector_store %arg8[%c0_135, %c0_136, %c56], %70 {strides = array<i32>} : memref<16x16x72xbf16, #tpu.memory_space<vmem>>, vector<16x16x8xbf16>,
    %c2_137 = arith.constant 2 : index
    %c2_138 = arith.constant 2 : index
    %c0_139 = arith.constant 0 : index
    %72 = vector.load %arg9[%c2_137, %c2_138, %c0_139] : memref<18x18x8xf32, #tpu.memory_space<vmem>>, vector<16x16x8xf32>
    %73 = arith.truncf %72 : vector<16x16x8xf32> to vector<16x16x8xbf16>
    %c0_140 = arith.constant 0 : index
    %c0_141 = arith.constant 0 : index
    %c64 = arith.constant 64 : index
    %74 = vector.load %arg8[%c0_140, %c0_141, %c64] : memref<16x16x72xbf16, #tpu.memory_space<vmem>>, vector<16x16x8xbf16>
    tpu.vector_store %arg8[%c0_140, %c0_141, %c64], %73 {strides = array<i32>} : memref<16x16x72xbf16, #tpu.memory_space<vmem>>, vector<16x16x8xbf16>,
    %c0_142 = arith.constant 0 : index
    %c0_143 = arith.constant 0 : index
    %c0_144 = arith.constant 0 : index
    %75 = vector.load %arg8[%c0_142, %c0_143, %c0_144] : memref<16x16x72xbf16, #tpu.memory_space<vmem>>, vector<16x16x72xbf16>
    %76 = vector.shape_cast %75 : vector<16x16x72xbf16> to vector<256x72xbf16>
    %c0_145 = arith.constant 0 : index
    %c0_146 = arith.constant 0 : index
    %77 = vector.load %arg4[%c0_145, %c0_146] : memref<72x8xbf16, #tpu.memory_space<vmem>>, vector<72x8xbf16>
    %cst_147 = arith.constant dense<0.000000e+00> : vector<256x8xf32>
    %78 = tpu.matmul %76, %77, %cst_147 {dimension_numbers = #tpu.dot_dimension_numbers<[1], [0], [0], [1], [0, 0, 1, 1], [], []>} : vector<256x72xbf16>, vector<72x8xbf16>, vector<256x8xf32> -> vector<256x8xf32>
    %c0_148 = arith.constant 0 : index
    %c0_149 = arith.constant 0 : index
    %79 = vector.load %arg5[%c0_148, %c0_149] : memref<1x8xf32, #tpu.memory_space<vmem>>, vector<1x8xf32>
    %80 = vector.broadcast %79 : vector<1x8xf32> to vector<256x8xf32>
    %81 = arith.addf %78, %80 : vector<256x8xf32>
    %cst_150 = arith.constant 0.000000e+00 : f32
    %82 = vector.broadcast %cst_150 : f32 to vector<256x8xf32>
    %83 = arith.maximumf %81, %82 : vector<256x8xf32>
    %84 = vector.shape_cast %83 : vector<256x8xf32> to vector<16x16x8xf32>
    %c0_151 = arith.constant 0 : index
    %c0_152 = arith.constant 0 : index
    %c0_153 = arith.constant 0 : index
    %85 = vector.load %arg9[%c0_151, %c0_152, %c0_153] : memref<18x18x8xf32, #tpu.memory_space<vmem>>, vector<16x16x8xf32>
    tpu.vector_store %arg9[%c0_151, %c0_152, %c0_153], %84 {strides = array<i32>} : memref<18x18x8xf32, #tpu.memory_space<vmem>>, vector<16x16x8xf32>,
    %c0_154 = arith.constant 0 : index
    %c0_155 = arith.constant 0 : index
    %c0_156 = arith.constant 0 : index
    %86 = tpu.strided_load %arg9[%c0_154, %c0_155, %c0_156] {strides = array<i32: 2, 1, 1>} : memref<18x18x8xf32, #tpu.memory_space<vmem>>, vector<8x16x8xf32>
    %c1_157 = arith.constant 1 : index
    %c0_158 = arith.constant 0 : index
    %c0_159 = arith.constant 0 : index
    %87 = tpu.strided_load %arg9[%c1_157, %c0_158, %c0_159] {strides = array<i32: 2, 1, 1>} : memref<18x18x8xf32, #tpu.memory_space<vmem>>, vector<8x16x8xf32>
    %88 = arith.maximumf %86, %87 : vector<8x16x8xf32>
    %c0_160 = arith.constant 0 : index
    %c0_161 = arith.constant 0 : index
    %c0_162 = arith.constant 0 : index
    %89 = vector.load %arg9[%c0_160, %c0_161, %c0_162] : memref<18x18x8xf32, #tpu.memory_space<vmem>>, vector<8x16x8xf32>
    tpu.vector_store %arg9[%c0_160, %c0_161, %c0_162], %88 {strides = array<i32>} : memref<18x18x8xf32, #tpu.memory_space<vmem>>, vector<8x16x8xf32>,
    %c0_163 = arith.constant 0 : index
    %c0_164 = arith.constant 0 : index
    %c0_165 = arith.constant 0 : index
    %90 = tpu.strided_load %arg9[%c0_163, %c0_164, %c0_165] {strides = array<i32: 1, 2, 1>} : memref<18x18x8xf32, #tpu.memory_space<vmem>>, vector<8x8x8xf32>
    %c0_166 = arith.constant 0 : index
    %c1_167 = arith.constant 1 : index
    %c0_168 = arith.constant 0 : index
    %91 = tpu.strided_load %arg9[%c0_166, %c1_167, %c0_168] {strides = array<i32: 1, 2, 1>} : memref<18x18x8xf32, #tpu.memory_space<vmem>>, vector<8x8x8xf32>
    %92 = arith.maximumf %90, %91 : vector<8x8x8xf32>
    %c0_169 = arith.constant 0 : index
    %c0_170 = arith.constant 0 : index
    %c0_171 = arith.constant 0 : index
    %c0_172 = arith.constant 0 : index
    %93 = vector.load %arg6[%c0_169, %c0_170, %c0_171, %c0_172] : memref<1x8x8x8xf32, #tpu.memory_space<vmem>>, vector<1x8x8x8xf32>
    %94 = vector.shape_cast %93 : vector<1x8x8x8xf32> to vector<8x8x8xf32>
    %95 = vector.shape_cast %92 : vector<8x8x8xf32> to vector<1x8x8x8xf32>
    tpu.vector_store %arg6[%c0_169, %c0_170, %c0_171, %c0_172], %95 {strides = array<i32>} : memref<1x8x8x8xf32, #tpu.memory_space<vmem>>, vector<1x8x8x8xf32>,
    return
  }
  func.func @transform_0(%arg0: i32) -> (i32, i32, i32, i32) {
    %c0_i32 = arith.constant 0 : i32
    %c0_i32_0 = arith.constant 0 : i32
    %c0_i32_1 = arith.constant 0 : i32
    %c0_i32_2 = arith.constant 0 : i32
    return %arg0, %c0_i32, %c0_i32_0, %c0_i32_1 : i32, i32, i32, i32
  }
  func.func @transform_1(%arg0: i32) -> (i32, i32) {
    %c0_i32 = arith.constant 0 : i32
    %c0_i32_0 = arith.constant 0 : i32
    %c0_i32_1 = arith.constant 0 : i32
    return %c0_i32, %c0_i32_0 : i32, i32
  }
  func.func @transform_2(%arg0: i32) -> (i32, i32) {
    %c0_i32 = arith.constant 0 : i32
    %c0_i32_0 = arith.constant 0 : i32
    %c0_i32_1 = arith.constant 0 : i32
    return %c0_i32, %c0_i32_0 : i32, i32
  }
  func.func @transform_3(%arg0: i32) -> (i32, i32) {
    %c0_i32 = arith.constant 0 : i32
    %c0_i32_0 = arith.constant 0 : i32
    %c0_i32_1 = arith.constant 0 : i32
    return %c0_i32, %c0_i32_0 : i32, i32
  }
  func.func @transform_4(%arg0: i32) -> (i32, i32) {
    %c0_i32 = arith.constant 0 : i32
    %c0_i32_0 = arith.constant 0 : i32
    %c0_i32_1 = arith.constant 0 : i32
    return %c0_i32, %c0_i32_0 : i32, i32
  }
  func.func @transform_5(%arg0: i32) -> (i32, i32, i32, i32) {
    %c0_i32 = arith.constant 0 : i32
    %c0_i32_0 = arith.constant 0 : i32
    %c0_i32_1 = arith.constant 0 : i32
    %c0_i32_2 = arith.constant 0 : i32
    return %arg0, %c0_i32, %c0_i32_0, %c0_i32_1 : i32, i32, i32, i32
  }
}

</mosaic_0001>

<bundles_post_ra>
// kernel: tpu_custom_call.1
= control target key start
LH: loop header
LB: loop body
LE: loop exit
PB: predicated region body
PF: predicated region fallthrough
CT: control target
= control target key end

     0   :  { %10 = vsyncpa [#allocation6], 0  ;;  %s7718_s0 = inlined_call_operand.vmem [shape: bf16[2,16,16,4], index: 0, kind: input, shape index: {}]   ;;  %s7719_s1 = inlined_call_operand.vmem [shape: bf16[36,8], index: 1, kind: input, shape index: {}]   ;;  %s7720_s2 = inlined_call_operand.vmem [shape: f32[1,8], index: 2, kind: input, shape index: {}]   ;;  %s7721_s3 = inlined_call_operand.vmem [shape: bf16[72,8], index: 3, kind: input, shape index: {}]   ;;  %s7722_s4 = inlined_call_operand.vmem [shape: f32[1,8], index: 4, kind: input, shape index: {}]   ;;  %s7723_s5 = inlined_call_operand.hbm [shape: f32[2,8,8,8], index: 5, kind: output, shape index: {}]  }
   0x1   :  { %12 = vsyncpa [#allocation6 + $0x1], 0  ;;  %s6303_s18 = smov 0   ;;  %s6305_s19 = smov 0  }
   0x2   :  { %s6307_s20 = smov 0   ;;  %s6309_s21 = smov 0  }
   0x3 LB: > { %s6324_s22 = sadd.s32 4294967295, %s6255_s21   ;;  %s5472_s23 = sadd.s32 4294967294, %s6255_s21   ;;  %s6255_s21 = sphi %s6309_s21, %s7772_s21   ;;  %s6251_s20 = sphi %s6307_s20, %s7771_s20   ;;  %s6247_s19 = sphi %s6305_s19, %s7770_s19   ;;  %s6243_s18 = sphi %s6303_s18, %s7769_s18  }
   0x4   : > { %s6328_s24 = sadd.s32 1, %s6255_s21   ;;  %s135_s25 = sadd.s32 1, %s6251_s20 }
   0x5   : > { %s132_s26 = ssub.s32 %s6255_s21, %s6328_s24  ;;  %p145_p0 = scmp.ne.s32.totalorder %s6251_s20, %s6247_s19 }
   0x6   : > { %p133_p1 = scmp.eq.s32.totalorder %s132_s26, 0  ;;  %p146_p2 = scmp.eq.s32.totalorder %s6324_s22, 1 }
   0x7   : > { %p151_p3 = scmp.ne.s32.totalorder %s6247_s19, %s6243_s18  ;;  %p152_p4 = scmp.eq.s32.totalorder %s5472_s23, 1 }
   0x8   : > { %s6339_s27 = scalar_select %p133_p1, %s6251_s20, %s135_s25  }
   0x9   : > { %p6341_p5 = por %p146_p2, %p145_p0  ;;  %p6345_p6 = por %p152_p4, %p151_p3 }
   0xa   : > { %p5475_p7 = scmp.ge.s32.totalorder %s6255_s21, 1  ;;  %p190_p8 = scmp.lt.s32.totalorder %s6255_s21, 3 }
   0xc   : > { %p191_p9 = pnand %p5475_p7, %p190_p8 }
   0xd   : > { %p218_p10 = scmp.lt.s32.totalorder (!%p191_p9), %s6324_s22, 1  ;;  %vm224_vm0 = vcmask (!%p191_p9), 27648   ;;  %vm227_vm1 = vcmask (!%p191_p9), 24576   ;;  %vm234_vm2 = vsmask.f32 (!%p191_p9), 256  ;;  %v6257_v4 = vmov (!%p191_p9), 0  }
   0xe   : > { %194 = sbr.rel (%p191_p9) target bundleno = 1115 (0x45b), region = 40  ;;  %vm6354_vm3 = vmand (!%p191_p9), %vm227_vm1, %vm234_vm2  ;;  %v239_v1 = vld [vmem:[#allocation2 + $0xc] sm:$0x1] (!%p191_p9)  ;;  %vm290_vm4 = vsmask.f32 (!%p191_p9), 7938  ;;  %vm1570_vm9 = vcmask (!%p191_p9), 1046528  }
   0xf   : > { %v240_v2 = vsel (!%p191_p9), %vm6354_vm3, 0, %v239_v1  ;;  %v242_v3 = vld [vmem:[#allocation2 + $0x18] sm:$0x1] (!%p191_p9)  ;;  %225 = vst.msk [vmem:[#allocation2] sm:$0xf] (!%p191_p9), %vm224_vm0, %v6257_v4  ;;  %vm6371_vm5 = vmand (!%p191_p9), %vm227_vm1, %vm290_vm4  ;;  %s6258_s10 = smov (!%p191_p9), 12  }
  0x10   : > { %241 = vst [vmem:[#allocation2 + $0xc] sm:$0x1] (!%p191_p9), %v240_v2  ;;  %226 = vst.msk [vmem:[#allocation2 + $0x4] sm:$0xf] (!%p191_p9), %vm224_vm0, %v6257_v4  ;;  %v243_v5 = vsel (!%p191_p9), %vm6354_vm3, 0, %v242_v3  ;;  %s6259_s11 = smov (!%p191_p9), 8  }
  0x11   : > { %228 = vst.msk [vmem:[#allocation2 + $0x8] sm:$0x1] (!%p191_p9), %vm227_vm1, %v6257_v4  ;;  %232 = vst.msk [vmem:[#allocation2 + $0xd4] sm:$0x1] (!%p191_p9), %vm227_vm1, %v6257_v4  ;;  %v245_v7 = vld [vmem:[#allocation2 + $0x24] sm:$0x1] (!%p191_p9) }
  0x12   : > { %230 = vst.msk [vmem:[#allocation2 + $0xcc] sm:$0xf] (!%p191_p9), %vm224_vm0, %v6257_v4  ;;  %231 = vst.msk [vmem:[#allocation2 + $0xd0] sm:$0xf] (!%p191_p9), %vm224_vm0, %v6257_v4  ;;  %v295_v8 = vld [vmem:[#allocation2 + $0x14] sm:$0x1] (!%p191_p9) }
  0x13   : > { %244 = vst [vmem:[#allocation2 + $0x18] sm:$0x1] (!%p191_p9), %v243_v5  ;;  %vm378_vm6 = vsmask.f32 (!%p191_p9), 4368  ;;  %v246_v9 = vsel (!%p191_p9), %vm6354_vm3, 0, %v245_v7  ;;  %v296_v10 = vsel (!%p191_p9), %vm6371_vm5, 0, %v295_v8  ;;  %vm6396_vm8 = vmand (!%p191_p9), %vm224_vm0, %vm290_vm4 }
  0x14   : > { %247 = vst [vmem:[#allocation2 + $0x24] sm:$0x1] (!%p191_p9), %v246_v9  ;;  %297 = vst [vmem:[#allocation2 + $0x14] sm:$0x1] (!%p191_p9), %v296_v10  ;;  %v298_v43 = vld [vmem:[#allocation2 + $0x20] sm:$0x1] (!%p191_p9) }
  0x15   : > { %s219_s30 = scalar_select %p218_p10, %s6324_s22, 1  ;;  %vm6389_vm7 = vmor %vm234_vm2, %vm378_vm6  ;;  %v301_v61 = vld [vmem:[#allocation2 + $0x2c] sm:$0x1]  ;;  %v248_v62 = vld [vmem:[#allocation2 + $0x30] sm:$0x1]  ;;  %v299_v2 = vsel %vm6371_vm5, 0, %v298_v43 }
  0x16   : > { %v236_v46 = vld [vmem:[#allocation2] sm:$0x1]  ;;  %v302_v3 = vsel %vm6371_vm5, 0, %v301_v61  ;;  %300 = vst [vmem:[#allocation2 + $0x20] sm:$0x1] %v299_v2  ;;  %v249_v8 = vsel %vm6354_vm3, 0, %v248_v62 }
  0x17   : > { %s5766_s6 = sshll.u32 %s219_s30, 7  ;;  %v703_v31 = vld [vmem:[#allocation2 + $0xc] sm:$0xf]  ;;  %v6401_v37 = vld [vmem:[#allocation2] sm:$0xfe]   ;;  %v237_v53 = vsel %vm6354_vm3, 0, %v236_v46 }
  0x18   : > { %s6378_s9 = scalar_lea.vmem %s7718_s0, %s5766_s6  ;;  %v292_v32 = vld [vmem:[#allocation2 + $0x8] sm:$0x1]  ;;  %238 = vst [vmem:[#allocation2] sm:$0x1] %v237_v53  ;;  %v1571_v63 = vrot.slane %v6401_v37, 1  ;;  %s6260_s12 = smov 24  }
  0x19   : > { %v346_v11 = vld [vmem:[%s6378_s9] sm:$0xf]  ;;  %v347_v12 = vld [vmem:[%s6378_s9 + $0x4] sm:$0xf]  ;;  %v348_v13 = vld [vmem:[%s6378_s9 + $0x8] sm:$0xf] }
  0x1a   : > { %v381_v14 = vshrl.u32 %v346_v11, 16  ;;  %v384_v15 = vshll.u32 %v346_v11, 16  ;;  %v389_v16 = vshrl.u32 %v347_v12, 16  ;;  %v392_v17 = vshll.u32 %v347_v12, 16  ;;  %v349_v18 = vld [vmem:[%s6378_s9 + $0xc] sm:$0xf] }
  0x1b   : > { %v398_v20 = vshrl.u32 %v348_v13, 16  ;;  %v401_v21 = vshll.u32 %v348_v13, 16  ;;  %v406_v22 = vshrl.u32 %v349_v18, 16  ;;  %v409_v23 = vshll.u32 %v349_v18, 16  ;;  %v350_v24 = vld [vmem:[%s6378_s9 + $0x10] sm:$0xf] }
  0x1c   : > { %v383_v25 = vrot.slane %v381_v14, 7  ;;  %v391_v26 = vrot.slane %v389_v16, 7  ;;  %v351_v28 = vld [vmem:[%s6378_s9 + $0x14] sm:$0xf]  ;;  %v415_v29 = vshrl.u32 %v350_v24, 16  ;;  %v418_v30 = vshll.u32 %v350_v24, 16 }
  0x1d   : > { %v293_v38 = vsel %vm6371_vm5, 0, %v292_v32  ;;  %v400_v39 = vrot.slane %v398_v20, 7  ;;  %v6405_v40 = vrot.slane %v406_v22, 7  ;;  %v710_v41 = vld [vmem:[#allocation2 + $0x18] sm:$0xf]  ;;  %v423_v47 = vshrl.u32 %v351_v28, 16 }
  0x1e   : > { %v386_v33 = vor.u32 %v384_v15, %v383_v25  ;;  %v387_v34 = vrot.slane %v383_v25, 4  ;;  %v394_v35 = vor.u32 %v392_v17, %v391_v26  ;;  %v396_v36 = vrot.slane %v391_v26, 4  ;;  %294 = vst [vmem:[#allocation2 + $0x8] sm:$0x1] %v293_v38  ;;  %v717_v51 = vld [vmem:[#allocation2 + $0x24] sm:$0xf] }
  0x1f   : > { %v417_v42 = vrot.slane %v415_v29, 7  ;;  %v403_v48 = vor.u32 %v401_v21, %v400_v39  ;;  %v404_v49 = vrot.slane %v400_v39, 4  ;;  %v411_v50 = vor.u32 %v409_v23, %v6405_v40  ;;  %v707_v52 = vld [vmem:[#allocation2 + $0x14] sm:$0x1]  ;;  %v6432_v4 = vld [vmem:[%s6378_s9 + $0x18] sm:$0xf] }
  0x20   : > { %v395_v44 = vsel %vm6389_vm7, %v387_v34, %v394_v35  ;;  %v704_v45 = vsel %vm6396_vm8, %v386_v33, %v703_v31  ;;  %v6415_v56 = vrot.slane %v423_v47, 7  ;;  %v426_v59 = vshll.u32 %v351_v28, 16  ;;  %303 = vst [vmem:[#allocation2 + $0x2c] sm:$0x1] %v302_v3  ;;  %v353_v9 = vld [vmem:[%s6378_s9 + $0x1c] sm:$0xf] }
  0x21   : > { %705 = vst [vmem:[#allocation2 + $0xc] sm:$0xf] %v704_v45  ;;  %706 = vst.msk [vmem:[#allocation2 + $0x10] sm:$0xf] %vm224_vm0, %v395_v44  ;;  %v420_v54 = vor.u32 %v418_v30, %v417_v42  ;;  %v421_v55 = vrot.slane %v417_v42, 4  ;;  %v412_v57 = vsel %vm6389_vm7, %v404_v49, %v411_v50  ;;  %v711_v58 = vsel %vm6396_vm8, %v403_v48, %v710_v41  ;;  %v5949_v23 = vld [vmem:[#allocation2] sm:$0xff]  }
  0x22   : > { %v708_v60 = vsel %vm6354_vm3, %v396_v36, %v707_v52  ;;  %712 = vst [vmem:[#allocation2 + $0x18] sm:$0xf] %v711_v58  ;;  %713 = vst.msk [vmem:[#allocation2 + $0x1c] sm:$0xf] %vm224_vm0, %v412_v57  ;;  %v413_v5 = vrot.slane %v6405_v40, 4  ;;  %v428_v7 = vor.u32 %v426_v59, %v6415_v56  ;;  %v432_v10 = vshrl.u32 %v6432_v4, 16 }
  0x23   : > { %v718_v1 = vsel %vm6396_vm8, %v420_v54, %v717_v51  ;;  %709 = vst [vmem:[#allocation2 + $0x14] sm:$0x1] %v708_v60  ;;  %v430_v11 = vrot.slane %v6415_v56, 4  ;;  %250 = vst [vmem:[#allocation2 + $0x30] sm:$0x1] %v249_v8  ;;  %v435_v12 = vshll.u32 %v6432_v4, 16 }
  0x24   : > { %719 = vst [vmem:[#allocation2 + $0x24] sm:$0xf] %v718_v1  ;;  %v440_v13 = vshrl.u32 %v353_v9, 16  ;;  %v443_v14 = vshll.u32 %v353_v9, 16  ;;  %v429_v16 = vsel %vm6389_vm7, %v421_v55, %v428_v7  ;;  %v6444_v17 = vrot.slane %v432_v10, 7  ;;  %s6261_s13 = smov 4  }
  0x25   : > { %v5946_v15 = vld [vmem:[#allocation2 + $0x8] ss:$0 sps:$4 sm:$0x11]   ;;  %vm1136_vm10 = vsmask.f32 7424  ;;  %v1138_v31 = vshrl.u32 %v5949_v23, 16 }
  0x26   : > { %720 = vst.msk [vmem:[#allocation2 + $0x28] sm:$0xf] %vm224_vm0, %v429_v16  ;;  %v6447_v20 = vrot.slane %v440_v13, 7  ;;  %v1572_v21 = vrot.slane %v5946_v15, 1  ;;  %v438_v24 = vrot.slane %v6444_v17, 4  ;;  %v1140_v33 = vshll.u32 %v5949_v23, 16 }
  0x27   : > { %v5950_v22 = vld [vmem:[#allocation2 + $0x8] ss:$0 sps:$4 sm:$0x11]   ;;  %v714_v45 = vld [vmem:[#allocation2 + $0x20] sm:$0x1]  ;;  %s6262_s14 = smov 20  }
  0x28   : > { %v5944_v18 = vld [vmem:[#allocation2 + $0xc] sm:$0xff]   ;;  %v445_v25 = vor.u32 %v443_v14, %v6447_v20  ;;  %v1573_v26 = vsel %vm1570_vm9, %v1571_v63, %v1572_v21  ;;  %v1145_v29 = vshll.u32 %v5950_v22, 16  ;;  %v1142_v36 = vrot.slane %v1140_v33, 1  ;;  %s6263_s15 = smov 32   ;;  %s6264_s16 = smov 16  }
  0x29   : > { %1796 = vrot.lane.b32.xlu0 %v5944_v18, %s6258_s10  ;;  %v5947_v28 = vld [vmem:[#allocation2 + $0x18] sm:$0xff]   ;;  %1619 = vrot.lane.b32.xlu1 %v1573_v26, %s6259_s11  ;;  %v5952_v35 = vld [vmem:[#allocation2 + $0xc] sm:$0xfe]   ;;  %v715_v50 = vsel %vm6354_vm3, %v413_v5, %v714_v45  ;;  %v721_v3 = vld [vmem:[#allocation2 + $0x2c] sm:$0x1]  ;;  %s6265_s17 = smov 28  }
  0x2a   : > { %v5948_v30 = vld [vmem:[#allocation2 + $0x18] sm:$0xff]   ;;  %v446_v32 = vsel %vm6389_vm7, %v438_v24, %v445_v25  ;;  %v1147_v34 = vrot.slane %v1145_v29, 1  ;;  %v5953_v38 = vld [vmem:[#allocation2 + $0x14] ss:$0 sps:$4 sm:$0x11]   ;;  %v2470_v39 = vrot.slane %v5952_v35, 1  ;;  %v1143_v40 = vor.u32 %v1142_v36, %v1138_v31 }
  0x2b   : > { %727 = vst.msk [vmem:[#allocation2 + $0x34] sm:$0xf] %vm224_vm0, %v446_v32  ;;  %v5954_v41 = vld [vmem:[#allocation2 + $0xc] sm:$0xfe]   ;;  %v2471_v44 = vrot.slane %v5953_v38, 1  ;;  %v5962_v46 = vld [vmem:[#allocation2 + $0x18] sm:$0xff]   ;;  %v722_v9 = vsel %vm6354_vm3, %v430_v11, %v721_v3 }
  0x2c   : > { %v5955_v42 = vld [vmem:[#allocation2 + $0x14] ss:$0 sps:$4 sm:$0x11]   ;;  %v5960_v43 = vld [vmem:[#allocation2 + $0xc] sm:$0xff]   ;;  %v1148_v47 = vsel %vm1136_vm10, %v1143_v40, %v1147_v34  ;;  %v1574_v48 = vrot.slane %v5954_v41, 1  ;;  %v2050_v61 = vshrl.u32 %v5962_v46, 16 }
  0x2d   : > { %2696 = vrot.lane.b32.xlu0 %v5947_v28, %s6260_s12  ;;  %v5951_v37 = vld [vmem:[#allocation2 + $0x24] sm:$0xff]   ;;  %1798 = vrot.lane.b32.xlu1 %v5948_v30, %s6258_s10  ;;  %v1575_v49 = vrot.slane %v5955_v42, 1  ;;  %v5956_v51 = vld [vmem:[#allocation2 + $0x18] sm:$0xfe]   ;;  %716 = vst [vmem:[#allocation2 + $0x20] sm:$0x1] %v715_v50  ;;  %v2472_v53 = vsel %vm1570_vm9, %v2470_v39, %v2471_v44 }
  0x2e   : > { %v5958_v52 = vld [vmem:[#allocation2 + $0x18] sm:$0xfe]   ;;  %v3370_v55 = vrot.slane %v5956_v51, 1  ;;  %v1150_v57 = vshrl.u32 %v5960_v43, 16  ;;  %v1152_v60 = vshll.u32 %v5960_v43, 16  ;;  %v2052_v63 = vshll.u32 %v5962_v46, 16 }
  0x2f   : > { %v1576_v54 = vsel %vm1570_vm9, %v1574_v48, %v1575_v49  ;;  %v2473_v58 = vrot.slane %v5958_v52, 1  ;;  %v5961_v59 = vld [vmem:[#allocation2 + $0x14] ss:$0 sps:$4 sm:$0x11]   ;;  %v5964_v2 = vld [vmem:[#allocation2 + $0xc] sm:$0xff]   ;;  %v5966_v10 = vld [vmem:[#allocation2 + $0x24] sm:$0xff]  }
  0x30   : > { %v1157_v62 = vshll.u32 %v5961_v59, 16  ;;  %v1154_v1 = vrot.slane %v1152_v60, 1  ;;  %v2054_v7 = vrot.slane %v2052_v63, 1  ;;  %v5965_v8 = vld [vmem:[#allocation2 + $0x14] ss:$0 sps:$4 sm:$0x11]  }
  0x31   : > { %1329 = vrot.lane.b32.xlu0 %v1148_v47, %s6261_s13  ;;  %2698 = vrot.lane.b32.xlu1 %v5951_v37, %s6260_s12  ;;  %v2038_v14 = vshrl.u32 %v5964_v2, 16  ;;  %723 = vst [vmem:[#allocation2 + $0x2c] sm:$0x1] %v722_v9  ;;  %v2040_v16 = vshll.u32 %v5964_v2, 16  ;;  %v2045_v25 = vshll.u32 %v5965_v8, 16  ;;  %v2950_v26 = vshrl.u32 %v5966_v10, 16 }
  0x32   : > { %v1159_v5 = vrot.slane %v1157_v62, 1  ;;  %v1155_v21 = vor.u32 %v1154_v1, %v1150_v57  ;;  %v2055_v29 = vor.u32 %v2054_v7, %v2050_v61  ;;  %v2952_v30 = vshll.u32 %v5966_v10, 16  ;;  %v5968_v33 = vld [vmem:[#allocation2 + $0x18] sm:$0xff]   ;;  %v5972_v57 = vld [vmem:[#allocation2 + $0x24] sm:$0xfe]   ;;  %s6271_s23 = smov [#allocation5]  }
  0x33   : > { %v2042_v24 = vrot.slane %v2040_v16, 1  ;;  %v2047_v32 = vrot.slane %v2045_v25, 1  ;;  %v5970_v38 = vld [vmem:[#allocation2 + $0x18] sm:$0xff]   ;;  %v2938_v40 = vshrl.u32 %v5968_v33, 16  ;;  %v2940_v42 = vshll.u32 %v5968_v33, 16  ;;  %v5974_v61 = vld [vmem:[#allocation2 + $0x24] sm:$0xff]  }
  0x34   : > { %v5957_v13 = vld [vmem:[#allocation2 + $0x20] ss:$0 sps:$4 sm:$0x11]   ;;  %v1160_v34 = vsel %vm1136_vm10, %v1155_v21, %v1159_v5  ;;  %v2954_v36 = vrot.slane %v2952_v30, 1  ;;  %v1162_v50 = vshrl.u32 %v5970_v38, 16  ;;  %v1164_v51 = vshll.u32 %v5970_v38, 16 }
  0x35   : > { %2518 = vrot.lane.b32.xlu0 %v2472_v53, %s6262_s14  ;;  %1621 = vrot.lane.b32.xlu1 %v1576_v54, %s6259_s11  ;;  %v5959_v15 = vld [vmem:[#allocation2 + $0x20] ss:$0 sps:$4 sm:$0x11]   ;;  %v3371_v18 = vrot.slane %v5957_v13, 1  ;;  %v2043_v31 = vor.u32 %v2042_v24, %v2038_v14  ;;  %v2942_v48 = vrot.slane %v2940_v42, 1  ;;  %v3373_v1 = vrot.slane %v5972_v57, 1 }
  0x36   : > { %v5963_v22 = vld [vmem:[#allocation2 + $0x20] ss:$0 sps:$4 sm:$0x11]   ;;  %v2474_v23 = vrot.slane %v5959_v15, 1  ;;  %v2955_v45 = vor.u32 %v2954_v36, %v2950_v26  ;;  %v1174_v5 = vshrl.u32 %v5974_v61, 16  ;;  %v1176_v7 = vshll.u32 %v5974_v61, 16 }
  0x37   : > { %v3372_v28 = vsel %vm1570_vm9, %v3370_v55, %v3371_v18  ;;  %v2057_v56 = vshll.u32 %v5963_v22, 16  ;;  %v5969_v37 = vld [vmem:[#allocation2 + $0x20] ss:$0 sps:$4 sm:$0x11]   ;;  %v2048_v44 = vsel %vm1136_vm10, %v2043_v31, %v2047_v32  ;;  %v2943_v54 = vor.u32 %v2942_v48, %v2938_v40  ;;  %v5976_v9 = vld [vmem:[#allocation2 + $0x18] sm:$0xfe]  }
  0x38   : > { %v2475_v11 = vsel %vm1570_vm9, %v2473_v58, %v2474_v23  ;;  %v5967_v39 = vld [vmem:[#allocation2 + $0x2c] ss:$0 sps:$4 sm:$0x11]   ;;  %v2945_v43 = vshll.u32 %v5969_v37, 16  ;;  %v1166_v55 = vrot.slane %v1164_v51, 1  ;;  %v1178_v10 = vrot.slane %v1176_v7, 1 }
  0x39   : > { %3418 = vrot.lane.b32.xlu0 %v3372_v28, %s6263_s15  ;;  %2520 = vrot.lane.b32.xlu1 %v2475_v11, %s6262_s14  ;;  %v2059_v35 = vrot.slane %v2057_v56, 1  ;;  %v2957_v46 = vshll.u32 %v5967_v39, 16  ;;  %v5971_v47 = vld [vmem:[#allocation2 + $0x20] ss:$0 sps:$4 sm:$0x11]   ;;  %v447_v15 = vrot.slane %v6447_v20, 4  ;;  %v437_v22 = vor.u32 %v435_v12, %v6444_v17 }
  0x3a   : > { %v2947_v49 = vrot.slane %v2945_v43, 1  ;;  %v1169_v53 = vshll.u32 %v5971_v47, 16  ;;  %v5973_v58 = vld [vmem:[#allocation2 + $0x2c] ss:$0 sps:$4 sm:$0x11]   ;;  %v1167_v63 = vor.u32 %v1166_v55, %v1162_v50  ;;  %v1577_v21 = vrot.slane %v5976_v9, 1 }
  0x3b   : > { %v2060_v41 = vsel %vm1136_vm10, %v2055_v29, %v2059_v35  ;;  %v2959_v52 = vrot.slane %v2957_v46, 1  ;;  %v3374_v2 = vrot.slane %v5973_v58, 1  ;;  %v5975_v3 = vld [vmem:[#allocation2 + $0x2c] ss:$0 sps:$4 sm:$0x11]   ;;  %v5982_v23 = vld [vmem:[#allocation2 + $0x24] sm:$0xff]   ;;  %v1179_v25 = vor.u32 %v1178_v10, %v1174_v5 }
  0x3c   : > { %v1171_v60 = vrot.slane %v1169_v53, 1  ;;  %v2948_v62 = vsel %vm1136_vm10, %v2943_v54, %v2947_v49  ;;  %v1181_v13 = vshll.u32 %v5975_v3, 16  ;;  %v5977_v14 = vld [vmem:[#allocation2 + $0x20] ss:$0 sps:$4 sm:$0x11]   ;;  %v2062_v30 = vshrl.u32 %v5982_v23, 16 }
  0x3d   : > { %1331 = vrot.lane.b32.xlu0 %v1160_v34, %s6261_s13  ;;  %2231 = vrot.lane.b32.xlu1 %v2060_v41, %s6264_s16  ;;  %v2960_v59 = vsel %vm1136_vm10, %v2955_v45, %v2959_v52  ;;  %v304_v16 = vld [vmem:[#allocation2 + $0x38] sm:$0x1]  ;;  %v3375_v18 = vsel %vm1570_vm9, %v3373_v1, %v3374_v2  ;;  %v251_v24 = vld [vmem:[#allocation2 + $0x3c] sm:$0x1]  ;;  %v1578_v28 = vrot.slane %v5977_v14, 1  ;;  %v2064_v32 = vshll.u32 %v5982_v23, 16 }
  0x3e   : > { %v1172_v8 = vsel %vm1136_vm10, %v1167_v63, %v1171_v60  ;;  %v1183_v26 = vrot.slane %v1181_v13, 1  ;;  %v5978_v29 = vld [vmem:[#allocation2 + $0x24] sm:$0xfe]   ;;  %v5979_v56 = vld [vmem:[#allocation2 + $0x2c] ss:$0 sps:$4 sm:$0x11]  }
  0x3f   : > { %v1580_v11 = vrot.slane %v5978_v29, 1  ;;  %v724_v31 = vld [vmem:[#allocation2 + $0x30] sm:$0xf]  ;;  %v1579_v4 = vsel %vm1570_vm9, %v1577_v21, %v1578_v28  ;;  %v1581_v12 = vrot.slane %v5979_v56, 1  ;;  %v305_v33 = vsel %vm6371_vm5, 0, %v304_v16  ;;  %v5980_v34 = vld [vmem:[#allocation2 + $0x24] sm:$0xff]  }
  0x40   : > { %v1184_v20 = vsel %vm1136_vm10, %v1179_v25, %v1183_v26  ;;  %v725_v17 = vsel %vm6396_vm8, %v437_v22, %v724_v31  ;;  %v2066_v35 = vrot.slane %v2064_v32, 1  ;;  %306 = vst [vmem:[#allocation2 + $0x38] sm:$0x1] %v305_v33  ;;  %v252_v36 = vsel %vm6354_vm3, 0, %v251_v24  ;;  %v6052_v39 = vld [vmem:[#allocation2] sm:$0xff]   ;;  %v6065_v13 = vld [vmem:[#allocation2 + $0xc] sm:$0xff]  }
  0x41   : > { %2229 = vrot.lane.b32.xlu0 %v2048_v44, %s6264_s16  ;;  %3131 = vrot.lane.b32.xlu1 %v2960_v59, %s6265_s17  ;;  %726 = vst [vmem:[#allocation2 + $0x30] sm:$0xf] %v725_v17  ;;  %v1582_v37 = vsel %vm1570_vm9, %v1580_v11, %v1581_v12  ;;  %v5983_v38 = vld [vmem:[#allocation2 + $0x2c] ss:$0 sps:$4 sm:$0x11]   ;;  %vm943_vm11 = vcmask 31744  }
  0x42   : > { %253 = vst [vmem:[#allocation2 + $0x3c] sm:$0x1] %v252_v36  ;;  %v2067_v40 = vor.u32 %v2066_v35, %v2062_v30  ;;  %v2069_v41 = vshll.u32 %v5983_v38, 16  ;;  %v5986_v42 = vld [vmem:[#allocation2 + $0x24] sm:$0xfe]   ;;  %944 = vst.msk [vmem:[#allocation3] sm:$0xff] %vm943_vm11, %v6052_v39 }
  0x43   : > { %v5987_v43 = vld [vmem:[#allocation2 + $0x2c] ss:$0 sps:$4 sm:$0x11]   ;;  %v354_v44 = vld [vmem:[%s6378_s9 + $0x20] sm:$0xf]  ;;  %v2476_v46 = vrot.slane %v5986_v42, 1 }
  0x44   : > { %v2071_v45 = vrot.slane %v2069_v41, 1  ;;  %v2477_v47 = vrot.slane %v5987_v43, 1  ;;  %v355_v48 = vld [vmem:[%s6378_s9 + $0x24] sm:$0xf]  ;;  %v449_v49 = vshrl.u32 %v354_v44, 16  ;;  %v452_v50 = vshll.u32 %v354_v44, 16 }
  0x45   : > { %3129 = vrot.lane.b32.xlu0 %v2948_v62, %s6265_s17  ;;  %1333 = vrot.lane.b32.xlu1 %v1172_v8, %s6261_s13  ;;  %v457_v51 = vshrl.u32 %v355_v48, 16  ;;  %v460_v52 = vshll.u32 %v355_v48, 16  ;;  %v307_v8 = vld [vmem:[#allocation2 + $0x44] sm:$0x1]  ;;  %945 = vst.msk [vmem:[#allocation3 + $0x8] sm:$0xff] %vm943_vm11, %v6065_v13  ;;  %vm7725_vm12 = vcmask 64544  }
  0x46   : > { %v2072_v54 = vsel %vm1136_vm10, %v2067_v40, %v2071_v45  ;;  %v451_v57 = vrot.slane %v449_v49, 7  ;;  %v2478_v5 = vsel %vm1570_vm9, %v2476_v46, %v2477_v47  ;;  %v308_v16 = vsel %vm6371_vm5, 0, %v307_v8  ;;  %s6197_s25 = sshll.u32 %s6271_s23, 4  ;;  %s6198_s25 = int_to_ptr.vmem [resolvable:$false] %s6197_s25 }
  0x47   : > { %v728_v55 = vld [vmem:[#allocation2 + $0x38] sm:$0x1]  ;;  %v459_v60 = vrot.slane %v457_v51, 7  ;;  %309 = vst [vmem:[#allocation2 + $0x44] sm:$0x1] %v308_v16  ;;  %vm1667_vm13 = vcmask 97344  }
  0x48   : > { %v5981_v53 = vld [vmem:[#allocation2 + $0x30] sm:$0xff]   ;;  %v729_v58 = vsel %vm6354_vm3, %v447_v15, %v728_v55  ;;  %v454_v61 = vor.u32 %v452_v50, %v451_v57  ;;  %v455_v62 = vrot.slane %v451_v57, 4  ;;  %v254_v16 = vld [vmem:[#allocation2 + $0x48] sm:$0x1]  ;;  %vm1844_vm14 = vcmask 130144   ;;  %s6199_s26 = scalar_lea.vmem %s6198_s25, 2048 }
  0x49   : > { %3420 = vrot.lane.b32.xlu0 %v3375_v18, %s6263_s15  ;;  %1335 = vrot.lane.b32.xlu1 %v1184_v20, %s6261_s13  ;;  %v5984_v59 = vld [vmem:[#allocation2 + $0x30] sm:$0xff]   ;;  %730 = vst [vmem:[#allocation2 + $0x38] sm:$0x1] %v729_v58  ;;  %v462_v1 = vor.u32 %v460_v52, %v459_v60  ;;  %v731_v2 = vld [vmem:[#allocation2 + $0x3c] sm:$0xf]  ;;  %v464_v29 = vrot.slane %v459_v60, 4 }
  0x4a   : > { %v2076_v63 = vshll.u32 %v5984_v59, 16  ;;  %v5992_v3 = vld [vmem:[#allocation2 + $0x30] sm:$0xff]   ;;  %v732_v7 = vsel %vm6396_vm8, %v454_v61, %v731_v2  ;;  %v2074_v18 = vshrl.u32 %v5984_v59, 16  ;;  %vm2277_vm15 = vcmask 162944  }
  0x4b   : > { %v463_v9 = vsel %vm6389_vm7, %v455_v62, %v462_v1  ;;  %733 = vst [vmem:[#allocation2 + $0x3c] sm:$0xf] %v732_v7  ;;  %v2964_v10 = vshll.u32 %v5992_v3, 16  ;;  %v5988_v14 = vld [vmem:[#allocation2 + $0x30] sm:$0xfe]   ;;  %v2962_v22 = vshrl.u32 %v5992_v3, 16 }
  0x4c   : > { %v5990_v15 = vld [vmem:[#allocation2 + $0x30] sm:$0xff]   ;;  %734 = vst.msk [vmem:[#allocation2 + $0x40] sm:$0xf] %vm224_vm0, %v463_v9  ;;  %v2078_v21 = vrot.slane %v2076_v63, 1  ;;  %v2479_v11 = vrot.slane %v5988_v14, 1  ;;  %vm2566_vm1 = vcmask 195744  }
  0x4d   : > { %1623 = vrot.lane.b32.xlu0 %v1579_v4, %s6259_s11  ;;  %1625 = vrot.lane.b32.xlu1 %v1582_v37, %s6259_s11  ;;  %v5998_v23 = vld [vmem:[#allocation2 + $0x30] sm:$0xff]   ;;  %v2966_v25 = vrot.slane %v2964_v10, 1  ;;  %vm2744_vm2 = vcmask 228544   ;;  %vm7726_vm4 = vcmask 261344   ;;  %vm7724_vm6 = vcmask 294144  }
  0x4e   : > { %v5996_v26 = vld [vmem:[#allocation2 + $0x30] sm:$0xfe]   ;;  %v2079_v56 = vor.u32 %v2078_v21, %v2074_v18  ;;  %v1188_v31 = vshll.u32 %v5998_v23, 16  ;;  %v1186_v46 = vshrl.u32 %v5998_v23, 16  ;;  %v356_v23 = vld [vmem:[%s6378_s9 + $0x28] sm:$0xf] }
  0x4f   : > { %v2967_v12 = vor.u32 %v2966_v25, %v2962_v22  ;;  %v3376_v39 = vrot.slane %v5996_v26, 1  ;;  %v6004_v57 = vld [vmem:[#allocation2 + $0x30] sm:$0xfe]   ;;  %v255_v22 = vsel %vm6354_vm3, 0, %v254_v16 }
  0x50   : > { %v5985_v24 = vld [vmem:[#allocation2 + $0x38] ss:$0 sps:$4 sm:$0x11]   ;;  %v1190_v52 = vrot.slane %v1188_v31, 1  ;;  %v1583_v8 = vrot.slane %v6004_v57, 1 }
  0x51   : > { %1800 = vrot.lane.b32.xlu0 %v5980_v34, %s6258_s10  ;;  %1802 = vrot.lane.b32.xlu1 %v5981_v53, %s6258_s10  ;;  %v5989_v28 = vld [vmem:[#allocation2 + $0x38] ss:$0 sps:$4 sm:$0x11]   ;;  %v2081_v30 = vshll.u32 %v5985_v24, 16  ;;  %v735_v34 = vld [vmem:[#allocation2 + $0x44] sm:$0x1] }
  0x52   : > { %v5993_v20 = vld [vmem:[#allocation2 + $0x38] ss:$0 sps:$4 sm:$0x11]   ;;  %v2480_v4 = vrot.slane %v5989_v28, 1  ;;  %v736_v37 = vsel %vm6354_vm3, %v464_v29, %v735_v34  ;;  %v357_v24 = vld [vmem:[%s6378_s9 + $0x2c] sm:$0xf] }
  0x53   : > { %v2083_v32 = vrot.slane %v2081_v30, 1  ;;  %v2969_v17 = vshll.u32 %v5993_v20, 16  ;;  %v5994_v33 = vld [vmem:[#allocation2 + $0x3c] sm:$0xff]   ;;  %v5997_v38 = vld [vmem:[#allocation2 + $0x38] ss:$0 sps:$4 sm:$0x11]  }
  0x54   : > { %737 = vst [vmem:[#allocation2 + $0x44] sm:$0x1] %v736_v37  ;;  %v5999_v40 = vld [vmem:[#allocation2 + $0x38] ss:$0 sps:$4 sm:$0x11]   ;;  %v6002_v41 = vld [vmem:[#allocation2 + $0x3c] sm:$0xff]   ;;  %v2481_v42 = vsel %vm1570_vm9, %v2479_v11, %v2480_v4 }
  0x55   : > { %2233 = vrot.lane.b32.xlu0 %v2072_v54, %s6264_s16  ;;  %v2084_v35 = vsel %vm1136_vm10, %v2079_v56, %v2083_v32  ;;  %v2971_v36 = vrot.slane %v2969_v17, 1  ;;  %v2976_v44 = vshll.u32 %v5994_v33, 16  ;;  %v3377_v45 = vrot.slane %v5997_v38, 1  ;;  %v6000_v49 = vld [vmem:[#allocation2 + $0x3c] sm:$0xfe]  }
  0x56   : > { %2235 = vrot.lane.b32.xlu1 %v2084_v35, %s6264_s16  ;;  %v1193_v47 = vshll.u32 %v5999_v40, 16  ;;  %v5991_v50 = vld [vmem:[#allocation2 + $0x3c] sm:$0xff]   ;;  %v2974_v51 = vshrl.u32 %v5994_v33, 16  ;;  %v1200_v53 = vshll.u32 %v6002_v41, 16  ;;  %v1198_v55 = vshrl.u32 %v6002_v41, 16 }
  0x57   : > { %v2972_v43 = vsel %vm1136_vm10, %v2967_v12, %v2971_v36  ;;  %v3378_v48 = vsel %vm1570_vm9, %v3376_v39, %v3377_v45  ;;  %v2978_v54 = vrot.slane %v2976_v44, 1  ;;  %v6005_v59 = vld [vmem:[#allocation2 + $0x38] ss:$0 sps:$4 sm:$0x11]   ;;  %v3379_v61 = vrot.slane %v6000_v49, 1  ;;  %v6010_v13 = vld [vmem:[#allocation2 + $0x3c] sm:$0xff]  }
  0x58   : > { %v1195_v58 = vrot.slane %v1193_v47, 1  ;;  %v1202_v63 = vrot.slane %v1200_v53, 1  ;;  %v1584_v9 = vrot.slane %v6005_v59, 1  ;;  %v6537_v10 = vld [vmem:[#allocation2 + $0x3c] sm:$0xfe]   ;;  %v466_v28 = vshrl.u32 %v356_v23, 16 }
  0x59   : > { %2522 = vrot.lane.b32.xlu0 %v2478_v5, %s6262_s14  ;;  %v2979_v1 = vor.u32 %v2978_v54, %v2974_v51  ;;  %v1191_v5 = vor.u32 %v1190_v52, %v1186_v46  ;;  %256 = vst [vmem:[#allocation2 + $0x48] sm:$0x1] %v255_v22  ;;  %v469_v29 = vshll.u32 %v356_v23, 16  ;;  %v6072_v56 = vld [vmem:[%s7719_s1] sm:$0xff]   ;;  %v474_v11 = vshrl.u32 %v357_v24, 16 }
  0x5a   : > { %2524 = vrot.lane.b32.xlu1 %v2481_v42, %s6262_s14  ;;  %v1585_v20 = vsel %vm1570_vm9, %v1583_v8, %v1584_v9  ;;  %v477_v31 = vshll.u32 %v357_v24, 16  ;;  %v1203_v32 = vor.u32 %v1202_v63, %v1198_v55  ;;  %v6008_v4 = vld [vmem:[#allocation2 + $0x3c] sm:$0xff]   ;;  %v468_v12 = vrot.slane %v466_v28, 7  ;;  %5808 = vmatprep.subr.bf16.mxu0 %v6072_v56  ;;  %v310_v37 = vld [vmem:[#allocation2 + $0x50] sm:$0x1]  ;;  %v6078_v28 = vld [vmem:[%s7719_s1 + $0x8] sm:$0xff]  }
  0x5b   : > { %v5995_v60 = vld [vmem:[#allocation2 + $0x44] ss:$0 sps:$4 sm:$0x11]   ;;  %v1196_v30 = vsel %vm1136_vm10, %v1191_v5, %v1195_v58  ;;  %v2086_v33 = vshrl.u32 %v6010_v13, 16  ;;  %v2088_v34 = vshll.u32 %v6010_v13, 16  ;;  %v1586_v35 = vrot.slane %v6537_v10, 1  ;;  %5809 = vmatpush3.bf16.msra.mxu0 %v6072_v56 }
  0x5c   : > { %v6001_v62 = vld [vmem:[#allocation2 + $0x44] ss:$0 sps:$4 sm:$0x11]   ;;  %v2981_v2 = vshll.u32 %v5995_v60, 16  ;;  %v6555_v36 = vrot.slane %v474_v11, 7  ;;  %v471_v38 = vor.u32 %v469_v29, %v468_v12  ;;  %v472_v39 = vrot.slane %v468_v12, 4  ;;  %5810 = vmatprep.subr.bf16.mxu0 %v6078_v28 }
  0x5d   : > { %2700 = vrot.lane.b32.xlu0 %v5990_v15, %s6260_s12  ;;  %v6003_v3 = vld [vmem:[#allocation2 + $0x44] ss:$0 sps:$4 sm:$0x11]   ;;  %v3380_v7 = vrot.slane %v6001_v62, 1  ;;  %v2090_v40 = vrot.slane %v2088_v34, 1  ;;  %v6073_v42 = vld [vmem:[#allocation2 + $0x18] sm:$0xff]  }
  0x5e   : > { %2702 = vrot.lane.b32.xlu1 %v5991_v50, %s6260_s12  ;;  %v2983_v14 = vrot.slane %v2981_v2, 1  ;;  %v1205_v15 = vshll.u32 %v6003_v3, 16  ;;  %v6540_v21 = vld [vmem:[#allocation2 + $0x44] ss:$0 sps:$4 sm:$0x11]   ;;  %v479_v44 = vor.u32 %v477_v31, %v6555_v36  ;;  %v311_v45 = vsel %vm6371_vm5, 0, %v310_v37 }
  0x5f   : > { %v3381_v18 = vsel %vm1570_vm9, %v3379_v61, %v3380_v7  ;;  %v6011_v17 = vld [vmem:[#allocation2 + $0x44] ss:$0 sps:$4 sm:$0x11]   ;;  %v6014_v46 = vld [vmem:[#allocation2 + $0x3c] sm:$0xfe]   ;;  %946 = vst.msk [vmem:[#allocation3 + $0x10] sm:$0xff] %vm943_vm11, %v6073_v42  ;;  %5811 = vmatpush3.bf16.msra.mxu0 %v6078_v28 }
  0x60   : > { %v2984_v25 = vsel %vm1136_vm10, %v2979_v1, %v2983_v14  ;;  %v1207_v26 = vrot.slane %v1205_v15, 1  ;;  %v2093_v41 = vshll.u32 %v6011_v17, 16  ;;  %312 = vst [vmem:[#allocation2 + $0x50] sm:$0x1] %v311_v45  ;;  %v257_v51 = vld [vmem:[#allocation2 + $0x54] sm:$0x1]  ;;  %v480_v52 = vsel %vm6389_vm7, %v472_v39, %v479_v44 }
  0x61   : > { %3133 = vrot.lane.b32.xlu0 %v2972_v43, %s6265_s17  ;;  %v1587_v43 = vrot.slane %v6540_v21, 1  ;;  %v6015_v50 = vld [vmem:[#allocation2 + $0x44] ss:$0 sps:$4 sm:$0x11]   ;;  %v481_v53 = vrot.slane %v6555_v36, 4  ;;  %v258_v55 = vsel %vm6354_vm3, 0, %v257_v51 }
  0x62   : > { %3135 = vrot.lane.b32.xlu1 %v2984_v25, %s6265_s17  ;;  %v1208_v47 = vsel %vm1136_vm10, %v1203_v32, %v1207_v26  ;;  %v2095_v49 = vrot.slane %v2093_v41, 1  ;;  %v738_v54 = vld [vmem:[#allocation2 + $0x48] sm:$0xf]  ;;  %v358_v57 = vld [vmem:[%s6378_s9 + $0x30] sm:$0xf]  ;;  %v2482_v60 = vrot.slane %v6014_v46, 1 }
  0x63   : > { %v739_v58 = vsel %vm6396_vm8, %v471_v38, %v738_v54  ;;  %741 = vst.msk [vmem:[#allocation2 + $0x4c] sm:$0xf] %vm224_vm0, %v480_v52  ;;  %259 = vst [vmem:[#allocation2 + $0x54] sm:$0x1] %v258_v55  ;;  %v359_v61 = vld [vmem:[%s6378_s9 + $0x34] sm:$0xf]  ;;  %v1588_v8 = vsel %vm1570_vm9, %v1586_v35, %v1587_v43 }
  0x64   : > { %v483_v62 = vshrl.u32 %v358_v57, 16  ;;  %v313_v63 = vld [vmem:[#allocation2 + $0x5c] sm:$0x1]  ;;  %740 = vst [vmem:[#allocation2 + $0x48] sm:$0xf] %v739_v58  ;;  %v2483_v1 = vrot.slane %v6015_v50, 1 }
  0x65   : > { %3422 = vrot.lane.b32.xlu0 %v3378_v48, %s6263_s15  ;;  %v2091_v48 = vor.u32 %v2090_v40, %v2086_v33  ;;  %v491_v2 = vshrl.u32 %v359_v61, 16  ;;  %v494_v3 = vshll.u32 %v359_v61, 16  ;;  %v314_v5 = vsel %vm6371_vm5, 0, %v313_v63  ;;  %v260_v7 = vld [vmem:[#allocation2 + $0x60] sm:$0x1]  ;;  %v6079_v31 = vld [vmem:[#allocation2 + $0x24] sm:$0xff]  }
  0x66   : > { %1337 = vrot.lane.b32.xlu1 %v1196_v30, %s6261_s13  ;;  %v485_v9 = vrot.slane %v483_v62, 7  ;;  %315 = vst [vmem:[#allocation2 + $0x5c] sm:$0x1] %v314_v5  ;;  %v261_v10 = vsel %vm6354_vm3, 0, %v260_v7  ;;  %v6584_v13 = vld [vmem:[%s6378_s9 + $0x38] sm:$0xf]  ;;  %v2484_v56 = vsel %vm1570_vm9, %v2482_v60, %v2483_v1 }
  0x67   : > { %v2096_v59 = vsel %vm1136_vm10, %v2091_v48, %v2095_v49  ;;  %v361_v14 = vld [vmem:[%s6378_s9 + $0x3c] sm:$0xf]  ;;  %v486_v15 = vshll.u32 %v358_v57, 16  ;;  %v493_v16 = vrot.slane %v491_v2, 7  ;;  %262 = vst [vmem:[#allocation2 + $0x60] sm:$0x1] %v261_v10 }
  0x68   : > { %v508_v21 = vshrl.u32 %v361_v14, 16  ;;  %v316_v22 = vld [vmem:[#allocation2 + $0x68] sm:$0x1]  ;;  %v489_v23 = vrot.slane %v485_v9, 4  ;;  %v511_v24 = vshll.u32 %v361_v14, 16  ;;  %947 = vst.msk [vmem:[#allocation3 + $0x18] sm:$0xff] %vm943_vm11, %v6079_v31 }
  0x69   : > { %3424 = vrot.lane.b32.xlu0 %v3381_v18, %s6263_s15  ;;  %v500_v18 = vshrl.u32 %v6584_v13, 16  ;;  %v317_v25 = vsel %vm6371_vm5, 0, %v316_v22  ;;  %v263_v26 = vld [vmem:[#allocation2 + $0x6c] sm:$0x1]  ;;  %v742_v29 = vld [vmem:[#allocation2 + $0x50] sm:$0x1]  ;;  %v496_v30 = vor.u32 %v494_v3, %v493_v16  ;;  %v488_v36 = vor.u32 %v486_v15, %v485_v9 }
  0x6a   : > { %1339 = vrot.lane.b32.xlu1 %v1208_v47, %s6261_s13  ;;  %v6598_v11 = vrot.slane %v508_v21, 7  ;;  %318 = vst [vmem:[#allocation2 + $0x68] sm:$0x1] %v317_v25  ;;  %v743_v32 = vsel %vm6354_vm3, %v481_v53, %v742_v29  ;;  %v264_v12 = vsel %vm6354_vm3, 0, %v263_v26  ;;  %v6606_v17 = vld [vmem:[%s6378_s9 + $0x40] sm:$0xf] }
  0x6b   : > { %744 = vst [vmem:[#allocation2 + $0x50] sm:$0x1] %v743_v32  ;;  %v497_v33 = vsel %vm6389_vm7, %v489_v23, %v496_v30  ;;  %265 = vst [vmem:[#allocation2 + $0x6c] sm:$0x1] %v264_v12  ;;  %v6009_v35 = vld [vmem:[#allocation2 + $0x48] sm:$0xff]   ;;  %v498_v40 = vrot.slane %v493_v16, 4 }
  0x6c   : > { %v513_v34 = vor.u32 %v511_v24, %v6598_v11  ;;  %748 = vst.msk [vmem:[#allocation2 + $0x58] sm:$0xf] %vm224_vm0, %v497_v33  ;;  %v6012_v38 = vld [vmem:[#allocation2 + $0x48] sm:$0xff]   ;;  %v515_v43 = vrot.slane %v6598_v11, 4  ;;  %v745_v46 = vld [vmem:[#allocation2 + $0x54] sm:$0xf] }
  0x6d   : > { %1627 = vrot.lane.b32.xlu0 %v1585_v20, %s6259_s11  ;;  %v6596_v20 = vrot.slane %v500_v18, 7  ;;  %v6016_v39 = vld [vmem:[#allocation2 + $0x48] sm:$0xfe]   ;;  %v2098_v44 = vshrl.u32 %v6012_v38, 16  ;;  %v2100_v45 = vshll.u32 %v6012_v38, 16  ;;  %v517_v48 = vshrl.u32 %v6606_v17, 16 }
  0x6e   : > { %1629 = vrot.lane.b32.xlu1 %v1588_v8, %s6259_s11  ;;  %v6018_v41 = vld [vmem:[#allocation2 + $0x48] sm:$0xff]   ;;  %v746_v49 = vsel %vm6396_vm8, %v488_v36, %v745_v46  ;;  %v749_v50 = vld [vmem:[#allocation2 + $0x5c] sm:$0x1]  ;;  %v2485_v52 = vrot.slane %v6016_v39, 1 }
  0x6f   : > { %v506_v37 = vrot.slane %v6596_v20, 4  ;;  %v6020_v47 = vld [vmem:[#allocation2 + $0x48] sm:$0xff]   ;;  %v2102_v51 = vrot.slane %v2100_v45, 1  ;;  %747 = vst [vmem:[#allocation2 + $0x54] sm:$0xf] %v746_v49  ;;  %v750_v54 = vsel %vm6354_vm3, %v498_v40, %v749_v50  ;;  %v6626_v1 = vrot.slane %v517_v48, 7 }
  0x70   : > { %v2988_v53 = vshll.u32 %v6020_v47, 16  ;;  %v2986_v57 = vshrl.u32 %v6020_v47, 16  ;;  %751 = vst [vmem:[#allocation2 + $0x5c] sm:$0x1] %v750_v54  ;;  %v6026_v62 = vld [vmem:[#allocation2 + $0x48] sm:$0xff]  }
  0x71   : > { %1804 = vrot.lane.b32.xlu0 %v6008_v4, %s6258_s10  ;;  %v503_v4 = vshll.u32 %v6584_v13, 16  ;;  %v514_v42 = vsel %vm6389_vm7, %v506_v37, %v513_v34  ;;  %v2103_v60 = vor.u32 %v2102_v51, %v2098_v44  ;;  %v6024_v8 = vld [vmem:[#allocation2 + $0x48] sm:$0xfe]   ;;  %v1210_v14 = vshrl.u32 %v6026_v62, 16 }
  0x72   : > { %1806 = vrot.lane.b32.xlu1 %v6009_v35, %s6258_s10  ;;  %755 = vst.msk [vmem:[#allocation2 + $0x64] sm:$0xf] %vm224_vm0, %v514_v42  ;;  %v6013_v55 = vld [vmem:[#allocation2 + $0x50] ss:$0 sps:$4 sm:$0x11]   ;;  %v1212_v15 = vshll.u32 %v6026_v62, 16 }
  0x73   : > { %v6017_v58 = vld [vmem:[#allocation2 + $0x50] ss:$0 sps:$4 sm:$0x11]   ;;  %v2105_v61 = vshll.u32 %v6013_v55, 16  ;;  %v3382_v21 = vrot.slane %v6024_v8, 1  ;;  %v505_v55 = vor.u32 %v503_v4, %v6596_v20 }
  0x74   : > { %v6021_v63 = vld [vmem:[#allocation2 + $0x50] ss:$0 sps:$4 sm:$0x11]   ;;  %v2486_v3 = vrot.slane %v6017_v58, 1  ;;  %v1214_v33 = vrot.slane %v1212_v15, 1  ;;  %v520_v15 = vshll.u32 %v6606_v17, 16 }
  0x75   : > { %2237 = vrot.lane.b32.xlu0 %v2096_v59, %s6264_s16  ;;  %v2990_v59 = vrot.slane %v2988_v53, 1  ;;  %v2107_v2 = vrot.slane %v2105_v61, 1  ;;  %v2993_v7 = vshll.u32 %v6021_v63, 16  ;;  %v6025_v9 = vld [vmem:[#allocation2 + $0x50] ss:$0 sps:$4 sm:$0x11]  }
  0x76   : > { %v6022_v18 = vld [vmem:[#allocation2 + $0x54] sm:$0xff]   ;;  %v3383_v22 = vrot.slane %v6025_v9, 1  ;;  %v2487_v23 = vsel %vm1570_vm9, %v2485_v52, %v2486_v3  ;;  %v6027_v31 = vld [vmem:[#allocation2 + $0x50] ss:$0 sps:$4 sm:$0x11]   ;;  %v1215_v48 = vor.u32 %v1214_v33, %v1210_v14 }
  0x77   : > { %v2991_v5 = vor.u32 %v2990_v59, %v2986_v57  ;;  %v2108_v10 = vsel %vm1136_vm10, %v2103_v60, %v2107_v2  ;;  %v2995_v16 = vrot.slane %v2993_v7, 1  ;;  %v6023_v24 = vld [vmem:[#allocation2 + $0x5c] ss:$0 sps:$4 sm:$0x11]   ;;  %v6030_v25 = vld [vmem:[#allocation2 + $0x54] sm:$0xff]   ;;  %v2998_v29 = vshrl.u32 %v6022_v18, 16 }
  0x78   : > { %2239 = vrot.lane.b32.xlu1 %v2108_v10, %s6264_s16  ;;  %v6019_v26 = vld [vmem:[#allocation2 + $0x54] sm:$0xff]   ;;  %v3005_v30 = vshll.u32 %v6023_v24, 16  ;;  %v3384_v12 = vsel %vm1570_vm9, %v3382_v21, %v3383_v22  ;;  %v1217_v35 = vshll.u32 %v6027_v31, 16  ;;  %v6029_v38 = vld [vmem:[#allocation2 + $0x5c] ss:$0 sps:$4 sm:$0x11]  }
  0x79   : > { %2526 = vrot.lane.b32.xlu0 %v2484_v56, %s6262_s14  ;;  %v2996_v28 = vsel %vm1136_vm10, %v2991_v5, %v2995_v16  ;;  %v3000_v56 = vshll.u32 %v6022_v18, 16  ;;  %v6028_v36 = vld [vmem:[#allocation2 + $0x54] sm:$0xfe]   ;;  %v1224_v39 = vshll.u32 %v6030_v25, 16  ;;  %v3386_v44 = vrot.slane %v6029_v38, 1 }
  0x7a   : > { %v3007_v34 = vrot.slane %v3005_v30, 1  ;;  %v3385_v40 = vrot.slane %v6028_v36, 1  ;;  %v1219_v42 = vrot.slane %v1217_v35, 1  ;;  %v6031_v45 = vld [vmem:[#allocation2 + $0x5c] ss:$0 sps:$4 sm:$0x11]  }
  0x7b   : > { %v3002_v32 = vrot.slane %v3000_v56, 1  ;;  %v1226_v46 = vrot.slane %v1224_v39, 1  ;;  %v6032_v49 = vld [vmem:[#allocation2 + $0x48] sm:$0xfe]   ;;  %v1229_v52 = vshll.u32 %v6031_v45, 16  ;;  %v6038_v57 = vld [vmem:[#allocation2 + $0x54] sm:$0xff]  }
  0x7c   : > { %2528 = vrot.lane.b32.xlu1 %v2487_v23, %s6262_s14  ;;  %v3387_v51 = vsel %vm1570_vm9, %v3385_v40, %v3386_v44  ;;  %v6033_v53 = vld [vmem:[#allocation2 + $0x50] ss:$0 sps:$4 sm:$0x11]   ;;  %v1589_v54 = vrot.slane %v6032_v49, 1  ;;  %v6034_v61 = vld [vmem:[#allocation2 + $0x54] sm:$0xfe]   ;;  %v1220_v62 = vsel %vm1136_vm10, %v1215_v48, %v1219_v42 }
  0x7d   : > { %2704 = vrot.lane.b32.xlu0 %v6018_v41, %s6260_s12  ;;  %v3003_v37 = vor.u32 %v3002_v32, %v2998_v29  ;;  %v1222_v41 = vshrl.u32 %v6030_v25, 16  ;;  %v1231_v59 = vrot.slane %v1229_v52, 1  ;;  %v1590_v60 = vrot.slane %v6033_v53, 1  ;;  %v6035_v2 = vld [vmem:[#allocation2 + $0x5c] ss:$0 sps:$4 sm:$0x11]  }
  0x7e   : > { %v6036_v3 = vld [vmem:[#allocation2 + $0x54] sm:$0xff]   ;;  %v2110_v5 = vshrl.u32 %v6038_v57, 16  ;;  %v1592_v20 = vrot.slane %v6034_v61, 1  ;;  %v752_v4 = vld [vmem:[#allocation2 + $0x60] sm:$0xf]  ;;  %v2112_v8 = vshll.u32 %v6038_v57, 16 }
  0x7f   : > { %v3008_v47 = vsel %vm1136_vm10, %v3003_v37, %v3007_v34  ;;  %v1227_v63 = vor.u32 %v1226_v46, %v1222_v41  ;;  %v1591_v13 = vsel %vm1570_vm9, %v1589_v54, %v1590_v60  ;;  %v363_v9 = vld [vmem:[%s6378_s9 + $0x44] sm:$0xf]  ;;  %v1593_v10 = vrot.slane %v6035_v2, 1  ;;  %v6039_v18 = vld [vmem:[#allocation2 + $0x5c] ss:$0 sps:$4 sm:$0x11]  }
  0x80   : > { %2706 = vrot.lane.b32.xlu1 %v6019_v26, %s6260_s12  ;;  %v753_v14 = vsel %vm6396_vm8, %v505_v55, %v752_v4  ;;  %v2114_v21 = vrot.slane %v2112_v8, 1  ;;  %v756_v23 = vld [vmem:[#allocation2 + $0x68] sm:$0x1]  ;;  %v2117_v25 = vshll.u32 %v6039_v18, 16  ;;  %v6042_v17 = vld [vmem:[#allocation2 + $0x54] sm:$0xfe]  }
  0x81   : > { %3137 = vrot.lane.b32.xlu0 %v2996_v28, %s6265_s17  ;;  %754 = vst [vmem:[#allocation2 + $0x60] sm:$0xf] %v753_v14  ;;  %v1232_v22 = vsel %vm1136_vm10, %v1227_v63, %v1231_v59  ;;  %v757_v26 = vsel %vm6354_vm3, %v515_v43, %v756_v23  ;;  %v522_v28 = vor.u32 %v520_v15, %v6626_v1  ;;  %v6043_v29 = vld [vmem:[#allocation2 + $0x5c] ss:$0 sps:$4 sm:$0x11]   ;;  %v525_v56 = vshrl.u32 %v363_v9, 16 }
  0x82   : > { %v2115_v24 = vor.u32 %v2114_v21, %v2110_v5  ;;  %758 = vst [vmem:[#allocation2 + $0x68] sm:$0x1] %v757_v26  ;;  %v1594_v31 = vsel %vm1570_vm9, %v1592_v20, %v1593_v10  ;;  %v2119_v32 = vrot.slane %v2117_v25, 1  ;;  %v2488_v43 = vrot.slane %v6042_v17, 1  ;;  %v759_v36 = vld [vmem:[#allocation2 + $0x6c] sm:$0xf] }
  0x83   : > { %v2489_v33 = vrot.slane %v6043_v29, 1  ;;  %v523_v34 = vrot.slane %v6626_v1, 4  ;;  %v527_v35 = vrot.slane %v525_v56, 7  ;;  %v760_v38 = vsel %vm6396_vm8, %v522_v28, %v759_v36  ;;  %v319_v39 = vld [vmem:[#allocation2 + $0x74] sm:$0x1] }
  0x84   : > { %3139 = vrot.lane.b32.xlu1 %v3008_v47, %s6265_s17  ;;  %v2120_v37 = vsel %vm1136_vm10, %v2115_v24, %v2119_v32  ;;  %761 = vst [vmem:[#allocation2 + $0x6c] sm:$0xf] %v760_v38  ;;  %v320_v45 = vsel %vm6371_vm5, 0, %v319_v39 }
  0x85   : > { %3426 = vrot.lane.b32.xlu0 %v3384_v12, %s6263_s15  ;;  %v528_v12 = vshll.u32 %v363_v9, 16  ;;  %v2490_v42 = vsel %vm1570_vm9, %v2488_v43, %v2489_v33  ;;  %321 = vst [vmem:[#allocation2 + $0x74] sm:$0x1] %v320_v45  ;;  %v532_v59 = vrot.slane %v527_v35, 4 }
  0x87   : > { %v530_v41 = vor.u32 %v528_v12, %v527_v35 }
  0x88   : > { %1341 = vrot.lane.b32.xlu1 %v1220_v62, %s6261_s13  ;;  %v6037_v40 = vld [vmem:[#allocation2 + $0x60] sm:$0xff]  }
  0x89   : > { %3428 = vrot.lane.b32.xlu0 %v3387_v51, %s6263_s15  ;;  %v6040_v1 = vld [vmem:[#allocation2 + $0x60] sm:$0xff]   ;;  %v531_v47 = vsel %vm6389_vm7, %v523_v34, %v530_v41  ;;  %v6041_v49 = vld [vmem:[#allocation2 + $0x68] ss:$0 sps:$4 sm:$0x11]  }
  0x8a   : > { %v6044_v44 = vld [vmem:[#allocation2 + $0x60] sm:$0xfe]   ;;  %762 = vst.msk [vmem:[#allocation2 + $0x70] sm:$0xf] %vm224_vm0, %v531_v47  ;;  %v2124_v52 = vshll.u32 %v6040_v1, 16  ;;  %v2129_v54 = vshll.u32 %v6041_v49, 16 }
  0x8b   : > { %v6046_v46 = vld [vmem:[#allocation2 + $0x60] sm:$0xff]   ;;  %v6045_v53 = vld [vmem:[#allocation2 + $0x68] ss:$0 sps:$4 sm:$0x11]  }
  0x8c   : > { %1343 = vrot.lane.b32.xlu1 %v1232_v22, %s6261_s13  ;;  %v6048_v55 = vld [vmem:[#allocation2 + $0x60] sm:$0xff]   ;;  %v2126_v57 = vrot.slane %v2124_v52, 1  ;;  %v6049_v60 = vld [vmem:[#allocation2 + $0x68] ss:$0 sps:$4 sm:$0x11]   ;;  %v2131_v61 = vrot.slane %v2129_v54, 1 }
  0x8d   : > { %1631 = vrot.lane.b32.xlu0 %v1591_v13, %s6259_s11  ;;  %v3010_v62 = vshrl.u32 %v6048_v55, 16  ;;  %v3012_v63 = vshll.u32 %v6048_v55, 16  ;;  %v6689_v2 = vld [vmem:[#allocation2 + $0x60] sm:$0xff]   ;;  %v2492_v5 = vrot.slane %v6045_v53, 1  ;;  %v3017_v13 = vshll.u32 %v6049_v60, 16 }
  0x8e   : > { %v763_v8 = vld [vmem:[#allocation2 + $0x74] sm:$0x1]  ;;  %v1234_v18 = vshrl.u32 %v6689_v2, 16  ;;  %v1236_v23 = vshll.u32 %v6689_v2, 16  ;;  %v6053_v25 = vld [vmem:[#allocation2 + $0x60] sm:$0xfe]  }
  0x8f   : > { %v3014_v4 = vrot.slane %v3012_v63, 1  ;;  %v3019_v14 = vrot.slane %v3017_v13, 1  ;;  %v764_v15 = vsel %vm6354_vm3, %v532_v59, %v763_v8  ;;  %v6054_v26 = vld [vmem:[#allocation2 + $0x68] ss:$0 sps:$4 sm:$0x11]   ;;  %v3388_v12 = vrot.slane %v6053_v25, 1 }
  0x90   : > { %1633 = vrot.lane.b32.xlu1 %v1594_v31, %s6259_s11  ;;  %765 = vst [vmem:[#allocation2 + $0x74] sm:$0x1] %v764_v15  ;;  %v3389_v43 = vrot.slane %v6054_v26, 1  ;;  %v6056_v34 = vld [vmem:[#allocation2 + $0x68] ss:$0 sps:$4 sm:$0x11]  }
  0x91   : > { %1808 = vrot.lane.b32.xlu0 %v6036_v3, %s6258_s10  ;;  %v3015_v21 = vor.u32 %v3014_v4, %v3010_v62  ;;  %v6050_v22 = vld [vmem:[#allocation2 + $0x6c] sm:$0xff]   ;;  %v1238_v38 = vrot.slane %v1236_v23, 1  ;;  %v1241_v39 = vshll.u32 %v6056_v34, 16  ;;  %v6061_v55 = vld [vmem:[#allocation2 + $0x60] sm:$0xfe]  }
  0x92   : > { %v6701_v28 = vld [vmem:[#allocation2 + $0x6c] sm:$0xff]   ;;  %v3024_v31 = vshll.u32 %v6050_v22, 16  ;;  %v3390_v35 = vsel %vm1570_vm9, %v3388_v12, %v3389_v43  ;;  %v266_v15 = vld [vmem:[#allocation2 + $0x78] sm:$0x1]  ;;  %v322_v34 = vld [vmem:[#allocation2 + $0x80] sm:$0x1] }
  0x93   : > { %v6047_v29 = vld [vmem:[#allocation2 + $0x6c] sm:$0xff]   ;;  %v3020_v56 = vsel %vm1136_vm10, %v3015_v21, %v3019_v14  ;;  %v1248_v41 = vshll.u32 %v6701_v28, 16  ;;  %v267_v21 = vsel %vm6354_vm3, 0, %v266_v15 }
  0x94   : > { %1810 = vrot.lane.b32.xlu1 %v6037_v40, %s6258_s10  ;;  %v3026_v33 = vrot.slane %v3024_v31, 1  ;;  %v6057_v36 = vld [vmem:[#allocation2 + $0x6c] sm:$0xfe]   ;;  %v1246_v40 = vshrl.u32 %v6701_v28, 16  ;;  %268 = vst [vmem:[#allocation2 + $0x78] sm:$0x1] %v267_v21 }
  0x95   : > { %2241 = vrot.lane.b32.xlu0 %v2120_v37, %s6264_s16  ;;  %v1250_v52 = vrot.slane %v1248_v41, 1  ;;  %v6063_v62 = vld [vmem:[#allocation2 + $0x6c] sm:$0xfe]  }
  0x96   : > { %v1598_v4 = vrot.slane %v6063_v62, 1  ;;  %v6066_v8 = vld [vmem:[#allocation2 + $0x6c] sm:$0xff]  }
  0x97   : > { %v6058_v45 = vld [vmem:[#allocation2 + $0x74] ss:$0 sps:$4 sm:$0x11]   ;;  %v365_v23 = vld [vmem:[%s6378_s9 + $0x4c] sm:$0xf] }
  0x98   : > { %v6060_v49 = vld [vmem:[#allocation2 + $0x74] ss:$0 sps:$4 sm:$0x11]   ;;  %v542_v28 = vshrl.u32 %v365_v23, 16 }
  0x99   : > { %2530 = vrot.lane.b32.xlu0 %v2490_v42, %s6262_s14  ;;  %v6051_v42 = vld [vmem:[#allocation2 + $0x74] ss:$0 sps:$4 sm:$0x11]   ;;  %v1253_v54 = vshll.u32 %v6060_v49, 16 }
  0x9a   : > { %v3029_v47 = vshll.u32 %v6051_v42, 16  ;;  %v544_v12 = vrot.slane %v542_v28, 7  ;;  %v6069_v43 = vld [vmem:[#allocation2 + $0x74] ss:$0 sps:$4 sm:$0x11]  }
  0x9b   : > { %v6638_v50 = vpop.permute.xlu0 %1796  ;;  %v1620_v58 = vpop.permute.xlu1 %1619  ;;  %v1255_v60 = vrot.slane %v1253_v54, 1  ;;  %v2141_v41 = vshll.u32 %v6069_v43, 16  ;;  %v6110_v54 = vld [vmem:[#allocation2 + $0x3c] sm:$0xff]  }
  0x9c   : > { %v3031_v53 = vrot.slane %v3029_v47, 1  ;;  %v6075_v47 = vld [vmem:[#allocation2 + $0x74] ss:$0 sps:$4 sm:$0x11]   ;;  %949 = vst.msk [vmem:[#allocation3 + $0x28] sm:$0xff] %vm943_vm11, %v6110_v54 }
  0x9d   : > { %2708 = vrot.lane.b32.xlu0 %v6046_v46, %s6260_s12 }
  0x9f   : > { %v6647_v7 = vpop.permute.xlu0 %2696  ;;  %v6655_v16 = vpop.permute.xlu1 %1798 }
  0xa1   : > { %3141 = vrot.lane.b32.xlu0 %v3020_v56, %s6265_s17 }
  0xa3   : > { %v1330_v30 = vpop.permute.xlu0 %1329  ;;  %v6668_v11 = vpop.permute.xlu1 %2698 }
  0xa4   : > { %1378 = vst.msk [vmem:[#allocation3] sm:$0xff] %vm7725_vm12, %v1330_v30  ;;  %v3022_v30 = vshrl.u32 %v6050_v22, 16  ;;  %v364_v22 = vld [vmem:[%s6378_s9 + $0x48] sm:$0xf] }
  0xa5   : > { %1668 = vst.msk [vmem:[#allocation3] sm:$0xff] %vm1667_vm13, %v1620_v58  ;;  %v2491_v58 = vrot.slane %v6044_v44, 1  ;;  %3430 = vrot.lane.b32.xlu0 %v3390_v35, %s6263_s15  ;;  %v1243_v44 = vrot.slane %v1241_v39, 1  ;;  %v534_v25 = vshrl.u32 %v364_v22, 16  ;;  %v537_v26 = vshll.u32 %v364_v22, 16 }
  0xa6   : > { %1845 = vst.msk [vmem:[#allocation3] sm:$0xff] %vm1844_vm14, %v6638_v50  ;;  %v2122_v50 = vshrl.u32 %v6040_v1, 16  ;;  %v3027_v46 = vor.u32 %v3026_v33, %v3022_v30  ;;  %v545_v30 = vshll.u32 %v365_v23, 16  ;;  %v6105_v33 = vld [vmem:[#allocation2 + $0x30] sm:$0xff]  }
  0xa7   : > { %v6684_v48 = vpop.permute.xlu0 %2518  ;;  %v1622_v51 = vpop.permute.xlu1 %1621  ;;  %v2493_v24 = vsel %vm1570_vm9, %v2491_v58, %v2492_v5  ;;  %v6068_v58 = vld [vmem:[#allocation2 + $0x6c] sm:$0xff]   ;;  %948 = vst.msk [vmem:[#allocation3 + $0x20] sm:$0xff] %vm943_vm11, %v6105_v33 }
  0xa8   : > { %v2127_v3 = vor.u32 %v2126_v57, %v2122_v50  ;;  %v6062_v57 = vld [vmem:[#allocation2 + $0x68] ss:$0 sps:$4 sm:$0x11]   ;;  %v3032_v59 = vsel %vm1136_vm10, %v3027_v46, %v3031_v53  ;;  %v2143_v46 = vrot.slane %v2141_v41, 1  ;;  %v2495_v53 = vrot.slane %v6075_v47, 1 }
  0xa9   : > { %v1596_v2 = vrot.slane %v6062_v57, 1  ;;  %v367_v57 = vld [vmem:[%s6378_s9 + $0x54] sm:$0xf] }
  0xaa   : > { %v2132_v10 = vsel %vm1136_vm10, %v2127_v3, %v2131_v61  ;;  %v1595_v61 = vrot.slane %v6061_v55, 1  ;;  %v6064_v3 = vld [vmem:[#allocation2 + $0x74] ss:$0 sps:$4 sm:$0x11]   ;;  %v559_v62 = vshrl.u32 %v367_v57, 16 }
  0xab   : > { %v6692_v20 = vpop.permute.xlu0 %3418  ;;  %v2521_v9 = vpop.permute.xlu1 %2520  ;;  %2243 = vrot.lane.b32.xlu1 %v2132_v10, %s6264_s16  ;;  %v1599_v14 = vrot.slane %v6064_v3, 1  ;;  %v562_v3 = vshll.u32 %v367_v57, 16 }
  0xac   : > { %v1597_v10 = vsel %vm1570_vm9, %v1595_v61, %v1596_v2  ;;  %v6140_v2 = vld [vmem:[#allocation2 + $0x54] sm:$0xff]  }
  0xad   : > { %v1600_v39 = vsel %vm1570_vm9, %v1598_v4, %v1599_v14  ;;  %951 = vst.msk [vmem:[#allocation3 + $0x38] sm:$0xff] %vm943_vm11, %v6140_v2 }
  0xaf   : > { %v1332_v17 = vpop.permute.xlu0 %1331  ;;  %v2232_v32 = vpop.permute.xlu1 %2231  ;;  %2532 = vrot.lane.b32.xlu1 %v2493_v24, %s6262_s14 }
  0xb0   : > { %1379 = vst.msk [vmem:[#allocation3 + $0x8] sm:$0xff] %vm7725_vm12, %v1332_v17 }
  0xb1   : > { %1669 = vst.msk [vmem:[#allocation3 + $0x8] sm:$0xff] %vm1667_vm13, %v1622_v51  ;;  %v3392_v51 = vrot.slane %v6058_v45, 1  ;;  %v766_v45 = vld [vmem:[#allocation2 + $0x78] sm:$0xf] }
  0xb2   : > { %1846 = vst.msk [vmem:[#allocation3 + $0x8] sm:$0xff] %vm1844_vm14, %v6655_v16  ;;  %v3391_v16 = vrot.slane %v6057_v36, 1 }
  0xb3   : > { %2279 = vst.msk [vmem:[#allocation3 + $0x8] sm:$0xff] %vm2277_vm15, %v2232_v32  ;;  %v2230_v37 = vpop.permute.xlu0 %2229  ;;  %v3132_v1 = vpop.permute.xlu1 %3131  ;;  %2710 = vrot.lane.b32.xlu1 %v6047_v29, %s6260_s12  ;;  %v536_v32 = vrot.slane %v534_v25, 7 }
  0xb4   : > { %2568 = vst.msk [vmem:[#allocation3 + $0x8] sm:$0xff] %vm2566_vm1, %v2521_v9  ;;  %v2134_v9 = vshrl.u32 %v6068_v58, 16 }
  0xb5   : > { %2278 = vst.msk [vmem:[#allocation3] sm:$0xff] %vm2277_vm15, %v2230_v37  ;;  %v539_v36 = vor.u32 %v537_v26, %v536_v32  ;;  %v540_v37 = vrot.slane %v536_v32, 4 }
  0xb6   : > { %2567 = vst.msk [vmem:[#allocation3] sm:$0xff] %vm2566_vm1, %v6684_v48 }
  0xb7   : > { %2746 = vst.msk [vmem:[#allocation3 + $0x8] sm:$0xff] %vm2744_vm2, %v6668_v11  ;;  %2745 = vst.msk [vmem:[#allocation3] sm:$0xff] %vm2744_vm2, %v6647_v7  ;;  %v3130_v50 = vpop.permute.xlu0 %3129  ;;  %v1334_v48 = vpop.permute.xlu1 %1333  ;;  %v1239_v11 = vor.u32 %v1238_v38, %v1234_v18  ;;  %v3393_v7 = vsel %vm1570_vm9, %v3391_v16, %v3392_v51  ;;  %3143 = vrot.lane.b32.xlu1 %v3032_v59, %s6265_s17  ;;  %v2136_v18 = vshll.u32 %v6068_v58, 16  ;;  %v6074_v16 = vld [vmem:[#allocation2 + $0x6c] sm:$0xfe]  }
  0xb8   : > { %3179 = vst.msk [vmem:[#allocation3 + $0x8] sm:$0xff] %vm7726_vm4, %v3132_v1  ;;  %3178 = vst.msk [vmem:[#allocation3] sm:$0xff] %vm7726_vm4, %v3130_v50  ;;  %3432 = vrot.lane.b32.xlu0 %v3393_v7, %s6263_s15  ;;  %v547_v38 = vor.u32 %v545_v30, %v544_v12  ;;  %v323_v1 = vsel %vm6371_vm5, 0, %v322_v34  ;;  %v549_v50 = vrot.slane %v544_v12, 4  ;;  %v767_v51 = vsel %vm6396_vm8, %v539_v36, %v766_v45  ;;  %v366_v7 = vld [vmem:[%s6378_s9 + $0x50] sm:$0xf] }
  0xb9   : > { %3467 = vst.msk [vmem:[#allocation3] sm:$0xff] %vm7724_vm6, %v6692_v20  ;;  %v1244_v13 = vsel %vm1136_vm10, %v1239_v11, %v1243_v44  ;;  %v1251_v20 = vor.u32 %v1250_v52, %v1246_v40  ;;  %v2138_v31 = vrot.slane %v2136_v18, 1  ;;  %324 = vst [vmem:[#allocation2 + $0x80] sm:$0x1] %v323_v1  ;;  %v2494_v52 = vrot.slane %v6074_v16, 1  ;;  %v6135_v58 = vld [vmem:[#allocation2 + $0x48] sm:$0xff]  }
  0xba   : > { %1380 = vst.msk [vmem:[#allocation3 + $0x10] sm:$0xff] %vm7725_vm12, %v1334_v48  ;;  %v548_v42 = vsel %vm6389_vm7, %v540_v37, %v547_v38  ;;  %768 = vst [vmem:[#allocation2 + $0x78] sm:$0xf] %v767_v51  ;;  %v269_v11 = vld [vmem:[#allocation2 + $0x84] sm:$0x1]  ;;  %v554_v61 = vshll.u32 %v366_v7, 16 }
  0xbb   : > { %v3421_v63 = vpop.permute.xlu0 %3420  ;;  %v1336_v5 = vpop.permute.xlu1 %1335  ;;  %1345 = vrot.lane.b32.xlu1 %v1244_v13, %s6261_s13  ;;  %v1256_v56 = vsel %vm1136_vm10, %v1251_v20, %v1255_v60  ;;  %v2139_v40 = vor.u32 %v2138_v31, %v2134_v9  ;;  %769 = vst.msk [vmem:[#allocation2 + $0x7c] sm:$0xf] %vm224_vm0, %v548_v42  ;;  %v270_v55 = vsel %vm6354_vm3, 0, %v269_v11  ;;  %v2496_v59 = vsel %vm1570_vm9, %v2494_v52, %v2495_v53  ;;  %v325_v13 = vld [vmem:[#allocation2 + $0x8c] sm:$0x1] }
  0xbc   : > { %3468 = vst.msk [vmem:[#allocation3 + $0x8] sm:$0xff] %vm7724_vm6, %v3421_v63  ;;  %1635 = vrot.lane.b32.xlu0 %v1597_v10, %s6259_s11  ;;  %vm3526_vm6 = vcmask 293888   ;;  %271 = vst [vmem:[#allocation2 + $0x84] sm:$0x1] %v270_v55  ;;  %v551_v60 = vshrl.u32 %v366_v7, 16  ;;  %v326_v9 = vsel %vm6371_vm5, 0, %v325_v13 }
  0xbd   : > { %1381 = vst.msk [vmem:[#allocation3 + $0x18] sm:$0xff] %vm7725_vm12, %v1336_v5  ;;  %vm3575_vm12 = vcmask 1041408   ;;  %v2144_v48 = vsel %vm1136_vm10, %v2139_v40, %v2143_v46  ;;  %v6082_v5 = vld [vmem:[%s7719_s1 + $0x10] ss:$0 sps:$4 sm:$0x33]  }
  0xbe   : > { %950 = vst.msk [vmem:[#allocation3 + $0x30] sm:$0xff] %vm943_vm11, %v6135_v58  ;;  %v553_v4 = vrot.slane %v551_v60, 7  ;;  %5888 = vmatprep.subr.msk.bf16.mxu0 %vm3575_vm12, %v6082_v5  ;;  %327 = vst [vmem:[#allocation2 + $0x8c] sm:$0x1] %v326_v9  ;;  %v3577_v23 = vsel %vm3575_vm12, %v6082_v5, 0  ;;  %vm7737_vm12 = vcmask 294144  }
  0xbf   : > { %v1624_v24 = vpop.permute.xlu0 %1623  ;;  %v1626_v17 = vpop.permute.xlu1 %1625  ;;  %1347 = vrot.lane.b32.xlu1 %v1256_v56, %s6261_s13  ;;  %5813 = vmatpush3.bf16.msra.mxu0 %v3577_v23 }
  0xc0   : > { %1670 = vst.msk [vmem:[#allocation3 + $0x10] sm:$0xff] %vm1667_vm13, %v1624_v24  ;;  %v3483_v29 = vld [vmem:[#allocation3] sm:$0xff]  ;;  %1671 = vst.msk [vmem:[#allocation3 + $0x18] sm:$0xff] %vm1667_vm13, %v1626_v17  ;;  %1812 = vrot.lane.b32.xlu0 %v6066_v8, %s6258_s10  ;;  %v770_v20 = vld [vmem:[#allocation2 + $0x80] sm:$0x1]  ;;  %v561_v8 = vrot.slane %v559_v62, 7  ;;  %v556_v14 = vor.u32 %v554_v61, %v553_v4 }
  0xc1   : > { %5814 = vmatprep.mubr.msk.bf16.mxu0 %vm3526_vm6, %v3483_v29  ;;  %v771_v10 = vsel %vm6354_vm3, %v549_v50, %v770_v20  ;;  %v557_v15 = vrot.slane %v553_v4, 4 }
  0xc2   : > { %772 = vst [vmem:[#allocation2 + $0x80] sm:$0x1] %v771_v10  ;;  %v564_v18 = vor.u32 %v562_v3, %v561_v8  ;;  %v6067_v22 = vld [vmem:[#allocation2 + $0x78] sm:$0xff]   ;;  %v566_v17 = vrot.slane %v561_v8, 4 }
  0xc3   : > { %v1801_v35 = vpop.permute.xlu0 %1800  ;;  %v1803_v44 = vpop.permute.xlu1 %1802  ;;  %1637 = vrot.lane.b32.xlu1 %v1600_v39, %s6259_s11  ;;  %v6070_v24 = vld [vmem:[#allocation2 + $0x78] sm:$0xff]   ;;  %v3484_v26 = vld [vmem:[#allocation3 + $0x8] sm:$0xff] }
  0xc4   : > { %1847 = vst.msk [vmem:[#allocation3 + $0x10] sm:$0xff] %vm1844_vm14, %v1801_v35  ;;  %1848 = vst.msk [vmem:[#allocation3 + $0x18] sm:$0xff] %vm1844_vm14, %v1803_v44  ;;  %2245 = vrot.lane.b32.xlu0 %v2144_v48, %s6264_s16  ;;  %v565_v25 = vsel %vm6389_vm7, %v557_v15, %v564_v18  ;;  %v6080_v28 = vld [vmem:[#allocation2 + $0x78] sm:$0xff]   ;;  %v773_v29 = vld [vmem:[#allocation2 + $0x84] sm:$0xf]  ;;  %v2148_v56 = vshll.u32 %v6070_v24, 16  ;;  %5815 = vmatmul.mubr.msk.bf16.vlgmr.msra.gmra.mrb[0].mxu0 %vm3526_vm6, %v3484_v26 }
  0xc5   : > { %776 = vst.msk [vmem:[#allocation2 + $0x88] sm:$0xf] %vm224_vm0, %v565_v25  ;;  %v6076_v30 = vld [vmem:[#allocation2 + $0x78] sm:$0xfe]   ;;  %v774_v31 = vsel %vm6396_vm8, %v556_v14, %v773_v29  ;;  %v2146_v12 = vshrl.u32 %v6070_v24, 16 }
  0xc6   : > { %v6083_v32 = vld [vmem:[#allocation2 + $0x78] sm:$0xff]   ;;  %775 = vst [vmem:[#allocation2 + $0x84] sm:$0xf] %v774_v31  ;;  %v2150_v33 = vrot.slane %v2148_v56, 1  ;;  %v777_v36 = vld [vmem:[#allocation2 + $0x8c] sm:$0x1] }
  0xc7   : > { %v2234_v49 = vpop.permute.xlu0 %2233  ;;  %1814 = vrot.lane.b32.xlu1 %v6067_v22, %s6258_s10  ;;  %v3034_v34 = vshrl.u32 %v6083_v32, 16  ;;  %v3036_v35 = vshll.u32 %v6083_v32, 16  ;;  %v6087_v37 = vld [vmem:[#allocation2 + $0x78] sm:$0xfe]   ;;  %v778_v39 = vsel %vm6354_vm3, %v566_v17, %v777_v36  ;;  %v2497_v47 = vrot.slane %v6076_v30, 1 }
  0xc8   : > { %2280 = vst.msk [vmem:[#allocation3 + $0x10] sm:$0xff] %vm2277_vm15, %v2234_v49  ;;  %2534 = vrot.lane.b32.xlu0 %v2496_v59, %s6262_s14  ;;  %v2236_v43 = vpop.permute.xlu1 %2235  ;;  %v6795_v40 = vld [vmem:[#allocation2 + $0x78] sm:$0xff]   ;;  %779 = vst [vmem:[#allocation2 + $0x8c] sm:$0x1] %v778_v39  ;;  %v2151_v16 = vor.u32 %v2150_v33, %v2146_v12  ;;  %v3394_v53 = vrot.slane %v6087_v37, 1 }
  0xc9   : > { %2281 = vst.msk [vmem:[#allocation3 + $0x18] sm:$0xff] %vm2277_vm15, %v2236_v43  ;;  %v6071_v38 = vld [vmem:[#allocation2 + $0x80] ss:$0 sps:$4 sm:$0x11]   ;;  %v3038_v42 = vrot.slane %v3036_v35, 1  ;;  %v1260_v11 = vshll.u32 %v6795_v40, 16 }
  0xca   : > { %v6077_v1 = vld [vmem:[#allocation2 + $0x80] ss:$0 sps:$4 sm:$0x11]   ;;  %v2153_v44 = vshll.u32 %v6071_v38, 16  ;;  %v1258_v60 = vshrl.u32 %v6795_v40, 16 }
  0xcb   : > { %v2523_v63 = vpop.permute.xlu0 %2522  ;;  %v6084_v45 = vld [vmem:[#allocation2 + $0x80] ss:$0 sps:$4 sm:$0x11]   ;;  %v2498_v49 = vrot.slane %v6077_v1, 1  ;;  %v3039_v51 = vor.u32 %v3038_v42, %v3034_v34  ;;  %v1262_v61 = vrot.slane %v1260_v11, 1 }
  0xcc   : > { %2569 = vst.msk [vmem:[#allocation3 + $0x10] sm:$0xff] %vm2566_vm1, %v2523_v63  ;;  %2712 = vrot.lane.b32.xlu0 %v6080_v28, %s6260_s12  ;;  %v2525_v46 = vpop.permute.xlu1 %2524  ;;  %v2155_v50 = vrot.slane %v2153_v44, 1  ;;  %v3041_v52 = vshll.u32 %v6084_v45, 16  ;;  %v6088_v57 = vld [vmem:[#allocation2 + $0x80] ss:$0 sps:$4 sm:$0x11]  }
  0xcd   : > { %2570 = vst.msk [vmem:[#allocation3 + $0x18] sm:$0xff] %vm2566_vm1, %v2525_v46  ;;  %v6085_v7 = vld [vmem:[#allocation2 + $0x84] sm:$0xff]   ;;  %v2499_v62 = vsel %vm1570_vm9, %v2497_v47, %v2498_v49  ;;  %v3395_v20 = vrot.slane %v6088_v57, 1  ;;  %v6090_v4 = vld [vmem:[#allocation2 + $0x80] ss:$0 sps:$4 sm:$0x11]   ;;  %v1263_v43 = vor.u32 %v1262_v61, %v1258_v60 }
  0xce   : > { %v2156_v54 = vsel %vm1136_vm10, %v2151_v16, %v2155_v50  ;;  %v3043_v55 = vrot.slane %v3041_v52, 1  ;;  %v6093_v58 = vld [vmem:[#allocation2 + $0x84] sm:$0xff]   ;;  %v3046_v3 = vshrl.u32 %v6085_v7, 16  ;;  %v3048_v13 = vshll.u32 %v6085_v7, 16  ;;  %v6095_v35 = vld [vmem:[#allocation2 + $0x78] sm:$0xfe]  }
  0xcf   : > { %v2701_v21 = vpop.permute.xlu0 %2700  ;;  %2247 = vrot.lane.b32.xlu1 %v2156_v54, %s6264_s16  ;;  %v6086_v2 = vld [vmem:[#allocation2 + $0x8c] ss:$0 sps:$4 sm:$0x11]   ;;  %v6081_v5 = vld [vmem:[#allocation2 + $0x84] sm:$0xff]   ;;  %v1270_v8 = vshrl.u32 %v6093_v58, 16  ;;  %v1272_v10 = vshll.u32 %v6093_v58, 16  ;;  %v3396_v15 = vsel %vm1570_vm9, %v3394_v53, %v3395_v20 }
  0xd0   : > { %2747 = vst.msk [vmem:[#allocation3 + $0x10] sm:$0xff] %vm2744_vm2, %v2701_v21  ;;  %v2703_v59 = vpop.permute.xlu1 %2702  ;;  %v3044_v63 = vsel %vm1136_vm10, %v3039_v51, %v3043_v55  ;;  %v3053_v9 = vshll.u32 %v6086_v2, 16  ;;  %v3050_v14 = vrot.slane %v3048_v13, 1  ;;  %v1265_v18 = vshll.u32 %v6090_v4, 16  ;;  %v6091_v21 = vld [vmem:[#allocation2 + $0x84] sm:$0xfe]  }
  0xd1   : > { %2748 = vst.msk [vmem:[#allocation3 + $0x18] sm:$0xff] %vm2744_vm2, %v2703_v59  ;;  %3145 = vrot.lane.b32.xlu0 %v3044_v63, %s6265_s17  ;;  %v6092_v24 = vld [vmem:[#allocation2 + $0x8c] ss:$0 sps:$4 sm:$0x11]   ;;  %v3397_v17 = vrot.slane %v6091_v21, 1  ;;  %v1274_v30 = vrot.slane %v1272_v10, 1 }
  0xd2   : > { %v3055_v23 = vrot.slane %v3053_v9, 1  ;;  %v3051_v26 = vor.u32 %v3050_v14, %v3046_v3  ;;  %v1267_v28 = vrot.slane %v1265_v18, 1  ;;  %v3398_v29 = vrot.slane %v6092_v24, 1  ;;  %v6094_v56 = vld [vmem:[#allocation2 + $0x8c] ss:$0 sps:$4 sm:$0x11]  }
  0xd3   : > { %v3134_v41 = vpop.permute.xlu0 %3133  ;;  %2536 = vrot.lane.b32.xlu1 %v2499_v62, %s6262_s14  ;;  %v6812_v31 = vld [vmem:[#allocation2 + $0x84] sm:$0xff]   ;;  %v1277_v34 = vshll.u32 %v6094_v56, 16  ;;  %v6096_v36 = vld [vmem:[#allocation2 + $0x80] ss:$0 sps:$4 sm:$0x11]   ;;  %v1601_v39 = vrot.slane %v6095_v35, 1  ;;  %v1275_v47 = vor.u32 %v1274_v30, %v1270_v8 }
  0xd4   : > { %3180 = vst.msk [vmem:[#allocation3 + $0x10] sm:$0xff] %vm7726_vm4, %v3134_v41  ;;  %v3136_v25 = vpop.permute.xlu1 %3135  ;;  %v3056_v12 = vsel %vm1136_vm10, %v3051_v26, %v3055_v23  ;;  %v3399_v33 = vsel %vm1570_vm9, %v3397_v17, %v3398_v29  ;;  %v1602_v40 = vrot.slane %v6096_v36, 1  ;;  %v6097_v41 = vld [vmem:[#allocation2 + $0x84] sm:$0xfe]   ;;  %v2158_v1 = vshrl.u32 %v6812_v31, 16 }
  0xd5   : > { %3434 = vrot.lane.b32.xlu0 %v3396_v15, %s6263_s15  ;;  %3181 = vst.msk [vmem:[#allocation3 + $0x18] sm:$0xff] %vm7726_vm4, %v3136_v25  ;;  %vm7738_vm4 = vcmask 64544   ;;  %v1279_v38 = vrot.slane %v1277_v34, 1  ;;  %v6098_v42 = vld [vmem:[#allocation2 + $0x8c] ss:$0 sps:$4 sm:$0x11]   ;;  %v1268_v46 = vsel %vm1136_vm10, %v1263_v43, %v1267_v28 }
  0xd6   : > { %v6099_v16 = vld [vmem:[#allocation2 + $0x84] sm:$0xff]   ;;  %v2160_v44 = vshll.u32 %v6812_v31, 16  ;;  %v1603_v49 = vsel %vm1570_vm9, %v1601_v39, %v1602_v40  ;;  %v1604_v50 = vrot.slane %v6097_v41, 1  ;;  %v272_v51 = vld [vmem:[#allocation2 + $0x90] sm:$0x1]  ;;  %v1605_v53 = vrot.slane %v6098_v42, 1 }
  0xd7   : > { %v3423_v48 = vpop.permute.xlu0 %3422  ;;  %2714 = vrot.lane.b32.xlu1 %v6081_v5, %s6260_s12  ;;  %v273_v11 = vsel %vm6354_vm3, 0, %v272_v51  ;;  %v368_v54 = vld [vmem:[%s6378_s9 + $0x58] sm:$0xf]  ;;  %v369_v55 = vld [vmem:[%s6378_s9 + $0x5c] sm:$0xf]  ;;  %v1280_v63 = vsel %vm1136_vm10, %v1275_v47, %v1279_v38  ;;  %v6165_v20 = vld [vmem:[#allocation2 + $0x60] sm:$0xff]  }
  0xd8   : > { %3469 = vst.msk [vmem:[#allocation3 + $0x10] sm:$0xff] %vm7737_vm12, %v3423_v48  ;;  %v1338_v37 = vpop.permute.xlu1 %1337  ;;  %274 = vst [vmem:[#allocation2 + $0x90] sm:$0x1] %v273_v11  ;;  %v568_v7 = vshrl.u32 %v368_v54, 16  ;;  %v571_v57 = vshll.u32 %v368_v54, 16  ;;  %v576_v58 = vshrl.u32 %v369_v55, 16  ;;  %v1606_v24 = vsel %vm1570_vm9, %v1604_v50, %v1605_v53 }
  0xd9   : > { %3436 = vrot.lane.b32.xlu0 %v3399_v33, %s6263_s15  ;;  %1382 = vst.msk [vmem:[#allocation3 + $0x20] sm:$0xff] %vm7738_vm4, %v1338_v37  ;;  %v579_v59 = vshll.u32 %v369_v55, 16  ;;  %v2162_v60 = vrot.slane %v2160_v44, 1  ;;  %v6102_v5 = vld [vmem:[#allocation2 + $0x8c] ss:$0 sps:$4 sm:$0x11]  }
  0xda   : > { %v570_v2 = vrot.slane %v568_v7, 7  ;;  %v6836_v3 = vrot.slane %v576_v58, 7  ;;  %v328_v4 = vld [vmem:[#allocation2 + $0x98] sm:$0x1]  ;;  %952 = vst.msk [vmem:[#allocation3 + $0x40] sm:$0xff] %vm943_vm11, %v6165_v20  ;;  %v2165_v18 = vshll.u32 %v6102_v5, 16 }
  0xdb   : > { %v3425_v22 = vpop.permute.xlu0 %3424  ;;  %3147 = vrot.lane.b32.xlu1 %v3056_v12, %s6265_s17  ;;  %v2163_v15 = vor.u32 %v2162_v60, %v2158_v1  ;;  %v329_v21 = vsel %vm6371_vm5, 0, %v328_v4  ;;  %v6107_v26 = vld [vmem:[#allocation2 + $0x8c] ss:$0 sps:$4 sm:$0x11]   ;;  %v275_v12 = vld [vmem:[#allocation2 + $0x9c] sm:$0x1] }
  0xdc   : > { %3470 = vst.msk [vmem:[#allocation3 + $0x18] sm:$0xff] %vm7737_vm12, %v3425_v22  ;;  %v1340_v52 = vpop.permute.xlu1 %1339  ;;  %v573_v8 = vor.u32 %v571_v57, %v570_v2  ;;  %v574_v9 = vrot.slane %v570_v2, 4  ;;  %v581_v10 = vor.u32 %v579_v59, %v6836_v3  ;;  %v583_v14 = vrot.slane %v6836_v3, 4  ;;  %v6106_v22 = vld [vmem:[#allocation2 + $0x84] sm:$0xfe]   ;;  %v6170_v28 = vld [vmem:[#allocation2 + $0x6c] sm:$0xff]  }
  0xdd   : > { %1639 = vrot.lane.b32.xlu0 %v1603_v49, %s6259_s11  ;;  %1383 = vst.msk [vmem:[#allocation3 + $0x28] sm:$0xff] %vm7738_vm4, %v1340_v52  ;;  %330 = vst [vmem:[#allocation2 + $0x98] sm:$0x1] %v329_v21  ;;  %v2167_v29 = vrot.slane %v2165_v18, 1  ;;  %v2500_v56 = vrot.slane %v6106_v22, 1  ;;  %v6181_v33 = vld [vmem:[#allocation2 + $0x78] sm:$0xff]  }
  0xde   : > { %v582_v25 = vsel %vm6389_vm7, %v574_v9, %v581_v10  ;;  %v370_v43 = vld [vmem:[%s6378_s9 + $0x60] sm:$0xf]  ;;  %953 = vst.msk [vmem:[#allocation3 + $0x48] sm:$0xff] %vm943_vm11, %v6170_v28  ;;  %v276_v35 = vsel %vm6354_vm3, 0, %v275_v12  ;;  %v371_v36 = vld [vmem:[%s6378_s9 + $0x64] sm:$0xf] }
  0xdf   : > { %v1628_v32 = vpop.permute.xlu0 %1627  ;;  %v3485_v48 = vld [vmem:[#allocation3 + $0x10] sm:$0xff]  ;;  %1349 = vrot.lane.b32.xlu1 %v1268_v46, %s6261_s13  ;;  %v780_v17 = vld [vmem:[#allocation2 + $0x90] sm:$0xf]  ;;  %783 = vst.msk [vmem:[#allocation2 + $0x94] sm:$0xf] %vm224_vm0, %v582_v25  ;;  %v2168_v34 = vsel %vm1136_vm10, %v2163_v15, %v2167_v29  ;;  %v585_v37 = vshrl.u32 %v370_v43, 16 }
  0xe0   : > { %1672 = vst.msk [vmem:[#allocation3 + $0x20] sm:$0xff] %vm1667_vm13, %v1628_v32  ;;  %5818 = vmatprep.mubr.msk.bf16.mxu0 %vm3526_vm6, %v3485_v48  ;;  %v1630_v13 = vpop.permute.xlu1 %1629  ;;  %v781_v31 = vsel %vm6396_vm8, %v573_v8, %v780_v17  ;;  %v2501_v32 = vrot.slane %v6107_v26, 1  ;;  %v588_v38 = vshll.u32 %v370_v43, 16  ;;  %v6182_v40 = vld [vmem:[#allocation2 + $0x84] sm:$0xff]   ;;  %277 = vst [vmem:[#allocation2 + $0x9c] sm:$0x1] %v276_v35 }
  0xe1   : > { %1816 = vrot.lane.b32.xlu0 %v6099_v16, %s6258_s10  ;;  %1673 = vst.msk [vmem:[#allocation3 + $0x28] sm:$0xff] %vm1667_vm13, %v1630_v13  ;;  %782 = vst [vmem:[#allocation2 + $0x90] sm:$0xf] %v781_v31  ;;  %v593_v41 = vshrl.u32 %v371_v36, 16  ;;  %v596_v1 = vshll.u32 %v371_v36, 16  ;;  %vm7739_vm12 = vcmask 261344  }
  0xe2   : > { %v331_v42 = vld [vmem:[#allocation2 + $0xa4] sm:$0x1]  ;;  %v278_v16 = vld [vmem:[#allocation2 + $0xa8] sm:$0x1]  ;;  %954 = vst.msk [vmem:[#allocation3 + $0x50] sm:$0xff] %vm943_vm11, %v6181_v33  ;;  %v2502_v44 = vsel %vm1570_vm9, %v2500_v56, %v2501_v32  ;;  %955 = vst.msk [vmem:[#allocation3 + $0x58] sm:$0xff] %vm943_vm11, %v6182_v40 }
  0xe3   : > { %v1805_v45 = vpop.permute.xlu0 %1804  ;;  %v3486_v61 = vld [vmem:[#allocation3 + $0x18] sm:$0xff]  ;;  %1351 = vrot.lane.b32.xlu1 %v1280_v63, %s6261_s13  ;;  %v332_v46 = vsel %vm6371_vm5, 0, %v331_v42  ;;  %v279_v47 = vsel %vm6354_vm3, 0, %v278_v16  ;;  %v6872_v49 = vld [vmem:[%s6378_s9 + $0x68] sm:$0xf]  ;;  %v595_v50 = vrot.slane %v593_v41, 7 }
  0xe4   : > { %1849 = vst.msk [vmem:[#allocation3 + $0x20] sm:$0xff] %vm1844_vm14, %v1805_v45  ;;  %5819 = vmatmul.mubr.msk.bf16.gmra.mrb[4].mxu0 %vm3526_vm6, %v3486_v61  ;;  %v1807_v30 = vpop.permute.xlu1 %1806  ;;  %v587_v45 = vrot.slane %v585_v37, 7  ;;  %333 = vst [vmem:[#allocation2 + $0xa4] sm:$0x1] %v332_v46  ;;  %v373_v51 = vld [vmem:[%s6378_s9 + $0x6c] sm:$0xf] }
  0xe5   : > { %1850 = vst.msk [vmem:[#allocation3 + $0x28] sm:$0xff] %vm1844_vm14, %v1807_v30  ;;  %2249 = vrot.lane.b32.xlu0 %v2168_v34, %s6264_s16  ;;  %280 = vst [vmem:[#allocation2 + $0xa8] sm:$0x1] %v279_v47  ;;  %v602_v52 = vshrl.u32 %v6872_v49, 16  ;;  %v784_v48 = vld [vmem:[#allocation2 + $0x98] sm:$0x1]  ;;  %v598_v7 = vor.u32 %v596_v1, %v595_v50 }
  0xe6   : > { %v591_v53 = vrot.slane %v587_v45, 4  ;;  %v610_v11 = vshrl.u32 %v373_v51, 16  ;;  %v613_v54 = vshll.u32 %v373_v51, 16  ;;  %v785_v55 = vsel %vm6354_vm3, %v583_v14, %v784_v48 }
  0xe7   : > { %v2238_v62 = vpop.permute.xlu0 %2237  ;;  %1641 = vrot.lane.b32.xlu1 %v1606_v24, %s6259_s11  ;;  %786 = vst [vmem:[#allocation2 + $0x98] sm:$0x1] %v785_v55  ;;  %v590_v57 = vor.u32 %v588_v38, %v587_v45  ;;  %v6880_v58 = vrot.slane %v602_v52, 7  ;;  %v600_v63 = vrot.slane %v595_v50, 4  ;;  %v787_v13 = vld [vmem:[#allocation2 + $0x9c] sm:$0xf] }
  0xe8   : > { %2282 = vst.msk [vmem:[#allocation3 + $0x20] sm:$0xff] %vm2277_vm15, %v2238_v62  ;;  %v6100_v59 = vld [vmem:[#allocation2 + $0x90] sm:$0xff]   ;;  %v599_v60 = vsel %vm6389_vm7, %v591_v53, %v598_v7  ;;  %v6884_v61 = vrot.slane %v610_v11, 7  ;;  %vm7740_vm4 = vcmask 294144   ;;  %v605_v52 = vshll.u32 %v6872_v49, 16 }
  0xe9   : > { %2538 = vrot.lane.b32.xlu0 %v2502_v44, %s6262_s14  ;;  %v6103_v62 = vld [vmem:[#allocation2 + $0x90] sm:$0xff]   ;;  %790 = vst.msk [vmem:[#allocation2 + $0xa0] sm:$0xf] %vm224_vm0, %v599_v60  ;;  %v608_v2 = vrot.slane %v6880_v58, 4  ;;  %v788_v10 = vsel %vm6396_vm8, %v590_v57, %v787_v13 }
  0xea   : > { %v6108_v3 = vld [vmem:[#allocation2 + $0x90] sm:$0xfe]   ;;  %v2240_v20 = vpop.permute.xlu1 %2239  ;;  %v615_v4 = vor.u32 %v613_v54, %v6884_v61  ;;  %v2170_v8 = vshrl.u32 %v6103_v62, 16  ;;  %v2172_v9 = vshll.u32 %v6103_v62, 16  ;;  %789 = vst [vmem:[#allocation2 + $0x9c] sm:$0xf] %v788_v10 }
  0xeb   : > { %v2527_v23 = vpop.permute.xlu0 %2526  ;;  %1818 = vrot.lane.b32.xlu1 %v6100_v59, %s6258_s10  ;;  %v6111_v5 = vld [vmem:[#allocation2 + $0x90] sm:$0xff]   ;;  %2283 = vst.msk [vmem:[#allocation3 + $0x28] sm:$0xff] %vm2277_vm15, %v2240_v20  ;;  %v791_v15 = vld [vmem:[#allocation2 + $0xa4] sm:$0x1]  ;;  %v2503_v32 = vrot.slane %v6108_v3, 1 }
  0xec   : > { %2571 = vst.msk [vmem:[#allocation3 + $0x20] sm:$0xff] %vm2566_vm1, %v2527_v23  ;;  %v6113_v14 = vld [vmem:[#allocation2 + $0x90] sm:$0xff]   ;;  %v616_v18 = vsel %vm6389_vm7, %v608_v2, %v615_v4  ;;  %v2174_v21 = vrot.slane %v2172_v9, 1  ;;  %v792_v23 = vsel %vm6354_vm3, %v600_v63, %v791_v15 }
  0xed   : > { %2716 = vrot.lane.b32.xlu0 %v6111_v5, %s6260_s12  ;;  %v3060_v22 = vshll.u32 %v6113_v14, 16  ;;  %v6117_v24 = vld [vmem:[#allocation2 + $0x90] sm:$0xfe]   ;;  %797 = vst.msk [vmem:[#allocation2 + $0xac] sm:$0xf] %vm224_vm0, %v616_v18  ;;  %v3058_v28 = vshrl.u32 %v6113_v14, 16 }
  0xee   : > { %v6104_v26 = vld [vmem:[#allocation2 + $0x98] ss:$0 sps:$4 sm:$0x11]   ;;  %793 = vst [vmem:[#allocation2 + $0xa4] sm:$0x1] %v792_v23  ;;  %v2529_v17 = vpop.permute.xlu1 %2528  ;;  %v2175_v30 = vor.u32 %v2174_v21, %v2170_v8  ;;  %v6119_v33 = vld [vmem:[#allocation2 + $0x90] sm:$0xff]  }
  0xef   : > { %v2705_v39 = vpop.permute.xlu0 %2704  ;;  %v6109_v29 = vld [vmem:[#allocation2 + $0x98] ss:$0 sps:$4 sm:$0x11]   ;;  %v3062_v56 = vrot.slane %v3060_v22, 1  ;;  %2572 = vst.msk [vmem:[#allocation3 + $0x28] sm:$0xff] %vm2566_vm1, %v2529_v17  ;;  %v2177_v31 = vshll.u32 %v6104_v26, 16 }
  0xf0   : > { %2749 = vst.msk [vmem:[#allocation3 + $0x20] sm:$0xff] %vm2744_vm2, %v2705_v39  ;;  %v2504_v12 = vrot.slane %v6109_v29, 1  ;;  %v6114_v43 = vld [vmem:[#allocation2 + $0x98] ss:$0 sps:$4 sm:$0x11]   ;;  %v3400_v40 = vrot.slane %v6117_v24, 1 }
  0xf1   : > { %v2179_v35 = vrot.slane %v2177_v31, 1  ;;  %v6118_v36 = vld [vmem:[#allocation2 + $0x98] ss:$0 sps:$4 sm:$0x11]   ;;  %v3063_v38 = vor.u32 %v3062_v56, %v3058_v28  ;;  %v3065_v39 = vshll.u32 %v6114_v43, 16  ;;  %v6115_v1 = vld [vmem:[#allocation2 + $0x9c] sm:$0xff]  }
  0xf2   : > { %v2707_v37 = vpop.permute.xlu1 %2706  ;;  %v3401_v42 = vrot.slane %v6118_v36, 1  ;;  %v2505_v46 = vsel %vm1570_vm9, %v2503_v32, %v2504_v12  ;;  %v3070_v47 = vshrl.u32 %v6115_v1, 16  ;;  %v3072_v50 = vshll.u32 %v6115_v1, 16  ;;  %v6123_v51 = vld [vmem:[#allocation2 + $0x9c] sm:$0xff]   ;;  %v6125_v28 = vld [vmem:[#allocation2 + $0x90] sm:$0xfe]  }
  0xf3   : > { %v3138_v25 = vpop.permute.xlu0 %3137  ;;  %2750 = vst.msk [vmem:[#allocation3 + $0x28] sm:$0xff] %vm2744_vm2, %v2707_v37  ;;  %v2180_v41 = vsel %vm1136_vm10, %v2175_v30, %v2179_v35  ;;  %v3067_v16 = vrot.slane %v3065_v39, 1  ;;  %v6112_v53 = vld [vmem:[#allocation2 + $0x9c] sm:$0xff]   ;;  %v6120_v55 = vld [vmem:[#allocation2 + $0x98] ss:$0 sps:$4 sm:$0x11]   ;;  %v607_v32 = vor.u32 %v605_v52, %v6880_v58 }
  0xf4   : > { %3182 = vst.msk [vmem:[#allocation3 + $0x20] sm:$0xff] %vm7739_vm12, %v3138_v25  ;;  %2251 = vrot.lane.b32.xlu1 %v2180_v41, %s6264_s16  ;;  %v1282_v7 = vshrl.u32 %v6119_v33, 16  ;;  %v1284_v57 = vshll.u32 %v6119_v33, 16  ;;  %v3074_v59 = vrot.slane %v3072_v50, 1  ;;  %v3402_v60 = vsel %vm1570_vm9, %v3400_v40, %v3401_v42  ;;  %v6121_v20 = vld [vmem:[#allocation2 + $0x9c] sm:$0xfe]  }
  0xf5   : > { %v6116_v44 = vld [vmem:[#allocation2 + $0xa4] ss:$0 sps:$4 sm:$0x11]   ;;  %v3068_v11 = vsel %vm1136_vm10, %v3063_v38, %v3067_v16  ;;  %v1294_v62 = vshrl.u32 %v6123_v51, 16  ;;  %v1289_v2 = vshll.u32 %v6120_v55, 16  ;;  %v1296_v3 = vshll.u32 %v6123_v51, 16 }
  0xf6   : > { %v3140_v48 = vpop.permute.xlu1 %3139  ;;  %v3077_v54 = vshll.u32 %v6116_v44, 16  ;;  %3149 = vrot.lane.b32.xlu0 %v3068_v11, %s6265_s17  ;;  %v1286_v63 = vrot.slane %v1284_v57, 1  ;;  %v3075_v13 = vor.u32 %v3074_v59, %v3070_v47  ;;  %v6122_v4 = vld [vmem:[#allocation2 + $0xa4] ss:$0 sps:$4 sm:$0x11]   ;;  %v6131_v8 = vld [vmem:[#allocation2 + $0x9c] sm:$0xff]  }
  0xf7   : > { %v3427_v34 = vpop.permute.xlu0 %3426  ;;  %3183 = vst.msk [vmem:[#allocation3 + $0x28] sm:$0xff] %vm7739_vm12, %v3140_v48  ;;  %v1291_v10 = vrot.slane %v1289_v2, 1  ;;  %v1298_v14 = vrot.slane %v1296_v3, 1  ;;  %vm7741_vm12 = vcmask 64544   ;;  %v3403_v15 = vrot.slane %v6121_v20, 1  ;;  %v6129_v40 = vld [vmem:[#allocation2 + $0x9c] sm:$0xff]  }
  0xf8   : > { %3471 = vst.msk [vmem:[#allocation3 + $0x20] sm:$0xff] %vm7740_vm4, %v3427_v34  ;;  %2540 = vrot.lane.b32.xlu1 %v2505_v46, %s6262_s14  ;;  %v3079_v49 = vrot.slane %v3077_v54, 1  ;;  %v3404_v18 = vrot.slane %v6122_v4, 1  ;;  %v6124_v21 = vld [vmem:[#allocation2 + $0xa4] ss:$0 sps:$4 sm:$0x11]   ;;  %v1287_v25 = vor.u32 %v1286_v63, %v1282_v7 }
  0xf9   : > { %v2182_v22 = vshrl.u32 %v6131_v8, 16  ;;  %v1301_v29 = vshll.u32 %v6124_v21, 16  ;;  %v6126_v56 = vld [vmem:[#allocation2 + $0x98] ss:$0 sps:$4 sm:$0x11]   ;;  %v1607_v30 = vrot.slane %v6125_v28, 1  ;;  %v1299_v38 = vor.u32 %v1298_v14, %v1294_v62 }
  0xfa   : > { %v1342_v9 = vpop.permute.xlu1 %1341  ;;  %3438 = vrot.lane.b32.xlu0 %v3402_v60, %s6263_s15  ;;  %v3080_v24 = vsel %vm1136_vm10, %v3075_v13, %v3079_v49  ;;  %v3405_v26 = vsel %vm1570_vm9, %v3403_v15, %v3404_v18  ;;  %v6127_v31 = vld [vmem:[#allocation2 + $0x9c] sm:$0xfe]   ;;  %v2184_v12 = vshll.u32 %v6131_v8, 16  ;;  %v1608_v33 = vrot.slane %v6126_v56, 1  ;;  %v794_v16 = vld [vmem:[#allocation2 + $0xa8] sm:$0xf] }
  0xfb   : > { %v3429_v45 = vpop.permute.xlu0 %3428  ;;  %1384 = vst.msk [vmem:[#allocation3 + $0x30] sm:$0xff] %vm7741_vm12, %v1342_v9  ;;  %v1303_v43 = vrot.slane %v1301_v29, 1  ;;  %v6128_v34 = vld [vmem:[#allocation2 + $0xa4] ss:$0 sps:$4 sm:$0x11]   ;;  %v1292_v37 = vsel %vm1136_vm10, %v1287_v25, %v1291_v10  ;;  %v1610_v39 = vrot.slane %v6127_v31, 1 }
  0xfc   : > { %3472 = vst.msk [vmem:[#allocation3 + $0x28] sm:$0xff] %vm7740_vm4, %v3429_v45  ;;  %2718 = vrot.lane.b32.xlu1 %v6112_v53, %s6260_s12  ;;  %vm7742_vm4 = vmmov %vm7741_vm12  ;;  %v2186_v41 = vrot.slane %v2184_v12, 1  ;;  %v1609_v58 = vsel %vm1570_vm9, %v1607_v30, %v1608_v33  ;;  %v1611_v42 = vrot.slane %v6128_v34, 1  ;;  %v795_v45 = vsel %vm6396_vm8, %v607_v32, %v794_v16  ;;  %v6132_v46 = vld [vmem:[#allocation2 + $0xa4] ss:$0 sps:$4 sm:$0x11]  }
  0xfd   : > { %796 = vst [vmem:[#allocation2 + $0xa8] sm:$0xf] %v795_v45  ;;  %v334_v47 = vld [vmem:[#allocation2 + $0xb0] sm:$0x1]  ;;  %v1304_v52 = vsel %vm1136_vm10, %v1299_v38, %v1303_v43  ;;  %v6184_v11 = vld [vmem:[#allocation2 + $0x9c] sm:$0xff]   ;;  %v2189_v55 = vshll.u32 %v6132_v46, 16 }
  0xfe   : > { %v1344_v17 = vpop.permute.xlu1 %1343  ;;  %3440 = vrot.lane.b32.xlu0 %v3405_v26, %s6263_s15  ;;  %v6183_v51 = vld [vmem:[#allocation2 + $0x90] sm:$0xff]   ;;  %v335_v48 = vsel %vm6371_vm5, 0, %v334_v47  ;;  %v2187_v54 = vor.u32 %v2186_v41, %v2182_v22  ;;  %v6136_v7 = vld [vmem:[#allocation2 + $0x9c] sm:$0xfe]   ;;  %957 = vst.msk [vmem:[#allocation3 + $0x68] sm:$0xff] %vm943_vm11, %v6184_v11  ;;  %v1612_v62 = vsel %vm1570_vm9, %v1610_v39, %v1611_v42  ;;  %v617_v2 = vrot.slane %v6884_v61, 4 }
  0xff   : > { %v1632_v5 = vpop.permute.xlu0 %1631  ;;  %1385 = vst.msk [vmem:[#allocation3 + $0x38] sm:$0xff] %vm7742_vm4, %v1344_v17  ;;  %v3487_v35 = vld [vmem:[#allocation3 + $0x20] sm:$0xff]  ;;  %336 = vst [vmem:[#allocation2 + $0xb0] sm:$0x1] %v335_v48  ;;  %v2191_v57 = vrot.slane %v2189_v55, 1  ;;  %v2506_v49 = vrot.slane %v6136_v7, 1 }
 0x100   : > { %1674 = vst.msk [vmem:[#allocation3 + $0x30] sm:$0xff] %vm1667_vm13, %v1632_v5  ;;  %3151 = vrot.lane.b32.xlu1 %v3080_v24, %s6265_s17  ;;  %5822 = vmatprep.mubr.msk.bf16.mxu0 %vm3526_vm6, %v3487_v35  ;;  %v6137_v59 = vld [vmem:[#allocation2 + $0xa4] ss:$0 sps:$4 sm:$0x11]   ;;  %v281_v5 = vld [vmem:[#allocation2 + $0xb4] sm:$0x1] }
 0x101   : > { %956 = vst.msk [vmem:[#allocation3 + $0x60] sm:$0xff] %vm943_vm11, %v6183_v51  ;;  %v2192_v63 = vsel %vm1136_vm10, %v2187_v54, %v2191_v57  ;;  %v2507_v3 = vrot.slane %v6137_v59, 1  ;;  %v282_v13 = vsel %vm6354_vm3, 0, %v281_v5  ;;  %v374_v18 = vld [vmem:[%s6378_s9 + $0x70] sm:$0xf]  ;;  %vm7743_vm12 = vcmask 261344  }
 0x102   : > { %v1634_v1 = vpop.permute.xlu1 %1633  ;;  %1643 = vrot.lane.b32.xlu0 %v1609_v58, %s6259_s11  ;;  %283 = vst [vmem:[#allocation2 + $0xb4] sm:$0x1] %v282_v13  ;;  %v619_v24 = vshrl.u32 %v374_v18, 16  ;;  %v622_v25 = vshll.u32 %v374_v18, 16  ;;  %v337_v31 = vld [vmem:[#allocation2 + $0xbc] sm:$0x1] }
 0x103   : > { %v1809_v23 = vpop.permute.xlu0 %1808  ;;  %1675 = vst.msk [vmem:[#allocation3 + $0x38] sm:$0xff] %vm1667_vm13, %v1634_v1  ;;  %v3488_v44 = vld [vmem:[#allocation3 + $0x28] sm:$0xff]  ;;  %v2508_v9 = vsel %vm1570_vm9, %v2506_v49, %v2507_v3  ;;  %v338_v12 = vsel %vm6371_vm5, 0, %v337_v31  ;;  %vm7744_vm4 = vcmask 294144  }
 0x104   : > { %1851 = vst.msk [vmem:[#allocation3 + $0x30] sm:$0xff] %vm1844_vm14, %v1809_v23  ;;  %5823 = vmatmul.mubr.msk.bf16.gmra.mrb[8].mxu0 %vm3526_vm6, %v3488_v44  ;;  %1353 = vrot.lane.b32.xlu1 %v1292_v37, %s6261_s13  ;;  %v6130_v4 = vld [vmem:[#allocation2 + $0xa8] sm:$0xff]   ;;  %v375_v23 = vld [vmem:[%s6378_s9 + $0x74] sm:$0xf]  ;;  %v621_v56 = vrot.slane %v619_v24, 7 }
 0x105   : > { %v6133_v8 = vld [vmem:[#allocation2 + $0xa8] sm:$0xff]   ;;  %v627_v17 = vshrl.u32 %v375_v23, 16  ;;  %v630_v29 = vshll.u32 %v375_v23, 16  ;;  %339 = vst [vmem:[#allocation2 + $0xbc] sm:$0x1] %v338_v12 }
 0x106   : > { %v1811_v53 = vpop.permute.xlu1 %1810  ;;  %1820 = vrot.lane.b32.xlu0 %v6129_v40, %s6258_s10  ;;  %v798_v61 = vld [vmem:[#allocation2 + $0xb0] sm:$0x1]  ;;  %v6955_v14 = vld [vmem:[#allocation2 + $0xa8] sm:$0xfe]   ;;  %v2196_v28 = vshll.u32 %v6133_v8, 16  ;;  %v624_v33 = vor.u32 %v622_v25, %v621_v56  ;;  %v625_v34 = vrot.slane %v621_v56, 4 }
 0x107   : > { %v2242_v36 = vpop.permute.xlu0 %2241  ;;  %1852 = vst.msk [vmem:[#allocation3 + $0x38] sm:$0xff] %vm1844_vm14, %v1811_v53  ;;  %v799_v10 = vsel %vm6354_vm3, %v617_v2, %v798_v61  ;;  %v6141_v15 = vld [vmem:[#allocation2 + $0xa8] sm:$0xff]   ;;  %v629_v32 = vrot.slane %v627_v17, 7  ;;  %v2194_v37 = vshrl.u32 %v6133_v8, 16  ;;  %v2509_v39 = vrot.slane %v6955_v14, 1 }
 0x108   : > { %2284 = vst.msk [vmem:[#allocation3 + $0x30] sm:$0xff] %vm2277_vm15, %v2242_v36  ;;  %1355 = vrot.lane.b32.xlu1 %v1304_v52, %s6261_s13  ;;  %v6143_v21 = vld [vmem:[#allocation2 + $0xa8] sm:$0xff]   ;;  %800 = vst [vmem:[#allocation2 + $0xb0] sm:$0x1] %v799_v10  ;;  %v2198_v38 = vrot.slane %v2196_v28, 1 }
 0x109   : > { %v3084_v30 = vshll.u32 %v6143_v21, 16  ;;  %v801_v35 = vld [vmem:[#allocation2 + $0xb4] sm:$0xf]  ;;  %v632_v40 = vor.u32 %v630_v29, %v629_v32  ;;  %v6968_v41 = vld [vmem:[#allocation2 + $0xa8] sm:$0xff]   ;;  %v3082_v58 = vshrl.u32 %v6143_v21, 16  ;;  %v634_v46 = vrot.slane %v629_v32, 4 }
 0x10a   : > { %2253 = vrot.lane.b32.xlu0 %v2192_v63, %s6264_s16  ;;  %v802_v1 = vsel %vm6396_vm8, %v624_v33, %v801_v35  ;;  %v6147_v16 = vld [vmem:[#allocation2 + $0xa8] sm:$0xfe]   ;;  %v2199_v51 = vor.u32 %v2198_v38, %v2194_v37 }
 0x10b   : > { %v2531_v50 = vpop.permute.xlu0 %2530  ;;  %v3086_v42 = vrot.slane %v3084_v30, 1  ;;  %v633_v45 = vsel %vm6389_vm7, %v625_v34, %v632_v40  ;;  %803 = vst [vmem:[#allocation2 + $0xb4] sm:$0xf] %v802_v1  ;;  %v6977_v53 = vld [vmem:[#allocation2 + $0xa8] sm:$0xfe]   ;;  %v3406_v63 = vrot.slane %v6147_v16, 1 }
 0x10c   : > { %2573 = vst.msk [vmem:[#allocation3 + $0x30] sm:$0xff] %vm2566_vm1, %v2531_v50  ;;  %1645 = vrot.lane.b32.xlu1 %v1612_v62, %s6259_s11  ;;  %v1308_v50 = vshll.u32 %v6968_v41, 16  ;;  %v805_v62 = vld [vmem:[#allocation2 + $0xbc] sm:$0x1]  ;;  %v1613_v21 = vrot.slane %v6977_v53, 1 }
 0x10d   : > { %804 = vst.msk [vmem:[#allocation2 + $0xb8] sm:$0xf] %vm224_vm0, %v633_v45  ;;  %v3087_v59 = vor.u32 %v3086_v42, %v3082_v58  ;;  %v806_v49 = vsel %vm6354_vm3, %v634_v46, %v805_v62 }
 0x10e   : > { %2542 = vrot.lane.b32.xlu0 %v2508_v9, %s6262_s14  ;;  %807 = vst [vmem:[#allocation2 + $0xbc] sm:$0x1] %v806_v49  ;;  %v1306_v9 = vshrl.u32 %v6968_v41, 16  ;;  %v1310_v18 = vrot.slane %v1308_v50, 1 }
 0x10f   : > { %v2709_v60 = vpop.permute.xlu0 %2708  ;;  %v6134_v44 = vld [vmem:[#allocation2 + $0xb0] ss:$0 sps:$4 sm:$0x11]  }
 0x110   : > { %2751 = vst.msk [vmem:[#allocation3 + $0x30] sm:$0xff] %vm2744_vm2, %v2709_v60  ;;  %1822 = vrot.lane.b32.xlu1 %v6130_v4, %s6258_s10  ;;  %v6139_v47 = vld [vmem:[#allocation2 + $0xb0] ss:$0 sps:$4 sm:$0x11]   ;;  %v2201_v52 = vshll.u32 %v6134_v44, 16  ;;  %v1311_v44 = vor.u32 %v1310_v18, %v1306_v9 }
 0x111   : > { %v6144_v48 = vld [vmem:[#allocation2 + $0xb0] ss:$0 sps:$4 sm:$0x11]   ;;  %v2510_v54 = vrot.slane %v6139_v47, 1 }
 0x112   : > { %2720 = vrot.lane.b32.xlu0 %v6141_v15, %s6260_s12  ;;  %v6148_v55 = vld [vmem:[#allocation2 + $0xb0] ss:$0 sps:$4 sm:$0x11]   ;;  %v2203_v57 = vrot.slane %v2201_v52, 1  ;;  %v3089_v60 = vshll.u32 %v6144_v48, 16 }
 0x113   : > { %v3142_v22 = vpop.permute.xlu0 %3141  ;;  %v3407_v2 = vrot.slane %v6148_v55, 1  ;;  %v6150_v3 = vld [vmem:[#allocation2 + $0xb0] ss:$0 sps:$4 sm:$0x11]   ;;  %v2511_v14 = vsel %vm1570_vm9, %v2509_v39, %v2510_v54  ;;  %v284_v55 = vld [vmem:[#allocation2 + $0xc0] sm:$0x1] }
 0x114   : > { %3184 = vst.msk [vmem:[#allocation3 + $0x30] sm:$0xff] %vm7743_vm12, %v3142_v22  ;;  %v2204_v13 = vsel %vm1136_vm10, %v2199_v51, %v2203_v57  ;;  %v6984_v4 = vld [vmem:[#allocation2 + $0xb0] ss:$0 sps:$4 sm:$0x11]   ;;  %v1313_v61 = vshll.u32 %v6150_v3, 16  ;;  %v6142_v22 = vld [vmem:[#allocation2 + $0xb4] sm:$0xff]  }
 0x115   : > { %2255 = vrot.lane.b32.xlu1 %v2204_v13, %s6264_s16  ;;  %v6145_v23 = vld [vmem:[#allocation2 + $0xb4] sm:$0xff]   ;;  %v1614_v24 = vrot.slane %v6984_v4, 1  ;;  %v3408_v25 = vsel %vm1570_vm9, %v3406_v63, %v3407_v2  ;;  %v6146_v33 = vld [vmem:[#allocation2 + $0xbc] ss:$0 sps:$4 sm:$0x11]   ;;  %v6185_v63 = vld [vmem:[#allocation2 + $0xa8] sm:$0xff]  }
 0x116   : > { %v3094_v17 = vshrl.u32 %v6145_v23, 16  ;;  %v3096_v29 = vshll.u32 %v6145_v23, 16  ;;  %v1315_v56 = vrot.slane %v1313_v61, 1  ;;  %v6153_v30 = vld [vmem:[#allocation2 + $0xb4] sm:$0xff]   ;;  %v3101_v38 = vshll.u32 %v6146_v33, 16  ;;  %958 = vst.msk [vmem:[#allocation3 + $0x70] sm:$0xff] %vm943_vm11, %v6185_v63 }
 0x117   : > { %v3431_v43 = vpop.permute.xlu0 %3430  ;;  %v6999_v12 = vld [vmem:[#allocation2 + $0xb4] sm:$0xfe]   ;;  %v6152_v35 = vld [vmem:[#allocation2 + $0xbc] ss:$0 sps:$4 sm:$0x11]   ;;  %v1320_v1 = vshll.u32 %v6153_v30, 16  ;;  %v1615_v57 = vsel %vm1570_vm9, %v1613_v21, %v1614_v24 }
 0x118   : > { %3473 = vst.msk [vmem:[#allocation3 + $0x30] sm:$0xff] %vm7744_vm4, %v3431_v43  ;;  %v7001_v43 = vld [vmem:[#allocation2 + $0xb4] sm:$0xff]   ;;  %v3098_v34 = vrot.slane %v3096_v29, 1  ;;  %v6154_v39 = vld [vmem:[#allocation2 + $0xbc] ss:$0 sps:$4 sm:$0x11]   ;;  %v1316_v2 = vsel %vm1136_vm10, %v1311_v44, %v1315_v56 }
 0x119   : > { %2544 = vrot.lane.b32.xlu1 %v2511_v14, %s6262_s14  ;;  %v3410_v41 = vrot.slane %v6152_v35, 1  ;;  %v1616_v58 = vrot.slane %v6999_v12, 1  ;;  %v2206_v42 = vshrl.u32 %v7001_v43, 16  ;;  %v3103_v16 = vrot.slane %v3101_v38, 1  ;;  %v340_v14 = vld [vmem:[#allocation2 + $0xc8] sm:$0x1] }
 0x11a   : > { %v3099_v37 = vor.u32 %v3098_v34, %v3094_v17  ;;  %v1325_v45 = vshll.u32 %v6154_v39, 16  ;;  %v7009_v46 = vld [vmem:[#allocation2 + $0xbc] ss:$0 sps:$4 sm:$0x11]   ;;  %v2208_v47 = vshll.u32 %v7001_v43, 16  ;;  %v1322_v52 = vrot.slane %v1320_v1, 1 }
 0x11b   : > { %v1617_v54 = vrot.slane %v7009_v46, 1  ;;  %v6162_v9 = vld [vmem:[#allocation2 + $0xbc] ss:$0 sps:$4 sm:$0x11]   ;;  %v341_v21 = vsel %vm6371_vm5, 0, %v340_v14 }
 0x11c   : > { %v3104_v53 = vsel %vm1136_vm10, %v3099_v37, %v3103_v16  ;;  %v2213_v18 = vshll.u32 %v6162_v9, 16  ;;  %342 = vst [vmem:[#allocation2 + $0xc8] sm:$0x1] %v341_v21  ;;  %v6166_v29 = vld [vmem:[#allocation2 + $0xb4] sm:$0xfe]  }
 0x11d   : > { %v2244_v20 = vpop.permute.xlu1 %2243  ;;  %2722 = vrot.lane.b32.xlu1 %v6142_v22, %s6260_s12  ;;  %v6186_v22 = vld [vmem:[#allocation2 + $0xb4] sm:$0xff]   ;;  %v2512_v33 = vrot.slane %v6166_v29, 1  ;;  %v1618_v34 = vsel %vm1570_vm9, %v1616_v58, %v1617_v54  ;;  %v287_v37 = vld [vmem:[#allocation2 + $0xcc] sm:$0x1] }
 0x11e   : > { %2285 = vst.msk [vmem:[#allocation3 + $0x38] sm:$0xff] %vm2277_vm15, %v2244_v20  ;;  %v3091_v20 = vrot.slane %v3089_v60, 1  ;;  %v377_v60 = vld [vmem:[%s6378_s9 + $0x7c] sm:$0xf]  ;;  %v2215_v17 = vrot.slane %v2213_v18, 1  ;;  %v288_v38 = vsel %vm6354_vm3, 0, %v287_v37 }
 0x11f   : > { %v3489_v5 = vld [vmem:[#allocation3 + $0x30] sm:$0xff]  ;;  %v644_v13 = vshrl.u32 %v377_v60, 16  ;;  %959 = vst.msk [vmem:[#allocation3 + $0x78] sm:$0xff] %vm943_vm11, %v6186_v22  ;;  %v343_v39 = vld [vmem:[#allocation2 + $0xd4] sm:$0x1]  ;;  %vm3775_vm11 = vcmask 58368  }
 0x120   : > { %5826 = vmatprep.mubr.msk.bf16.mxu0 %vm3526_vm6, %v3489_v5  ;;  %v3092_v15 = vsel %vm1136_vm10, %v3087_v59, %v3091_v20  ;;  %v285_v59 = vsel %vm6354_vm3, 0, %v284_v55  ;;  %v6159_v5 = vld [vmem:[#allocation2 + $0xb4] sm:$0xff]   ;;  %v647_v20 = vshll.u32 %v377_v60, 16  ;;  %289 = vst [vmem:[#allocation2 + $0xcc] sm:$0x1] %v288_v38 }
 0x121   : > { %v2533_v26 = vpop.permute.xlu1 %2532  ;;  %3153 = vrot.lane.b32.xlu0 %v3092_v15, %s6265_s17  ;;  %3155 = vrot.lane.b32.xlu1 %v3104_v53, %s6265_s17  ;;  %286 = vst [vmem:[#allocation2 + $0xc0] sm:$0x1] %v285_v59  ;;  %v646_v61 = vrot.slane %v644_v13, 7 }
 0x122   : > { %2574 = vst.msk [vmem:[#allocation3 + $0x38] sm:$0xff] %vm2566_vm1, %v2533_v26  ;;  %v6151_v26 = vld [vmem:[#allocation2 + $0xb4] sm:$0xfe]  }
 0x123   : > { %v3409_v32 = vrot.slane %v6151_v26, 1  ;;  %v651_v35 = vrot.slane %v646_v61, 4  ;;  %v812_v12 = vld [vmem:[#allocation2 + $0xc8] sm:$0x1] }
 0x125   : > { %v2711_v36 = vpop.permute.xlu1 %2710  ;;  %3442 = vrot.lane.b32.xlu0 %v3408_v25, %s6263_s15  ;;  %v3411_v51 = vsel %vm1570_vm9, %v3409_v32, %v3410_v41  ;;  %1357 = vrot.lane.b32.xlu1 %v1316_v2, %s6261_s13  ;;  %v649_v25 = vor.u32 %v647_v20, %v646_v61  ;;  %v813_v41 = vsel %vm6354_vm3, %v651_v35, %v812_v12  ;;  %vm7748_vm3 = vcmask 294144  }
 0x126   : > { %2752 = vst.msk [vmem:[#allocation3 + $0x38] sm:$0xff] %vm2744_vm2, %v2711_v36  ;;  %v1318_v36 = vshrl.u32 %v6153_v30, 16  ;;  %v6167_v30 = vld [vmem:[#allocation2 + $0xbc] ss:$0 sps:$4 sm:$0x11]  }
 0x127   : > { %814 = vst [vmem:[#allocation2 + $0xc8] sm:$0x1] %v813_v41  ;;  %v6175_v60 = vld [vmem:[#allocation2 + $0xcc] sm:$0xff]  }
 0x128   : > { %v1323_v3 = vor.u32 %v1322_v52, %v1318_v36  ;;  %v808_v32 = vld [vmem:[#allocation2 + $0xc0] sm:$0xf]  ;;  %v2513_v36 = vrot.slane %v6167_v30, 1 }
 0x129   : > { %v3144_v7 = vpop.permute.xlu1 %3143  ;;  %3444 = vrot.lane.b32.xlu0 %v3411_v51, %s6263_s15 }
 0x12a   : > { %v3433_v11 = vpop.permute.xlu0 %3432  ;;  %3185 = vst.msk [vmem:[#allocation3 + $0x38] sm:$0xff] %vm7743_vm12, %v3144_v7  ;;  %vm7745_vm12 = vcmask 64544   ;;  %v376_v7 = vld [vmem:[%s6378_s9 + $0x78] sm:$0xf]  ;;  %v2514_v27 = vsel %vm1570_vm9, %v2512_v33, %v2513_v36 }
 0x12b   : > { %3474 = vst.msk [vmem:[#allocation3 + $0x38] sm:$0xff] %vm7744_vm4, %v3433_v11  ;;  %vm7746_vm4 = vmmov %vm7745_vm12  ;;  %v1327_v11 = vrot.slane %v1325_v45, 1  ;;  %v636_v62 = vshrl.u32 %v376_v7, 16  ;;  %v639_v49 = vshll.u32 %v376_v7, 16 }
 0x12d   : > { %v1346_v10 = vpop.permute.xlu1 %1345  ;;  %1647 = vrot.lane.b32.xlu0 %v1615_v57, %s6259_s11  ;;  %v1328_v23 = vsel %vm1136_vm10, %v1323_v3, %v1327_v11 }
 0x12e   : > { %v1636_v8 = vpop.permute.xlu0 %1635  ;;  %1386 = vst.msk [vmem:[#allocation3 + $0x40] sm:$0xff] %vm7745_vm12, %v1346_v10  ;;  %v2210_v10 = vrot.slane %v2208_v47, 1  ;;  %1359 = vrot.lane.b32.xlu1 %v1328_v23, %s6261_s13  ;;  %v6174_v54 = vld [vmem:[#allocation2 + $0xc8] ss:$0 sps:$4 sm:$0x11]   ;;  %v6266_v23 = vmov 0.0   ;;  %vm7751_vm12 = vmmov %vm7746_vm4 }
 0x12f   : > { %1676 = vst.msk [vmem:[#allocation3 + $0x40] sm:$0xff] %vm1667_vm13, %v1636_v8  ;;  %v638_v8 = vrot.slane %v636_v62, 7  ;;  %v3113_v63 = vshll.u32 %v6174_v54, 16  ;;  %s6268_s13 = smov 56  }
 0x130   : > { %v2211_v26 = vor.u32 %v2210_v10, %v2206_v42  ;;  %v6178_v10 = vld [vmem:[#allocation2 + $0xc8] ss:$0 sps:$4 sm:$0x11]   ;;  %3776 = vst.msk [vmem:[#allocation4 + $0x10] sm:$0x3] %vm3775_vm11, %v6266_v23 }
 0x131   : > { %v1348_v31 = vpop.permute.xlu1 %1347  ;;  %v642_v15 = vrot.slane %v638_v8, 4  ;;  %v641_v24 = vor.u32 %v639_v49, %v638_v8  ;;  %1824 = vrot.lane.b32.xlu0 %v6159_v5, %s6258_s10  ;;  %v3120_v5 = vshll.u32 %v6175_v60, 16  ;;  %3780 = vst.msk [vmem:[#allocation4 + $0x1a8] sm:$0x3] %vm3775_vm11, %v6266_v23 }
 0x132   : > { %v1813_v28 = vpop.permute.xlu0 %1812  ;;  %1387 = vst.msk [vmem:[#allocation3 + $0x48] sm:$0xff] %vm7746_vm4, %v1348_v31  ;;  %v3490_v48 = vld [vmem:[#allocation3 + $0x38] sm:$0xff]  ;;  %v2216_v43 = vsel %vm1136_vm10, %v2211_v26, %v2215_v17  ;;  %1649 = vrot.lane.b32.xlu1 %v1618_v34, %s6259_s11  ;;  %vm3781_vm4 = vcmask 57344  }
 0x133   : > { %1853 = vst.msk [vmem:[#allocation3 + $0x40] sm:$0xff] %vm1844_vm14, %v1813_v28  ;;  %5827 = vmatmul.mubr.msk.bf16.gmra.mrb[12].mxu0 %vm3526_vm6, %v3490_v48  ;;  %v650_v56 = vsel %vm6389_vm7, %v642_v15, %v649_v25  ;;  %v809_v19 = vsel %vm6396_vm8, %v641_v24, %v808_v32  ;;  %v6169_v48 = vld [vmem:[#allocation2 + $0xc8] ss:$0 sps:$4 sm:$0x11]   ;;  %v3118_v15 = vshrl.u32 %v6175_v60, 16  ;;  %v3122_v18 = vrot.slane %v3120_v5, 1  ;;  %vm7750_vm8 = vmmov %vm7748_vm3 }
 0x134   : > { %811 = vst.msk [vmem:[#allocation2 + $0xc4] sm:$0xf] %vm224_vm0, %v650_v56  ;;  %810 = vst [vmem:[#allocation2 + $0xc0] sm:$0xf] %v809_v19  ;;  %vm7747_vm0 = vcmask 261344   ;;  %v2516_v7 = vrot.slane %v6169_v48, 1 }
 0x135   : > { %v1638_v40 = vpop.permute.xlu1 %1637  ;;  %2257 = vrot.lane.b32.xlu0 %v2216_v43, %s6264_s16  ;;  %vm7749_vm7 = vmmov %vm7747_vm0  ;;  %v3413_v25 = vrot.slane %v6178_v10, 1  ;;  %v6172_v17 = vld [vmem:[#allocation2 + $0xcc] sm:$0xff]   ;;  %3800 = vst.msk [vmem:[#allocation4 + $0x11] sm:$0x1] %vm3781_vm4, %v6266_v23 }
 0x136   : > { %1677 = vst.msk [vmem:[#allocation3 + $0x48] sm:$0xff] %vm1667_vm13, %v1638_v40  ;;  %v2246_v50 = vpop.permute.xlu0 %2245  ;;  %v344_v40 = vsel %vm6371_vm5, 0, %v343_v39  ;;  %vm3772_vm5 = vcmask 64512   ;;  %v6179_v43 = vld [vmem:[#allocation2 + $0xcc] sm:$0xfe]  }
 0x137   : > { %2286 = vst.msk [vmem:[#allocation3 + $0x40] sm:$0xff] %vm2277_vm15, %v2246_v50  ;;  %345 = vst [vmem:[#allocation2 + $0xd4] sm:$0x1] %v344_v40  ;;  %v6164_v50 = vld [vmem:[#allocation2 + $0xc8] ss:$0 sps:$4 sm:$0x11]  }
 0x138   : > { %v2225_v11 = vshll.u32 %v6164_v50, 16  ;;  %3773 = vst.msk [vmem:[#allocation4] sm:$0xff] %vm3772_vm5, %v6266_v23  ;;  %3774 = vst.msk [vmem:[#allocation4 + $0x8] sm:$0xff] %vm3772_vm5, %v6266_v23  ;;  %v3415_v35 = vrot.slane %v6179_v43, 1 }
 0x139   : > { %v1815_v28 = vpop.permute.xlu1 %1814  ;;  %2546 = vrot.lane.b32.xlu0 %v2514_v27, %s6262_s14  ;;  %3778 = vst.msk [vmem:[#allocation4 + $0x198] sm:$0xff] %vm3772_vm5, %v6266_v23  ;;  %3779 = vst.msk [vmem:[#allocation4 + $0x1a0] sm:$0xff] %vm3772_vm5, %v6266_v23 }
 0x13a   : > { %v2535_v4 = vpop.permute.xlu0 %2534  ;;  %1854 = vst.msk [vmem:[#allocation3 + $0x48] sm:$0xff] %vm1844_vm14, %v1815_v28  ;;  %v2227_v49 = vrot.slane %v2225_v11, 1 }
 0x13b   : > { %2575 = vst.msk [vmem:[#allocation3 + $0x40] sm:$0xff] %vm2566_vm1, %v2535_v4  ;;  %v6160_v58 = vld [vmem:[#allocation2 + $0xc0] sm:$0xff]   ;;  %v3115_v4 = vrot.slane %v3113_v63, 1 }
 0x13c   : > { %v6163_v42 = vld [vmem:[#allocation2 + $0xc0] sm:$0xff]   ;;  %1826 = vrot.lane.b32.xlu1 %v6160_v58, %s6258_s10  ;;  %3782 = vst.msk [vmem:[#allocation4] sm:$0x1] %vm3781_vm4, %v6266_v23  ;;  %3783 = vst.msk [vmem:[#allocation4 + $0x18] sm:$0x1] %vm3781_vm4, %v6266_v23  ;;  %s6267_s10 = smov 48  }
 0x13d   : > { %v6168_v16 = vld [vmem:[#allocation2 + $0xc0] sm:$0xfe]   ;;  %v2218_v45 = vshrl.u32 %v6163_v42, 16  ;;  %v2220_v46 = vshll.u32 %v6163_v42, 16  ;;  %3784 = vst.msk [vmem:[#allocation4 + $0x30] sm:$0x1] %vm3781_vm4, %v6266_v23 }
 0x13e   : > { %v2713_v31 = vpop.permute.xlu0 %2712  ;;  %v6171_v44 = vld [vmem:[#allocation2 + $0xc0] sm:$0xff]   ;;  %v2515_v47 = vrot.slane %v6168_v16, 1  ;;  %v6176_v3 = vld [vmem:[#allocation2 + $0xd4] ss:$0 sps:$4 sm:$0x11]  }
 0x13f   : > { %2753 = vst.msk [vmem:[#allocation3 + $0x40] sm:$0xff] %vm2744_vm2, %v2713_v31  ;;  %2724 = vrot.lane.b32.xlu0 %v6171_v44, %s6260_s12  ;;  %v6173_v51 = vld [vmem:[#allocation2 + $0xc0] sm:$0xff]   ;;  %v2222_v52 = vrot.slane %v2220_v46, 1  ;;  %v3125_v21 = vshll.u32 %v6176_v3, 16  ;;  %v3123_v31 = vor.u32 %v3122_v18, %v3118_v15 }
 0x140   : > { %v3106_v57 = vshrl.u32 %v6173_v51, 16  ;;  %v3108_v59 = vshll.u32 %v6173_v51, 16  ;;  %v6177_v8 = vld [vmem:[#allocation2 + $0xc0] sm:$0xfe]   ;;  %v2517_v9 = vsel %vm1570_vm9, %v2515_v47, %v2516_v7  ;;  %3785 = vst.msk [vmem:[#allocation4 + $0x48] sm:$0x1] %vm3781_vm4, %v6266_v23 }
 0x141   : > { %v2248_v1 = vpop.permute.xlu1 %2247  ;;  %v2223_v55 = vor.u32 %v2222_v52, %v2218_v45  ;;  %v3412_v22 = vrot.slane %v6177_v8, 1  ;;  %v7074_v29 = vld [vmem:[#allocation2 + $0xd4] ss:$0 sps:$4 sm:$0x11]   ;;  %v3127_v32 = vrot.slane %v3125_v21, 1  ;;  %v3915_v38 = vld [vmem:[#allocation4 + $0x1] sm:$0xff] }
 0x142   : > { %2287 = vst.msk [vmem:[#allocation3 + $0x48] sm:$0xff] %vm2277_vm15, %v2248_v1  ;;  %v3110_v2 = vrot.slane %v3108_v59, 1  ;;  %v3416_v36 = vrot.slane %v7074_v29, 1  ;;  %v3916_v39 = vld [vmem:[#allocation4 + $0x9] sm:$0xff] }
 0x143   : > { %v3146_v6 = vpop.permute.xlu0 %3145  ;;  %v2228_v20 = vsel %vm1136_vm10, %v2223_v55, %v2227_v49  ;;  %v3414_v56 = vsel %vm1570_vm9, %v3412_v22, %v3413_v25  ;;  %3786 = vst.msk [vmem:[#allocation4 + $0x60] sm:$0x1] %vm3781_vm4, %v6266_v23  ;;  %3787 = vst.msk [vmem:[#allocation4 + $0x78] sm:$0x1] %vm3781_vm4, %v6266_v23  ;;  %v3128_v19 = vsel %vm1136_vm10, %v3123_v31, %v3127_v32  ;;  %v4044_v40 = vld [vmem:[#allocation4 + $0x2] sm:$0xff]  ;;  %v4045_v58 = vld [vmem:[#allocation4 + $0xa] sm:$0xff] }
 0x144   : > { %3186 = vst.msk [vmem:[#allocation3 + $0x40] sm:$0xff] %vm7747_vm0, %v3146_v6  ;;  %2259 = vrot.lane.b32.xlu1 %v2228_v20, %s6264_s16  ;;  %v3111_v61 = vor.u32 %v3110_v2, %v3106_v57  ;;  %vm7752_vm0 = vmmov %vm7751_vm12  ;;  %v3947_v27 = vpack.c.bf16 %v3916_v39, %v3915_v38  ;;  %v3417_v41 = vsel %vm1570_vm9, %v3415_v35, %v3416_v36  ;;  %v7156_v2 = vld [vmem:[%s7720_s2] ss:$0 sm:$0xff]  ;;  %v3851_v18 = vld [vmem:[#allocation4] sm:$0xff] }
 0x145   : > { %v2537_v0 = vpop.permute.xlu1 %2536  ;;  %3788 = vst.msk [vmem:[#allocation4 + $0x90] sm:$0x1] %vm3781_vm4, %v6266_v23  ;;  %3789 = vst.msk [vmem:[#allocation4 + $0xa8] sm:$0x1] %vm3781_vm4, %v6266_v23  ;;  %v4076_v42 = vpack.c.bf16 %v4045_v58, %v4044_v40  ;;  %v3852_v21 = vld [vmem:[#allocation4 + $0x8] sm:$0xff] }
 0x146   : > { %2576 = vst.msk [vmem:[#allocation3 + $0x48] sm:$0xff] %vm2566_vm1, %v2537_v0  ;;  %v3116_v24 = vsel %vm1136_vm10, %v3111_v61, %v3115_v4  ;;  %vm7753_vm9 = vmmov %vm7749_vm7 }
 0x147   : > { %v3435_v53 = vpop.permute.xlu0 %3434  ;;  %3157 = vrot.lane.b32.xlu0 %v3116_v24, %s6265_s17  ;;  %3790 = vst.msk [vmem:[#allocation4 + $0xc0] sm:$0x1] %vm3781_vm4, %v6266_v23  ;;  %3791 = vst.msk [vmem:[#allocation4 + $0xd8] sm:$0x1] %vm3781_vm4, %v6266_v23  ;;  %v3883_v24 = vpack.c.bf16 %v3852_v21, %v3851_v18 }
 0x148   : > { %3475 = vst.msk [vmem:[#allocation3 + $0x40] sm:$0xff] %vm7748_vm3, %v3435_v53  ;;  %2548 = vrot.lane.b32.xlu1 %v2517_v9, %s6262_s14  ;;  %vm7754_vm10 = vmmov %vm7748_vm3  ;;  %s6269_s14 = smov 64  }
 0x149   : > { %v2715_v62 = vpop.permute.xlu1 %2714  ;;  %3792 = vst.msk [vmem:[#allocation4 + $0xf0] sm:$0x1] %vm3781_vm4, %v6266_v23  ;;  %3793 = vst.msk [vmem:[#allocation4 + $0x108] sm:$0x1] %vm3781_vm4, %v6266_v23 }
 0x14a   : > { %2754 = vst.msk [vmem:[#allocation3 + $0x48] sm:$0xff] %vm2744_vm2, %v2715_v62  ;;  %vm7755_vm3 = vmmov %vm7749_vm7 }
 0x14b   : > { %v3437_v13 = vpop.permute.xlu0 %3436  ;;  %3794 = vst.msk [vmem:[#allocation4 + $0x120] sm:$0x1] %vm3781_vm4, %v6266_v23  ;;  %3795 = vst.msk [vmem:[#allocation4 + $0x138] sm:$0x1] %vm3781_vm4, %v6266_v23  ;;  %3446 = vrot.lane.b32.xlu0 %v3414_v56, %s6263_s15 }
 0x14c   : > { %3796 = vst.msk [vmem:[#allocation4 + $0x150] sm:$0x1] %vm3781_vm4, %v6266_v23  ;;  %3797 = vst.msk [vmem:[#allocation4 + $0x168] sm:$0x1] %vm3781_vm4, %v6266_v23  ;;  %2726 = vrot.lane.b32.xlu1 %v6172_v17, %s6260_s12 }
 0x14d   : > { %v3148_v14 = vpop.permute.xlu1 %3147  ;;  %3798 = vst.msk [vmem:[#allocation4 + $0x180] sm:$0x1] %vm3781_vm4, %v6266_v23  ;;  %3799 = vst.msk [vmem:[#allocation4 + $0x198] sm:$0x1] %vm3781_vm4, %v6266_v23 }
 0x14e   : > { %3187 = vst.msk [vmem:[#allocation3 + $0x48] sm:$0xff] %vm7749_vm7, %v3148_v14  ;;  %vm7756_vm7 = vmmov %vm7750_vm8 }
 0x14f   : > { %3476 = vst.msk [vmem:[#allocation3 + $0x48] sm:$0xff] %vm7750_vm8, %v3437_v13  ;;  %v1640_v26 = vpop.permute.xlu0 %1639  ;;  %v3491_v28 = vld [vmem:[#allocation3 + $0x40] sm:$0xff]  ;;  %3979 = vrot.lane.b32.xlu0 %v3947_v27, %s6259_s11  ;;  %vm7757_vm8 = vmmov %vm7752_vm0 }
 0x150   : > { %5830 = vmatprep.mubr.msk.bf16.mxu0 %vm3526_vm6, %v3491_v28  ;;  %3801 = vst.msk [vmem:[#allocation4 + $0x29] sm:$0x1] %vm3781_vm4, %v6266_v23  ;;  %3802 = vst.msk [vmem:[#allocation4 + $0x41] sm:$0x1] %vm3781_vm4, %v6266_v23  ;;  %3159 = vrot.lane.b32.xlu1 %v3128_v19, %s6265_s17  ;;  %s6270_s17 = smov 40  }
 0x151   : > { %v1350_v30 = vpop.permute.xlu1 %1349  ;;  %3803 = vst.msk [vmem:[#allocation4 + $0x59] sm:$0x1] %vm3781_vm4, %v6266_v23  ;;  %3804 = vst.msk [vmem:[#allocation4 + $0x71] sm:$0x1] %vm3781_vm4, %v6266_v23 }
 0x152   : > { %1388 = vst.msk [vmem:[#allocation3 + $0x50] sm:$0xff] %vm7751_vm12, %v1350_v30  ;;  %vm7758_vm11 = vmmov %vm7752_vm0 }
 0x153   : > { %1678 = vst.msk [vmem:[#allocation3 + $0x50] sm:$0xff] %vm1667_vm13, %v1640_v26  ;;  %v1817_v33 = vpop.permute.xlu0 %1816  ;;  %4108 = vrot.lane.b32.xlu0 %v4076_v42, %s6264_s16  ;;  %vm7759_vm12 = vmmov %vm7755_vm3 }
 0x154   : > { %3805 = vst.msk [vmem:[#allocation4 + $0x89] sm:$0x1] %vm3781_vm4, %v6266_v23  ;;  %3806 = vst.msk [vmem:[#allocation4 + $0xa1] sm:$0x1] %vm3781_vm4, %v6266_v23  ;;  %3448 = vrot.lane.b32.xlu1 %v3417_v41, %s6263_s15 }
 0x155   : > { %3807 = vst.msk [vmem:[#allocation4 + $0xb9] sm:$0x1] %vm3781_vm4, %v6266_v23  ;;  %3808 = vst.msk [vmem:[#allocation4 + $0xd1] sm:$0x1] %vm3781_vm4, %v6266_v23  ;;  %v1352_v34 = vpop.permute.xlu1 %1351 }
 0x156   : > { %3809 = vst.msk [vmem:[#allocation4 + $0xe9] sm:$0x1] %vm3781_vm4, %v6266_v23  ;;  %3810 = vst.msk [vmem:[#allocation4 + $0x101] sm:$0x1] %vm3781_vm4, %v6266_v23  ;;  %v3492_v37 = vld [vmem:[#allocation3 + $0x48] sm:$0xff] }
 0x157   : > { %3811 = vst.msk [vmem:[#allocation4 + $0x119] sm:$0x1] %vm3781_vm4, %v6266_v23  ;;  %3812 = vst.msk [vmem:[#allocation4 + $0x131] sm:$0x1] %vm3781_vm4, %v6266_v23  ;;  %5831 = vmatmul.mubr.msk.bf16.gmra.mrb[16].mxu0 %vm3526_vm6, %v3492_v37  ;;  %v2250_v1 = vpop.permute.xlu0 %2249 }
 0x158   : > { %3813 = vst.msk [vmem:[#allocation4 + $0x149] sm:$0x1] %vm3781_vm4, %v6266_v23  ;;  %3814 = vst.msk [vmem:[#allocation4 + $0x161] sm:$0x1] %vm3781_vm4, %v6266_v23 }
 0x159   : > { %3815 = vst.msk [vmem:[#allocation4 + $0x179] sm:$0x1] %vm3781_vm4, %v6266_v23  ;;  %3816 = vst.msk [vmem:[#allocation4 + $0x191] sm:$0x1] %vm3781_vm4, %v6266_v23  ;;  %v1642_v12 = vpop.permute.xlu1 %1641 }
 0x15a   : > { %3817 = vst.msk [vmem:[#allocation4 + $0x1a9] sm:$0x1] %vm3781_vm4, %v6266_v23  ;;  %vm7760_vm4 = vmmov %vm7756_vm7 }
 0x15b   : > { %1855 = vst.msk [vmem:[#allocation3 + $0x50] sm:$0xff] %vm1844_vm14, %v1817_v33  ;;  %v2539_v16 = vpop.permute.xlu0 %2538 }
 0x15c   : > { %1389 = vst.msk [vmem:[#allocation3 + $0x58] sm:$0xff] %vm7752_vm0, %v1352_v34  ;;  %vm7761_vm0 = vmmov %vm7755_vm3 }
 0x15d   : > { %1679 = vst.msk [vmem:[#allocation3 + $0x58] sm:$0xff] %vm1667_vm13, %v1642_v12  ;;  %v1819_v6 = vpop.permute.xlu1 %1818 }
 0x15e   : > { %2288 = vst.msk [vmem:[#allocation3 + $0x50] sm:$0xff] %vm2277_vm15, %v2250_v1 }
 0x15f   : > { %2577 = vst.msk [vmem:[#allocation3 + $0x50] sm:$0xff] %vm2566_vm1, %v2539_v16  ;;  %v2717_v44 = vpop.permute.xlu0 %2716 }
 0x160   : > { %1856 = vst.msk [vmem:[#allocation3 + $0x58] sm:$0xff] %vm1844_vm14, %v1819_v6 }
 0x161   : > { %2755 = vst.msk [vmem:[#allocation3 + $0x50] sm:$0xff] %vm2744_vm2, %v2717_v44 }
 0x162   : > { %3899 = vst.msk [vmem:[#allocation3] sm:$0xff] %vm3772_vm5, %v3883_v24 }
 0x166   : > { %v2252_v45 = vpop.permute.xlu1 %2251 }
 0x167   : > { %2289 = vst.msk [vmem:[#allocation3 + $0x58] sm:$0xff] %vm2277_vm15, %v2252_v45 }
 0x168   : > { %v3150_v46 = vpop.permute.xlu0 %3149 }
 0x169   : > { %3188 = vst.msk [vmem:[#allocation3 + $0x50] sm:$0xff] %vm7753_vm9, %v3150_v46  ;;  %vm7762_vm9 = vmmov %vm7760_vm4 }
 0x16a   : > { %v2541_v47 = vpop.permute.xlu1 %2540 }
 0x16b   : > { %2578 = vst.msk [vmem:[#allocation3 + $0x58] sm:$0xff] %vm2566_vm1, %v2541_v47 }
 0x16c   : > { %v3439_v0 = vpop.permute.xlu0 %3438 }
 0x16d   : > { %3477 = vst.msk [vmem:[#allocation3 + $0x50] sm:$0xff] %vm7754_vm10, %v3439_v0  ;;  %vm7763_vm10 = vmmov %vm7757_vm8 }
 0x16e   : > { %v2719_v50 = vpop.permute.xlu1 %2718 }
 0x16f   : > { %2756 = vst.msk [vmem:[#allocation3 + $0x58] sm:$0xff] %vm2744_vm2, %v2719_v50 }
 0x170   : > { %v3441_v51 = vpop.permute.xlu0 %3440 }
 0x172   : > { %v3152_v52 = vpop.permute.xlu1 %3151 }
 0x173   : > { %3189 = vst.msk [vmem:[#allocation3 + $0x58] sm:$0xff] %vm7755_vm3, %v3152_v52  ;;  %vm7764_vm3 = vmmov %vm7757_vm8 }
 0x174   : > { %3478 = vst.msk [vmem:[#allocation3 + $0x58] sm:$0xff] %vm7756_vm7, %v3441_v51  ;;  %v1644_v48 = vpop.permute.xlu0 %1643  ;;  %v3493_v53 = vld [vmem:[#allocation3 + $0x50] sm:$0xff]  ;;  %vm4156_vm7 = vcmask 195712  }
 0x175   : > { %5834 = vmatprep.mubr.msk.bf16.mxu0 %vm3526_vm6, %v3493_v53 }
 0x176   : > { %v1354_v11 = vpop.permute.xlu1 %1353 }
 0x177   : > { %1390 = vst.msk [vmem:[#allocation3 + $0x60] sm:$0xff] %vm7757_vm8, %v1354_v11  ;;  %vm4285_vm8 = vcmask 261312  }
 0x178   : > { %1680 = vst.msk [vmem:[#allocation3 + $0x60] sm:$0xff] %vm1667_vm13, %v1644_v48  ;;  %v1821_v54 = vpop.permute.xlu0 %1820 }
 0x179   : > { %1857 = vst.msk [vmem:[#allocation3 + $0x60] sm:$0xff] %vm1844_vm14, %v1821_v54 }
 0x17a   : > { %v1356_v55 = vpop.permute.xlu1 %1355 }
 0x17b   : > { %1391 = vst.msk [vmem:[#allocation3 + $0x68] sm:$0xff] %vm7758_vm11, %v1356_v55  ;;  %v3494_v7 = vld [vmem:[#allocation3 + $0x58] sm:$0xff]  ;;  %vm4414_vm11 = vcmask 326912  }
 0x17c   : > { %5835 = vmatmul.mubr.msk.bf16.gmra.mrb[20].mxu0 %vm3526_vm6, %v3494_v7  ;;  %v2254_v57 = vpop.permute.xlu0 %2253 }
 0x17d   : > { %2290 = vst.msk [vmem:[#allocation3 + $0x60] sm:$0xff] %vm2277_vm15, %v2254_v57 }
 0x17e   : > { %v1646_v59 = vpop.permute.xlu1 %1645 }
 0x17f   : > { %1681 = vst.msk [vmem:[#allocation3 + $0x68] sm:$0xff] %vm1667_vm13, %v1646_v59 }
 0x180   : > { %v2543_v60 = vpop.permute.xlu0 %2542 }
 0x181   : > { %2579 = vst.msk [vmem:[#allocation3 + $0x60] sm:$0xff] %vm2566_vm1, %v2543_v60 }
 0x182   : > { %v1823_v62 = vpop.permute.xlu1 %1822 }
 0x183   : > { %1858 = vst.msk [vmem:[#allocation3 + $0x68] sm:$0xff] %vm1844_vm14, %v1823_v62 }
 0x184   : > { %v2721_v49 = vpop.permute.xlu0 %2720 }
 0x185   : > { %2757 = vst.msk [vmem:[#allocation3 + $0x60] sm:$0xff] %vm2744_vm2, %v2721_v49 }
 0x187   : > { %v2256_v63 = vpop.permute.xlu1 %2255 }
 0x188   : > { %2291 = vst.msk [vmem:[#allocation3 + $0x68] sm:$0xff] %vm2277_vm15, %v2256_v63 }
 0x18b   : > { %v2545_v13 = vpop.permute.xlu1 %2544 }
 0x18c   : > { %2580 = vst.msk [vmem:[#allocation3 + $0x68] sm:$0xff] %vm2566_vm1, %v2545_v13 }
 0x18f   : > { %v2723_v25 = vpop.permute.xlu1 %2722 }
 0x190   : > { %2758 = vst.msk [vmem:[#allocation3 + $0x68] sm:$0xff] %vm2744_vm2, %v2723_v25 }
 0x193   : > { %v3154_v3 = vpop.permute.xlu0 %3153  ;;  %v3156_v29 = vpop.permute.xlu1 %3155 }
 0x194   : > { %3190 = vst.msk [vmem:[#allocation3 + $0x60] sm:$0xff] %vm7759_vm12, %v3154_v3  ;;  %vm4543_vm12 = vcmask 392512  }
 0x195   : > { %3191 = vst.msk [vmem:[#allocation3 + $0x68] sm:$0xff] %vm7761_vm0, %v3156_v29 }
 0x197   : > { %v5816_v5 = vpop.f32.mrb[0].mxu0  ;;  %v3443_v61 = vpop.permute.xlu0 %3442 }
 0x198   : > { %v3622_v20 = vadd.f32 %v5816_v5, %v7156_v2  ;;  %v3613_v4 = vpop.f32.mrb[1].mxu0  ;;  %3479 = vst.msk [vmem:[#allocation3 + $0x60] sm:$0xff] %vm7760_vm4, %v3443_v61  ;;  %v1358_v31 = vpop.permute.xlu1 %1357 }
 0x199   : > { %v3614_v8 = vadd.f32 %v7156_v2, %v3613_v4  ;;  %v5817_v9 = vpop.f32.mrb[2].mxu0  ;;  %1392 = vst.msk [vmem:[#allocation3 + $0x70] sm:$0xff] %vm7763_vm10, %v1358_v31  ;;  %vm5007_vm10 = vcmask 588800  }
 0x19a   : > { %v3742_v10 = vmax.f32 %v3622_v20, 0.0  ;;  %v3625_v14 = vadd.f32 %v5817_v9, %v7156_v2  ;;  %v3616_v15 = vpop.f32.mrb[3].mxu0 }
 0x19b   : > { %v3740_v22 = vmax.f32 %v3614_v8, 0.0  ;;  %v3617_v23 = vadd.f32 %v7156_v2, %v3616_v15  ;;  %v3445_v17 = vpop.permute.xlu0 %3444 }
 0x19c   : > { %3821 = vst.msk [vmem:[#allocation4 + $0x31] sm:$0xff] %vm3772_vm5, %v3742_v10  ;;  %v3743_v26 = vmax.f32 %v3625_v14, 0.0 }
 0x19d   : > { %3819 = vst.msk [vmem:[#allocation4 + $0x19] sm:$0xff] %vm3772_vm5, %v3740_v22  ;;  %v3741_v28 = vmax.f32 %v3617_v23, 0.0 }
 0x19e   : > { %3822 = vst.msk [vmem:[#allocation4 + $0x39] sm:$0xff] %vm3772_vm5, %v3743_v26 }
 0x19f   : > { %3820 = vst.msk [vmem:[#allocation4 + $0x21] sm:$0xff] %vm3772_vm5, %v3741_v28  ;;  %v3495_v56 = vld [vmem:[#allocation3 + $0x60] sm:$0xff]  ;;  %v1648_v30 = vpop.permute.xlu0 %1647 }
 0x1a0   : > { %3480 = vst.msk [vmem:[#allocation3 + $0x68] sm:$0xff] %vm7762_vm9, %v3445_v17  ;;  %5838 = vmatprep.mubr.msk.bf16.mxu0 %vm3526_vm6, %v3495_v56  ;;  %v1360_v38 = vpop.permute.xlu1 %1359  ;;  %vm4931_vm9 = vcmask 589312  }
 0x1a1   : > { %1682 = vst.msk [vmem:[#allocation3 + $0x70] sm:$0xff] %vm1667_vm13, %v1648_v30 }
 0x1a2   : > { %1393 = vst.msk [vmem:[#allocation3 + $0x78] sm:$0xff] %vm7764_vm3, %v1360_v38  ;;  %v6188_v38 = vld [vmem:[%s7721_s3 + $0x8] sm:$0xff]  }
 0x1a3   : > { %v4561_v32 = vld [vmem:[#allocation4 + $0x30] sm:$0xff]  ;;  %v1825_v37 = vpop.permute.xlu0 %1824 }
 0x1a4   : > { %v4173_v34 = vld [vmem:[#allocation4 + $0x18] sm:$0xff]  ;;  %1859 = vst.msk [vmem:[#allocation3 + $0x70] sm:$0xff] %vm1844_vm14, %v1825_v37  ;;  %v1650_v58 = vpop.permute.xlu1 %1649  ;;  %v6187_v37 = vld [vmem:[%s7721_s3] sm:$0xff]  }
 0x1a5   : > { %v4562_v43 = vld [vmem:[#allocation4 + $0x38] sm:$0xff]  ;;  %1683 = vst.msk [vmem:[#allocation3 + $0x78] sm:$0xff] %vm1667_vm13, %v1650_v58  ;;  %vm7765_vm13 = vmmov %vm7761_vm0  ;;  %5846 = vmatprep.subr.bf16.mxu1 %v6187_v37 }
 0x1a6   : > { %v4593_v33 = vpack.c.bf16 %v4562_v43, %v4561_v32  ;;  %v4174_v19 = vld [vmem:[#allocation4 + $0x20] sm:$0xff]  ;;  %v4690_v39 = vld [vmem:[#allocation4 + $0x31] sm:$0xff]  ;;  %5847 = vmatpush3.bf16.msra.mxu1 %v6187_v37 }
 0x1a7   : > { %v4691_v35 = vld [vmem:[#allocation4 + $0x39] sm:$0xff]  ;;  %v4205_v36 = vpack.c.bf16 %v4174_v19, %v4173_v34  ;;  %v3496_v40 = vld [vmem:[#allocation3 + $0x68] sm:$0xff]  ;;  %v2258_v1 = vpop.permute.xlu0 %2257  ;;  %5848 = vmatprep.subr.bf16.mxu1 %v6188_v38 }
 0x1a8   : > { %4625 = vrot.lane.b32.xlu0 %v4593_v33, %s6267_s10  ;;  %4239 = vrot.lane.b32.xlu1 %v4593_v33, %s6260_s12  ;;  %3901 = vst.msk [vmem:[#allocation3 + $0x10] sm:$0xff] %vm3772_vm5, %v4593_v33  ;;  %v4722_v12 = vpack.c.bf16 %v4691_v35, %v4690_v39  ;;  %v4819_v27 = vld [vmem:[#allocation4 + $0x32] sm:$0xff]  ;;  %v4820_v41 = vld [vmem:[#allocation4 + $0x3a] sm:$0xff]  ;;  %v4047_v62 = vld [vmem:[#allocation4 + $0x22] sm:$0xff] }
 0x1a9   : > { %3900 = vst.msk [vmem:[#allocation3 + $0x8] sm:$0xff] %vm3772_vm5, %v4205_v36  ;;  %5839 = vmatmul.mubr.msk.bf16.gmra.mrb[24].mxu0 %vm3526_vm6, %v3496_v40  ;;  %v4851_v42 = vpack.c.bf16 %v4820_v41, %v4819_v27  ;;  %v3918_v47 = vld [vmem:[#allocation4 + $0x21] sm:$0xff]  ;;  %v3917_v11 = vld [vmem:[#allocation4 + $0x19] sm:$0xff] }
 0x1aa   : > { %2292 = vst.msk [vmem:[#allocation3 + $0x70] sm:$0xff] %vm2277_vm15, %v2258_v1  ;;  %v3948_v7 = vpack.c.bf16 %v3918_v47, %v3917_v11  ;;  %v4046_v60 = vld [vmem:[#allocation4 + $0x1a] sm:$0xff]  ;;  %5849 = vmatpush3.bf16.msra.mxu1 %v6188_v38  ;;  %v6191_v11 = vld [vmem:[%s7721_s3 + $0x20] ss:$0 sps:$4 sm:$0xff]  }
 0x1ab   : > { %v2547_v16 = vpop.permute.xlu0 %2546  ;;  %v4077_v49 = vpack.c.bf16 %v4047_v62, %v4046_v60 }
 0x1ac   : > { %4754 = vrot.lane.b32.xlu0 %v4722_v12, %s6268_s13  ;;  %4368 = vrot.lane.b32.xlu1 %v4722_v12, %s6263_s15  ;;  %2581 = vst.msk [vmem:[#allocation3 + $0x70] sm:$0xff] %vm2566_vm1, %v2547_v16 }
 0x1ae   : > { %v1827_v50 = vpop.permute.xlu1 %1826 }
 0x1af   : > { %1860 = vst.msk [vmem:[#allocation3 + $0x78] sm:$0xff] %vm1844_vm14, %v1827_v50  ;;  %vm7766_vm14 = vmmov %vm7760_vm4 }
 0x1b0   : > { %4883 = vrot.lane.b32.xlu0 %v4851_v42, %s6269_s14  ;;  %4497 = vrot.lane.b32.xlu1 %v4851_v42, %s6270_s17 }
 0x1b1   : > { %v2725_v55 = vpop.permute.xlu0 %2724 }
 0x1b2   : > { %2759 = vst.msk [vmem:[#allocation3 + $0x70] sm:$0xff] %vm2744_vm2, %v2725_v55 }
 0x1b4   : > { %4112 = vrot.lane.b32.xlu0 %v4851_v42, %s6264_s16  ;;  %3983 = vrot.lane.b32.xlu1 %v4722_v12, %s6259_s11 }
 0x1b6   : > { %v2260_v63 = vpop.permute.xlu1 %2259 }
 0x1b7   : > { %v5820_v6 = vpop.f32.mrb[4].mxu0  ;;  %2293 = vst.msk [vmem:[#allocation3 + $0x78] sm:$0xff] %vm2277_vm15, %v2260_v63  ;;  %vm4027_vm15 = vcmask 130112  }
 0x1b8   : > { %v3638_v44 = vadd.f32 %v5820_v6, %v7156_v2  ;;  %v3629_v45 = vpop.f32.mrb[5].mxu0  ;;  %4237 = vrot.lane.b32.xlu0 %v4205_v36, %s6260_s12  ;;  %3981 = vrot.lane.b32.xlu1 %v3948_v7, %s6259_s11  ;;  %v6189_v6 = vld [vmem:[%s7721_s3 + $0x10] sm:$0xff]  }
 0x1b9   : > { %v3630_v46 = vadd.f32 %v7156_v2, %v3629_v45  ;;  %v5821_v0 = vpop.f32.mrb[6].mxu0  ;;  %v3158_v13 = vpop.permute.xlu0 %3157  ;;  %5850 = vmatprep.subr.bf16.mxu1 %v6189_v6 }
 0x1ba   : > { %v3746_v51 = vmax.f32 %v3638_v44, 0.0  ;;  %v3641_v52 = vadd.f32 %v5821_v0, %v7156_v2  ;;  %v3632_v48 = vpop.f32.mrb[7].mxu0  ;;  %v2549_v4 = vpop.permute.xlu1 %2548  ;;  %3192 = vst.msk [vmem:[#allocation3 + $0x70] sm:$0xff] %vm7765_vm13, %v3158_v13  ;;  %5851 = vmatpush3.bf16.msra.mxu1 %v6189_v6 }
 0x1bb   : > { %v3744_v53 = vmax.f32 %v3630_v46, 0.0  ;;  %v3633_v54 = vadd.f32 %v7156_v2, %v3632_v48  ;;  %2582 = vst.msk [vmem:[#allocation3 + $0x78] sm:$0xff] %vm2566_vm1, %v2549_v4  ;;  %vm7767_vm1 = vmmov %vm7761_vm0  ;;  %vm4802_vm0 = vcmask 523712  }
 0x1bc   : > { %3825 = vst.msk [vmem:[#allocation4 + $0x61] sm:$0xff] %vm3772_vm5, %v3746_v51  ;;  %v3747_v57 = vmax.f32 %v3641_v52, 0.0  ;;  %4366 = vrot.lane.b32.xlu0 %v3948_v7, %s6263_s15  ;;  %4110 = vrot.lane.b32.xlu1 %v4077_v49, %s6264_s16  ;;  %v6190_v51 = vld [vmem:[%s7721_s3 + $0x18] sm:$0xff]  }
 0x1bd   : > { %3823 = vst.msk [vmem:[#allocation4 + $0x49] sm:$0xff] %vm3772_vm5, %v3744_v53  ;;  %v3745_v59 = vmax.f32 %v3633_v54, 0.0  ;;  %v3447_v15 = vpop.permute.xlu0 %3446  ;;  %5852 = vmatprep.subr.bf16.mxu1 %v6190_v51 }
 0x1be   : > { %3826 = vst.msk [vmem:[#allocation4 + $0x69] sm:$0xff] %vm3772_vm5, %v3747_v57  ;;  %v2727_v21 = vpop.permute.xlu1 %2726  ;;  %5853 = vmatpush3.bf16.msra.mxu1 %v6190_v51 }
 0x1bf   : > { %3824 = vst.msk [vmem:[#allocation4 + $0x51] sm:$0xff] %vm3772_vm5, %v3745_v59 }
 0x1c0   : > { %4495 = vrot.lane.b32.xlu0 %v4077_v49, %s6270_s17  ;;  %3481 = vst.msk [vmem:[#allocation3 + $0x70] sm:$0xff] %vm7766_vm14, %v3447_v15 }
 0x1c1   : > { %2760 = vst.msk [vmem:[#allocation3 + $0x78] sm:$0xff] %vm2744_vm2, %v2727_v21  ;;  %v3980_v26 = vpop.permute.xlu0 %3979  ;;  %vm7768_vm2 = vmmov %vm7760_vm4  ;;  %vm4673_vm4 = vcmask 458112  }
 0x1c2   : > { %v3160_v25 = vpop.permute.xlu1 %3159  ;;  %4028 = vst.msk [vmem:[#allocation3] sm:$0xff] %vm4027_vm15, %v3980_v26 }
 0x1c3   : > { %v4565_v3 = vld [vmem:[#allocation4 + $0x60] sm:$0xff]  ;;  %3193 = vst.msk [vmem:[#allocation3 + $0x78] sm:$0xff] %vm7767_vm1, %v3160_v25 }
 0x1c4   : > { %v4563_v9 = vld [vmem:[#allocation4 + $0x48] sm:$0xff] }
 0x1c5   : > { %v4566_v5 = vld [vmem:[#allocation4 + $0x68] sm:$0xff]  ;;  %v4109_v30 = vpop.permute.xlu0 %4108 }
 0x1c6   : > { %v4595_v20 = vpack.c.bf16 %v4566_v5, %v4565_v3  ;;  %v4695_v8 = vld [vmem:[#allocation4 + $0x69] sm:$0xff]  ;;  %v4694_v14 = vld [vmem:[#allocation4 + $0x61] sm:$0xff]  ;;  %v3449_v17 = vpop.permute.xlu1 %3448  ;;  %v4822_v56 = vld [vmem:[#allocation4 + $0x52] sm:$0xff]  ;;  %4157 = vst.msk [vmem:[#allocation3] sm:$0xff] %vm4156_vm7, %v4109_v30 }
 0x1c7   : > { %v4564_v61 = vld [vmem:[#allocation4 + $0x50] sm:$0xff]  ;;  %v4724_v18 = vpack.c.bf16 %v4695_v8, %v4694_v14  ;;  %v4823_v22 = vld [vmem:[#allocation4 + $0x62] sm:$0xff]  ;;  %3482 = vst.msk [vmem:[#allocation3 + $0x78] sm:$0xff] %vm7768_vm2, %v3449_v17 }
 0x1c8   : > { %4243 = vrot.lane.b32.xlu1 %v4595_v20, %s6260_s12  ;;  %v4594_v10 = vpack.c.bf16 %v4564_v61, %v4563_v9  ;;  %3903 = vst.msk [vmem:[#allocation3 + $0x20] sm:$0xff] %vm3772_vm5, %v4595_v20  ;;  %4629 = vrot.lane.b32.xlu0 %v4595_v20, %s6267_s10  ;;  %v4824_v23 = vld [vmem:[#allocation4 + $0x6a] sm:$0xff] }
 0x1c9   : > { %v4853_v24 = vpack.c.bf16 %v4824_v23, %v4823_v22  ;;  %v3497_v28 = vld [vmem:[#allocation3 + $0x70] sm:$0xff] }
 0x1ca   : > { %3902 = vst.msk [vmem:[#allocation3 + $0x18] sm:$0xff] %vm3772_vm5, %v4594_v10  ;;  %5842 = vmatprep.mubr.msk.bf16.mxu0 %vm3526_vm6, %v3497_v28  ;;  %v4821_v29 = vld [vmem:[#allocation4 + $0x4a] sm:$0xff] }
 0x1cb   : > { %v4693_v31 = vld [vmem:[#allocation4 + $0x51] sm:$0xff]  ;;  %v4852_v32 = vpack.c.bf16 %v4822_v56, %v4821_v29  ;;  %v4692_v43 = vld [vmem:[#allocation4 + $0x49] sm:$0xff] }
 0x1cc   : > { %4372 = vrot.lane.b32.xlu1 %v4724_v18, %s6263_s15  ;;  %4758 = vrot.lane.b32.xlu0 %v4724_v18, %s6268_s13  ;;  %v4723_v33 = vpack.c.bf16 %v4693_v31, %v4692_v43 }
 0x1ce   : > { %v3498_v34 = vld [vmem:[#allocation3 + $0x78] sm:$0xff] }
 0x1cf   : > { %5843 = vmatmul.mubr.msk.bf16.gmra.mrb[28].mxu0 %vm3526_vm6, %v3498_v34  ;;  %vm5056_vm6 = vcmask 1043456  }
 0x1d0   : > { %4501 = vrot.lane.b32.xlu1 %v4853_v24, %s6270_s17  ;;  %4887 = vrot.lane.b32.xlu0 %v4853_v24, %s6269_s14  ;;  %v5058_v7 = vsel %vm5056_vm6, %v6191_v11, 0 }
 0x1d1   : > { %5889 = vmatprep.subr.msk.bf16.mxu1 %vm5056_vm6, %v6191_v11 }
 0x1d2   : > { %5855 = vmatpush3.bf16.msra.mxu1 %v5058_v7 }
 0x1d4   : > { %3987 = vrot.lane.b32.xlu1 %v4724_v18, %s6259_s11  ;;  %4116 = vrot.lane.b32.xlu0 %v4853_v24, %s6264_s16 }
 0x1d7   : > { %v5824_v19 = vpop.f32.mrb[8].mxu0 }
 0x1d8   : > { %4627 = vrot.lane.b32.xlu1 %v4594_v10, %s6267_s10  ;;  %4885 = vrot.lane.b32.xlu0 %v4852_v32, %s6269_s14  ;;  %v3654_v35 = vadd.f32 %v5824_v19, %v7156_v2  ;;  %v3645_v36 = vpop.f32.mrb[9].mxu0 }
 0x1d9   : > { %v3646_v39 = vadd.f32 %v7156_v2, %v3645_v36  ;;  %v5825_v40 = vpop.f32.mrb[10].mxu0 }
 0x1da   : > { %v3750_v12 = vmax.f32 %v3654_v35, 0.0  ;;  %v3657_v27 = vadd.f32 %v5825_v40, %v7156_v2  ;;  %v3648_v41 = vpop.f32.mrb[11].mxu0 }
 0x1db   : > { %v3748_v1 = vmax.f32 %v3646_v39, 0.0  ;;  %v3649_v58 = vadd.f32 %v7156_v2, %v3648_v41 }
 0x1dc   : > { %4756 = vrot.lane.b32.xlu1 %v4723_v33, %s6268_s13  ;;  %4241 = vrot.lane.b32.xlu0 %v4594_v10, %s6260_s12  ;;  %3829 = vst.msk [vmem:[#allocation4 + $0x91] sm:$0xff] %vm3772_vm5, %v3750_v12  ;;  %v3751_v42 = vmax.f32 %v3657_v27, 0.0 }
 0x1dd   : > { %3827 = vst.msk [vmem:[#allocation4 + $0x79] sm:$0xff] %vm3772_vm5, %v3748_v1  ;;  %v3749_v16 = vmax.f32 %v3649_v58, 0.0 }
 0x1de   : > { %3830 = vst.msk [vmem:[#allocation4 + $0x99] sm:$0xff] %vm3772_vm5, %v3751_v42 }
 0x1df   : > { %3828 = vst.msk [vmem:[#allocation4 + $0x81] sm:$0xff] %vm3772_vm5, %v3749_v16 }
 0x1e0   : > { %3985 = vrot.lane.b32.xlu1 %v4723_v33, %s6259_s11  ;;  %4370 = vrot.lane.b32.xlu0 %v4723_v33, %s6263_s15 }
 0x1e3   : > { %v4569_v44 = vld [vmem:[#allocation4 + $0x90] sm:$0xff] }
 0x1e4   : > { %4114 = vrot.lane.b32.xlu1 %v4852_v32, %s6264_s16  ;;  %4499 = vrot.lane.b32.xlu0 %v4852_v32, %s6270_s17  ;;  %v4567_v47 = vld [vmem:[#allocation4 + $0x78] sm:$0xff] }
 0x1e5   : > { %v4570_v45 = vld [vmem:[#allocation4 + $0x98] sm:$0xff] }
 0x1e6   : > { %v4597_v46 = vpack.c.bf16 %v4570_v45, %v4569_v44  ;;  %v4699_v0 = vld [vmem:[#allocation4 + $0x99] sm:$0xff]  ;;  %v4698_v48 = vld [vmem:[#allocation4 + $0x91] sm:$0xff]  ;;  %v4826_v60 = vld [vmem:[#allocation4 + $0x82] sm:$0xff] }
 0x1e7   : > { %v4568_v50 = vld [vmem:[#allocation4 + $0x80] sm:$0xff]  ;;  %v4726_v53 = vpack.c.bf16 %v4699_v0, %v4698_v48  ;;  %v4827_v54 = vld [vmem:[#allocation4 + $0x92] sm:$0xff] }
 0x1e8   : > { %4633 = vrot.lane.b32.xlu0 %v4597_v46, %s6267_s10  ;;  %4247 = vrot.lane.b32.xlu1 %v4597_v46, %s6260_s12  ;;  %v4596_v52 = vpack.c.bf16 %v4568_v50, %v4567_v47  ;;  %3905 = vst.msk [vmem:[#allocation3 + $0x30] sm:$0xff] %vm3772_vm5, %v4597_v46  ;;  %v4828_v55 = vld [vmem:[#allocation4 + $0x9a] sm:$0xff] }
 0x1e9   : > { %v4855_v57 = vpack.c.bf16 %v4828_v55, %v4827_v54  ;;  %v4825_v59 = vld [vmem:[#allocation4 + $0x7a] sm:$0xff] }
 0x1ea   : > { %3904 = vst.msk [vmem:[#allocation3 + $0x28] sm:$0xff] %vm3772_vm5, %v4596_v52  ;;  %v4854_v62 = vpack.c.bf16 %v4826_v60, %v4825_v59  ;;  %v4697_v49 = vld [vmem:[#allocation4 + $0x81] sm:$0xff]  ;;  %v4696_v63 = vld [vmem:[#allocation4 + $0x79] sm:$0xff] }
 0x1eb   : > { %v4725_v3 = vpack.c.bf16 %v4697_v49, %v4696_v63 }
 0x1ec   : > { %4762 = vrot.lane.b32.xlu0 %v4726_v53, %s6268_s13  ;;  %4376 = vrot.lane.b32.xlu1 %v4726_v53, %s6263_s15 }
 0x1f0   : > { %4891 = vrot.lane.b32.xlu0 %v4855_v57, %s6269_s14  ;;  %4505 = vrot.lane.b32.xlu1 %v4855_v57, %s6270_s17 }
 0x1f4   : > { %4120 = vrot.lane.b32.xlu0 %v4855_v57, %s6264_s16  ;;  %3991 = vrot.lane.b32.xlu1 %v4726_v53, %s6259_s11 }
 0x1f8   : > { %4889 = vrot.lane.b32.xlu0 %v4854_v62, %s6269_s14  ;;  %4631 = vrot.lane.b32.xlu1 %v4596_v52, %s6267_s10 }
 0x1fc   : > { %4245 = vrot.lane.b32.xlu0 %v4596_v52, %s6260_s12  ;;  %4760 = vrot.lane.b32.xlu1 %v4725_v3, %s6268_s13 }
 0x200   : > { %4374 = vrot.lane.b32.xlu0 %v4725_v3, %s6263_s15  ;;  %3989 = vrot.lane.b32.xlu1 %v4725_v3, %s6259_s11 }
 0x204   : > { %4503 = vrot.lane.b32.xlu0 %v4854_v62, %s6270_s17  ;;  %4118 = vrot.lane.b32.xlu1 %v4854_v62, %s6264_s16 }
 0x206   : > { %v5828_v5 = vpop.f32.mrb[12].mxu0 }
 0x207   : > { %v3670_v13 = vadd.f32 %v5828_v5, %v7156_v2  ;;  %v3661_v20 = vpop.f32.mrb[13].mxu0 }
 0x208   : > { %v3662_v4 = vadd.f32 %v7156_v2, %v3661_v20  ;;  %v5829_v8 = vpop.f32.mrb[14].mxu0 }
 0x209   : > { %v3754_v9 = vmax.f32 %v3670_v13, 0.0  ;;  %v3673_v61 = vadd.f32 %v5829_v8, %v7156_v2  ;;  %v3664_v10 = vpop.f32.mrb[15].mxu0 }
 0x20a   : > { %v3752_v14 = vmax.f32 %v3662_v4, 0.0  ;;  %v3665_v15 = vadd.f32 %v7156_v2, %v3664_v10 }
 0x20b   : > { %3833 = vst.msk [vmem:[#allocation4 + $0xc1] sm:$0xff] %vm3772_vm5, %v3754_v9  ;;  %v3755_v18 = vmax.f32 %v3673_v61, 0.0 }
 0x20c   : > { %3831 = vst.msk [vmem:[#allocation4 + $0xa9] sm:$0xff] %vm3772_vm5, %v3752_v14  ;;  %v3753_v21 = vmax.f32 %v3665_v15, 0.0 }
 0x20d   : > { %3834 = vst.msk [vmem:[#allocation4 + $0xc9] sm:$0xff] %vm3772_vm5, %v3755_v18 }
 0x20e   : > { %3832 = vst.msk [vmem:[#allocation4 + $0xb1] sm:$0xff] %vm3772_vm5, %v3753_v21 }
 0x212   : > { %v4573_v22 = vld [vmem:[#allocation4 + $0xc0] sm:$0xff] }
 0x213   : > { %v4571_v26 = vld [vmem:[#allocation4 + $0xa8] sm:$0xff] }
 0x214   : > { %v4574_v23 = vld [vmem:[#allocation4 + $0xc8] sm:$0xff] }
 0x215   : > { %v4599_v24 = vpack.c.bf16 %v4574_v23, %v4573_v22  ;;  %v4703_v25 = vld [vmem:[#allocation4 + $0xc9] sm:$0xff]  ;;  %v4702_v29 = vld [vmem:[#allocation4 + $0xc1] sm:$0xff]  ;;  %v4830_v19 = vld [vmem:[#allocation4 + $0xb2] sm:$0xff] }
 0x216   : > { %v4572_v28 = vld [vmem:[#allocation4 + $0xb0] sm:$0xff]  ;;  %v4728_v56 = vpack.c.bf16 %v4703_v25, %v4702_v29  ;;  %v4831_v30 = vld [vmem:[#allocation4 + $0xc2] sm:$0xff] }
 0x217   : > { %4637 = vrot.lane.b32.xlu0 %v4599_v24, %s6267_s10  ;;  %4251 = vrot.lane.b32.xlu1 %v4599_v24, %s6260_s12  ;;  %v4598_v17 = vpack.c.bf16 %v4572_v28, %v4571_v26  ;;  %3907 = vst.msk [vmem:[#allocation3 + $0x40] sm:$0xff] %vm3772_vm5, %v4599_v24  ;;  %v4832_v31 = vld [vmem:[#allocation4 + $0xca] sm:$0xff] }
 0x218   : > { %v4857_v32 = vpack.c.bf16 %v4832_v31, %v4831_v30  ;;  %v4829_v34 = vld [vmem:[#allocation4 + $0xaa] sm:$0xff] }
 0x219   : > { %3906 = vst.msk [vmem:[#allocation3 + $0x38] sm:$0xff] %vm3772_vm5, %v4598_v17  ;;  %v4856_v37 = vpack.c.bf16 %v4830_v19, %v4829_v34  ;;  %v4701_v38 = vld [vmem:[#allocation4 + $0xb1] sm:$0xff]  ;;  %v4700_v12 = vld [vmem:[#allocation4 + $0xa9] sm:$0xff] }
 0x21a   : > { %v4626_v43 = vpop.permute.xlu0 %4625  ;;  %v4240_v33 = vpop.permute.xlu1 %4239  ;;  %v4727_v27 = vpack.c.bf16 %v4701_v38, %v4700_v12 }
 0x21b   : > { %4766 = vrot.lane.b32.xlu0 %v4728_v56, %s6268_s13  ;;  %4380 = vrot.lane.b32.xlu1 %v4728_v56, %s6263_s15 }
 0x21e   : > { %v4755_v35 = vpop.permute.xlu0 %4754  ;;  %v4369_v36 = vpop.permute.xlu1 %4368 }
 0x21f   : > { %4895 = vrot.lane.b32.xlu0 %v4857_v32, %s6269_s14  ;;  %4509 = vrot.lane.b32.xlu1 %v4857_v32, %s6270_s17 }
 0x222   : > { %v4884_v39 = vpop.permute.xlu0 %4883  ;;  %v4498_v40 = vpop.permute.xlu1 %4497 }
 0x223   : > { %4124 = vrot.lane.b32.xlu0 %v4857_v32, %s6264_s16  ;;  %3995 = vrot.lane.b32.xlu1 %v4728_v56, %s6259_s11 }
 0x226   : > { %v4113_v41 = vpop.permute.xlu0 %4112  ;;  %v3984_v1 = vpop.permute.xlu1 %3983 }
 0x227   : > { %4893 = vrot.lane.b32.xlu0 %v4856_v37, %s6269_s14  ;;  %4635 = vrot.lane.b32.xlu1 %v4598_v17, %s6267_s10  ;;  %4030 = vst.msk [vmem:[#allocation3 + $0x10] sm:$0xff] %vm4027_vm15, %v3984_v1 }
 0x228   : > { %4159 = vst.msk [vmem:[#allocation3 + $0x10] sm:$0xff] %vm4156_vm7, %v4113_v41 }
 0x22a   : > { %v5832_v58 = vpop.f32.mrb[16].mxu0  ;;  %v4238_v45 = vpop.permute.xlu0 %4237 }
 0x22b   : > { %4249 = vrot.lane.b32.xlu0 %v4598_v17, %s6260_s12  ;;  %4764 = vrot.lane.b32.xlu1 %v4727_v27, %s6268_s13  ;;  %v3686_v42 = vadd.f32 %v5832_v58, %v7156_v2  ;;  %v3677_v16 = vpop.f32.mrb[17].mxu0  ;;  %4286 = vst.msk [vmem:[#allocation3] sm:$0xff] %vm4285_vm8, %v4238_v45  ;;  %v3982_v50 = vpop.permute.xlu1 %3981 }
 0x22c   : > { %v3678_v6 = vadd.f32 %v7156_v2, %v3677_v16  ;;  %v5833_v44 = vpop.f32.mrb[18].mxu0  ;;  %4029 = vst.msk [vmem:[#allocation3 + $0x8] sm:$0xff] %vm4027_vm15, %v3982_v50 }
 0x22d   : > { %v3758_v46 = vmax.f32 %v3686_v42, 0.0  ;;  %v3689_v47 = vadd.f32 %v5833_v44, %v7156_v2  ;;  %v3680_v0 = vpop.f32.mrb[19].mxu0 }
 0x22e   : > { %v3756_v51 = vmax.f32 %v3678_v6, 0.0  ;;  %v3681_v52 = vadd.f32 %v7156_v2, %v3680_v0  ;;  %v4367_v11 = vpop.permute.xlu0 %4366 }
 0x22f   : > { %4378 = vrot.lane.b32.xlu0 %v4727_v27, %s6263_s15  ;;  %3993 = vrot.lane.b32.xlu1 %v4727_v27, %s6259_s11  ;;  %3837 = vst.msk [vmem:[#allocation4 + $0xf1] sm:$0xff] %vm3772_vm5, %v3758_v46  ;;  %v3759_v48 = vmax.f32 %v3689_v47, 0.0  ;;  %v4111_v54 = vpop.permute.xlu1 %4110 }
 0x230   : > { %3835 = vst.msk [vmem:[#allocation4 + $0xd9] sm:$0xff] %vm3772_vm5, %v3756_v51  ;;  %v3757_v53 = vmax.f32 %v3681_v52, 0.0 }
 0x231   : > { %3838 = vst.msk [vmem:[#allocation4 + $0xf9] sm:$0xff] %vm3772_vm5, %v3759_v48 }
 0x232   : > { %4415 = vst.msk [vmem:[#allocation3] sm:$0xff] %vm4414_vm11, %v4367_v11  ;;  %v4496_v55 = vpop.permute.xlu0 %4495 }
 0x233   : > { %4507 = vrot.lane.b32.xlu0 %v4856_v37, %s6270_s17  ;;  %4122 = vrot.lane.b32.xlu1 %v4856_v37, %s6264_s16  ;;  %3836 = vst.msk [vmem:[#allocation4 + $0xe1] sm:$0xff] %vm3772_vm5, %v3757_v53 }
 0x234   : > { %4158 = vst.msk [vmem:[#allocation3 + $0x8] sm:$0xff] %vm4156_vm7, %v4111_v54 }
 0x235   : > { %4287 = vst.msk [vmem:[#allocation3 + $0x8] sm:$0xff] %vm4285_vm8, %v4240_v33 }
 0x236   : > { %4416 = vst.msk [vmem:[#allocation3 + $0x8] sm:$0xff] %vm4414_vm11, %v4369_v36  ;;  %v4577_v57 = vld [vmem:[#allocation4 + $0xf0] sm:$0xff] }
 0x237   : > { %4544 = vst.msk [vmem:[#allocation3] sm:$0xff] %vm4543_vm12, %v4496_v55  ;;  %4545 = vst.msk [vmem:[#allocation3 + $0x8] sm:$0xff] %vm4543_vm12, %v4498_v40  ;;  %v4575_v63 = vld [vmem:[#allocation4 + $0xd8] sm:$0xff] }
 0x238   : > { %4674 = vst.msk [vmem:[#allocation3] sm:$0xff] %vm4673_vm4, %v4626_v43  ;;  %v4578_v59 = vld [vmem:[#allocation4 + $0xf8] sm:$0xff] }
 0x239   : > { %4803 = vst.msk [vmem:[#allocation3] sm:$0xff] %vm4802_vm0, %v4755_v35  ;;  %v4601_v62 = vpack.c.bf16 %v4578_v59, %v4577_v57  ;;  %v4707_v49 = vld [vmem:[#allocation4 + $0xf9] sm:$0xff]  ;;  %v4706_v20 = vld [vmem:[#allocation4 + $0xf1] sm:$0xff] }
 0x23a   : > { %v7322_v7 = vpop.permute.xlu1 %4243  ;;  %4932 = vst.msk [vmem:[#allocation3] sm:$0xff] %vm4931_vm9, %v4884_v39  ;;  %v7326_v60 = vpop.permute.xlu0 %4629  ;;  %v4576_v3 = vld [vmem:[#allocation4 + $0xe0] sm:$0xff]  ;;  %v4730_v8 = vpack.c.bf16 %v4707_v49, %v4706_v20  ;;  %v4835_v9 = vld [vmem:[#allocation4 + $0xf2] sm:$0xff] }
 0x23b   : > { %4641 = vrot.lane.b32.xlu0 %v4601_v62, %s6267_s10  ;;  %4255 = vrot.lane.b32.xlu1 %v4601_v62, %s6260_s12  ;;  %v4600_v13 = vpack.c.bf16 %v4576_v3, %v4575_v63  ;;  %3909 = vst.msk [vmem:[#allocation3 + $0x50] sm:$0xff] %vm3772_vm5, %v4601_v62  ;;  %v4836_v61 = vld [vmem:[#allocation4 + $0xfa] sm:$0xff]  ;;  %v4834_v24 = vld [vmem:[#allocation4 + $0xe2] sm:$0xff] }
 0x23c   : > { %v4859_v18 = vpack.c.bf16 %v4836_v61, %v4835_v9  ;;  %v4833_v23 = vld [vmem:[#allocation4 + $0xda] sm:$0xff] }
 0x23d   : > { %3908 = vst.msk [vmem:[#allocation3 + $0x48] sm:$0xff] %vm3772_vm5, %v4600_v13  ;;  %v4858_v28 = vpack.c.bf16 %v4834_v24, %v4833_v23  ;;  %v4705_v17 = vld [vmem:[#allocation4 + $0xe1] sm:$0xff]  ;;  %v4704_v56 = vld [vmem:[#allocation4 + $0xd9] sm:$0xff] }
 0x23e   : > { %v4373_v5 = vpop.permute.xlu1 %4372  ;;  %v4759_v4 = vpop.permute.xlu0 %4758  ;;  %v4729_v31 = vpack.c.bf16 %v4705_v17, %v4704_v56 }
 0x23f   : > { %4770 = vrot.lane.b32.xlu0 %v4730_v8, %s6268_s13  ;;  %4384 = vrot.lane.b32.xlu1 %v4730_v8, %s6263_s15 }
 0x241   : > { %v4948_v14 = vld [vmem:[#allocation3] sm:$0xff] }
 0x242   : > { %v4502_v10 = vpop.permute.xlu1 %4501  ;;  %5856 = vmatprep.mubr.msk.bf16.mxu1 %vm5007_vm10, %v4948_v14  ;;  %v4888_v15 = vpop.permute.xlu0 %4887 }
 0x243   : > { %4899 = vrot.lane.b32.xlu0 %v4859_v18, %s6269_s14  ;;  %4513 = vrot.lane.b32.xlu1 %v4859_v18, %s6270_s17 }
 0x246   : > { %v3988_v21 = vpop.permute.xlu1 %3987  ;;  %v4117_v22 = vpop.permute.xlu0 %4116 }
 0x247   : > { %4032 = vst.msk [vmem:[#allocation3 + $0x20] sm:$0xff] %vm4027_vm15, %v3988_v21  ;;  %4128 = vrot.lane.b32.xlu0 %v4859_v18, %s6264_s16  ;;  %3999 = vrot.lane.b32.xlu1 %v4730_v8, %s6259_s11 }
 0x248   : > { %4161 = vst.msk [vmem:[#allocation3 + $0x20] sm:$0xff] %vm4156_vm7, %v4117_v22 }
 0x24a   : > { %v4628_v25 = vpop.permute.xlu1 %4627  ;;  %v4886_v26 = vpop.permute.xlu0 %4885 }
 0x24b   : > { %4675 = vst.msk [vmem:[#allocation3 + $0x8] sm:$0xff] %vm4673_vm4, %v4628_v25  ;;  %4897 = vrot.lane.b32.xlu0 %v4858_v28, %s6269_s14  ;;  %4639 = vrot.lane.b32.xlu1 %v4600_v13, %s6267_s10 }
 0x24e   : > { %v4757_v29 = vpop.permute.xlu1 %4756  ;;  %v4242_v30 = vpop.permute.xlu0 %4241 }
 0x24f   : > { %4804 = vst.msk [vmem:[#allocation3 + $0x8] sm:$0xff] %vm4802_vm0, %v4757_v29  ;;  %4253 = vrot.lane.b32.xlu0 %v4600_v13, %s6260_s12  ;;  %4768 = vrot.lane.b32.xlu1 %v4729_v31, %s6268_s13  ;;  %v5836_v35 = vpop.f32.mrb[20].mxu0 }
 0x250   : > { %4933 = vst.msk [vmem:[#allocation3 + $0x8] sm:$0xff] %vm4931_vm9, %v4886_v26  ;;  %v3702_v36 = vadd.f32 %v5836_v35, %v7156_v2  ;;  %v3693_v37 = vpop.f32.mrb[21].mxu0 }
 0x251   : > { %4288 = vst.msk [vmem:[#allocation3 + $0x10] sm:$0xff] %vm4285_vm8, %v4242_v30  ;;  %v3694_v38 = vadd.f32 %v7156_v2, %v3693_v37  ;;  %v5837_v39 = vpop.f32.mrb[22].mxu0 }
 0x252   : > { %v3986_v32 = vpop.permute.xlu1 %3985  ;;  %v4371_v43 = vpop.permute.xlu0 %4370  ;;  %v3762_v40 = vmax.f32 %v3702_v36, 0.0  ;;  %v3705_v12 = vadd.f32 %v5837_v39, %v7156_v2 }
 0x253   : > { %4031 = vst.msk [vmem:[#allocation3 + $0x18] sm:$0xff] %vm4027_vm15, %v3986_v32  ;;  %4382 = vrot.lane.b32.xlu0 %v4729_v31, %s6263_s15  ;;  %3997 = vrot.lane.b32.xlu1 %v4729_v31, %s6259_s11  ;;  %v3696_v27 = vpop.f32.mrb[23].mxu0  ;;  %v3760_v41 = vmax.f32 %v3694_v38, 0.0 }
 0x254   : > { %4417 = vst.msk [vmem:[#allocation3 + $0x10] sm:$0xff] %vm4414_vm11, %v4371_v43  ;;  %v3697_v1 = vadd.f32 %v7156_v2, %v3696_v27  ;;  %v3763_v58 = vmax.f32 %v3705_v12, 0.0 }
 0x255   : > { %3841 = vst.msk [vmem:[#allocation4 + $0x121] sm:$0xff] %vm3772_vm5, %v3762_v40  ;;  %3839 = vst.msk [vmem:[#allocation4 + $0x109] sm:$0xff] %vm3772_vm5, %v3760_v41 }
 0x256   : > { %v4115_v33 = vpop.permute.xlu1 %4114  ;;  %v4500_v19 = vpop.permute.xlu0 %4499  ;;  %v3761_v42 = vmax.f32 %v3697_v1, 0.0  ;;  %3842 = vst.msk [vmem:[#allocation4 + $0x129] sm:$0xff] %vm3772_vm5, %v3763_v58 }
 0x257   : > { %4160 = vst.msk [vmem:[#allocation3 + $0x18] sm:$0xff] %vm4156_vm7, %v4115_v33  ;;  %v4949_v34 = vld [vmem:[#allocation3 + $0x8] sm:$0xff]  ;;  %4511 = vrot.lane.b32.xlu0 %v4858_v28, %s6270_s17  ;;  %4126 = vrot.lane.b32.xlu1 %v4858_v28, %s6264_s16 }
 0x258   : > { %4289 = vst.msk [vmem:[#allocation3 + $0x18] sm:$0xff] %vm4285_vm8, %v7322_v7  ;;  %5857 = vmatmul.mubr.msk.bf16.vlgmr.msra.gmra.mrb[0].mxu1 %vm5007_vm10, %v4949_v34 }
 0x259   : > { %4546 = vst.msk [vmem:[#allocation3 + $0x10] sm:$0xff] %vm4543_vm12, %v4500_v19 }
 0x25a   : > { %4418 = vst.msk [vmem:[#allocation3 + $0x18] sm:$0xff] %vm4414_vm11, %v4373_v5  ;;  %v4634_v6 = vpop.permute.xlu0 %4633  ;;  %v4248_v44 = vpop.permute.xlu1 %4247 }
 0x25b   : > { %4676 = vst.msk [vmem:[#allocation3 + $0x10] sm:$0xff] %vm4673_vm4, %v7326_v60 }
 0x25c   : > { %4547 = vst.msk [vmem:[#allocation3 + $0x18] sm:$0xff] %vm4543_vm12, %v4502_v10  ;;  %v4195_v45 = vld [vmem:[#allocation4 + $0x120] sm:$0xff]  ;;  %v4193_v47 = vld [vmem:[#allocation4 + $0x108] sm:$0xff] }
 0x25d   : > { %4805 = vst.msk [vmem:[#allocation3 + $0x10] sm:$0xff] %vm4802_vm0, %v4759_v4  ;;  %v4196_v46 = vld [vmem:[#allocation4 + $0x128] sm:$0xff] }
 0x25e   : > { %4934 = vst.msk [vmem:[#allocation3 + $0x10] sm:$0xff] %vm4931_vm9, %v4888_v15  ;;  %v4763_v0 = vpop.permute.xlu0 %4762  ;;  %v4377_v50 = vpop.permute.xlu1 %4376  ;;  %v4216_v51 = vpack.c.bf16 %v4196_v46, %v4195_v45  ;;  %v4325_v54 = vld [vmem:[#allocation4 + $0x129] sm:$0xff]  ;;  %v4324_v7 = vld [vmem:[#allocation4 + $0x121] sm:$0xff] }
 0x25f   : > { %3840 = vst.msk [vmem:[#allocation4 + $0x111] sm:$0xff] %vm3772_vm5, %v3761_v42  ;;  %v7379_v60 = vpack.c.bf16 %v4325_v54, %v4324_v7  ;;  %v4322_v3 = vld [vmem:[#allocation4 + $0x109] sm:$0xff] }
 0x260   : > { %4259 = vrot.lane.b32.xlu1 %v4216_v51, %s6260_s12  ;;  %3911 = vst.msk [vmem:[#allocation3 + $0x60] sm:$0xff] %vm3772_vm5, %v4216_v51  ;;  %v4453_v10 = vld [vmem:[#allocation4 + $0x122] sm:$0xff]  ;;  %v4454_v14 = vld [vmem:[#allocation4 + $0x12a] sm:$0xff] }
 0x261   : > { %v4474_v21 = vpack.c.bf16 %v4454_v14, %v4453_v10 }
 0x262   : > { %v4892_v57 = vpop.permute.xlu0 %4891  ;;  %v4506_v59 = vpop.permute.xlu1 %4505 }
 0x264   : > { %4388 = vrot.lane.b32.xlu1 %v7379_v60, %s6263_s15 }
 0x265   : > { %v4950_v16 = vld [vmem:[#allocation3 + $0x10] sm:$0xff] }
 0x266   : > { %5860 = vmatprep.mubr.msk.bf16.mxu1 %vm5007_vm10, %v4950_v16  ;;  %v4837_v52 = vld [vmem:[#allocation4 + $0x10a] sm:$0xff]  ;;  %v4838_v48 = vld [vmem:[#allocation4 + $0x112] sm:$0xff]  ;;  %v4121_v49 = vpop.permute.xlu0 %4120  ;;  %v3992_v63 = vpop.permute.xlu1 %3991 }
 0x267   : > { %v4194_v53 = vld [vmem:[#allocation4 + $0x110] sm:$0xff]  ;;  %v4860_v11 = vpack.c.bf16 %v4838_v48, %v4837_v52  ;;  %4034 = vst.msk [vmem:[#allocation3 + $0x30] sm:$0xff] %vm4027_vm15, %v3992_v63 }
 0x268   : > { %v4215_v55 = vpack.c.bf16 %v4194_v53, %v4193_v47  ;;  %v4323_v62 = vld [vmem:[#allocation4 + $0x111] sm:$0xff]  ;;  %4163 = vst.msk [vmem:[#allocation3 + $0x30] sm:$0xff] %vm4156_vm7, %v4121_v49  ;;  %v6192_v49 = vld [vmem:[%s7720_s2] ss:$0 sm:$0xff] }
 0x269   : > { %4901 = vrot.lane.b32.xlu0 %v4860_v11, %s6269_s14  ;;  %v4344_v5 = vpack.c.bf16 %v4323_v62, %v4322_v3 }
 0x26a   : > { %3910 = vst.msk [vmem:[#allocation3 + $0x58] sm:$0xff] %vm3772_vm5, %v4215_v55  ;;  %4643 = vrot.lane.b32.xlu1 %v4215_v55, %s6267_s10  ;;  %v4890_v13 = vpop.permute.xlu0 %4889  ;;  %v4632_v20 = vpop.permute.xlu1 %4631 }
 0x26b   : > { %4677 = vst.msk [vmem:[#allocation3 + $0x18] sm:$0xff] %vm4673_vm4, %v4632_v20 }
 0x26d   : > { %4257 = vrot.lane.b32.xlu0 %v4215_v55, %s6260_s12 }
 0x26e   : > { %4772 = vrot.lane.b32.xlu1 %v4344_v5, %s6268_s13  ;;  %v4246_v4 = vpop.permute.xlu0 %4245  ;;  %v4761_v8 = vpop.permute.xlu1 %4760 }
 0x26f   : > { %4290 = vst.msk [vmem:[#allocation3 + $0x20] sm:$0xff] %vm4285_vm8, %v4246_v4 }
 0x270   : > { %4806 = vst.msk [vmem:[#allocation3 + $0x18] sm:$0xff] %vm4802_vm0, %v4761_v8 }
 0x271   : > { %4386 = vrot.lane.b32.xlu0 %v4344_v5, %s6263_s15  ;;  %4935 = vst.msk [vmem:[#allocation3 + $0x18] sm:$0xff] %vm4931_vm9, %v4890_v13 }
 0x272   : > { %4001 = vrot.lane.b32.xlu1 %v4344_v5, %s6259_s11  ;;  %v4375_v9 = vpop.permute.xlu0 %4374  ;;  %v3990_v61 = vpop.permute.xlu1 %3989 }
 0x273   : > { %4419 = vst.msk [vmem:[#allocation3 + $0x20] sm:$0xff] %vm4414_vm11, %v4375_v9 }
 0x274   : > { %4033 = vst.msk [vmem:[#allocation3 + $0x28] sm:$0xff] %vm4027_vm15, %v3990_v61 }
 0x275   : > { %4515 = vrot.lane.b32.xlu0 %v4860_v11, %s6270_s17 }
 0x276   : > { %4130 = vrot.lane.b32.xlu1 %v4860_v11, %s6264_s16  ;;  %v4504_v15 = vpop.permute.xlu0 %4503  ;;  %v4119_v18 = vpop.permute.xlu1 %4118 }
 0x277   : > { %4548 = vst.msk [vmem:[#allocation3 + $0x20] sm:$0xff] %vm4543_vm12, %v4504_v15 }
 0x278   : > { %4162 = vst.msk [vmem:[#allocation3 + $0x28] sm:$0xff] %vm4156_vm7, %v4119_v18  ;;  %v4951_v22 = vld [vmem:[#allocation3 + $0x18] sm:$0xff] }
 0x279   : > { %4645 = vrot.lane.b32.xlu0 %v4216_v51, %s6267_s10  ;;  %4678 = vst.msk [vmem:[#allocation3 + $0x20] sm:$0xff] %vm4673_vm4, %v4634_v6  ;;  %5861 = vmatmul.mubr.msk.bf16.gmra.mrb[4].mxu1 %vm5007_vm10, %v4951_v22 }
 0x27a   : > { %4291 = vst.msk [vmem:[#allocation3 + $0x28] sm:$0xff] %vm4285_vm8, %v4248_v44  ;;  %4517 = vrot.lane.b32.xlu1 %v4474_v21, %s6270_s17 }
 0x27b   : > { %4807 = vst.msk [vmem:[#allocation3 + $0x20] sm:$0xff] %vm4802_vm0, %v4763_v0 }
 0x27c   : > { %4420 = vst.msk [vmem:[#allocation3 + $0x28] sm:$0xff] %vm4414_vm11, %v4377_v50  ;;  %v5840_v23 = vpop.f32.mrb[24].mxu0 }
 0x27d   : > { %4774 = vrot.lane.b32.xlu0 %v7379_v60, %s6268_s13  ;;  %4936 = vst.msk [vmem:[#allocation3 + $0x20] sm:$0xff] %vm4931_vm9, %v4892_v57  ;;  %v3718_v24 = vadd.f32 %v5840_v23, %v7156_v2  ;;  %v3709_v25 = vpop.f32.mrb[25].mxu0 }
 0x27e   : > { %4549 = vst.msk [vmem:[#allocation3 + $0x28] sm:$0xff] %vm4543_vm12, %v4506_v59  ;;  %v3710_v26 = vadd.f32 %v7156_v2, %v3709_v25  ;;  %v5841_v28 = vpop.f32.mrb[26].mxu0 }
 0x27f   : > { %v3766_v17 = vmax.f32 %v3718_v24, 0.0  ;;  %v3721_v29 = vadd.f32 %v5841_v28, %v7156_v2  ;;  %v3712_v56 = vpop.f32.mrb[27].mxu0 }
 0x280   : > { %v3764_v30 = vmax.f32 %v3710_v26, 0.0  ;;  %v3713_v31 = vadd.f32 %v7156_v2, %v3712_v56 }
 0x281   : > { %4903 = vrot.lane.b32.xlu0 %v4474_v21, %s6269_s14  ;;  %3845 = vst.msk [vmem:[#allocation4 + $0x151] sm:$0xff] %vm3772_vm5, %v3766_v17  ;;  %v3767_v32 = vmax.f32 %v3721_v29, 0.0 }
 0x282   : > { %3843 = vst.msk [vmem:[#allocation4 + $0x139] sm:$0xff] %vm3772_vm5, %v3764_v30  ;;  %v3765_v43 = vmax.f32 %v3713_v31, 0.0 }
 0x283   : > { %3846 = vst.msk [vmem:[#allocation4 + $0x159] sm:$0xff] %vm3772_vm5, %v3767_v32 }
 0x284   : > { %v4952_v19 = vld [vmem:[#allocation3 + $0x20] sm:$0xff]  ;;  %3844 = vst.msk [vmem:[#allocation4 + $0x141] sm:$0xff] %vm3772_vm5, %v3765_v43 }
 0x285   : > { %5864 = vmatprep.mubr.msk.bf16.mxu1 %vm5007_vm10, %v4952_v19 }
 0x288   : > { %v4585_v38 = vld [vmem:[#allocation4 + $0x150] sm:$0xff] }
 0x289   : > { %v4638_v33 = vpop.permute.xlu0 %4637  ;;  %v4252_v34 = vpop.permute.xlu1 %4251  ;;  %v4583_v37 = vld [vmem:[#allocation4 + $0x138] sm:$0xff] }
 0x28a   : > { %v4586_v2 = vld [vmem:[#allocation4 + $0x158] sm:$0xff] }
 0x28b   : > { %v4841_v12 = vld [vmem:[#allocation4 + $0x13a] sm:$0xff]  ;;  %v4842_v27 = vld [vmem:[#allocation4 + $0x142] sm:$0xff]  ;;  %v4605_v1 = vpack.c.bf16 %v4586_v2, %v4585_v38  ;;  %v4714_v7 = vld [vmem:[#allocation4 + $0x151] sm:$0xff] }
 0x28c   : > { %v4584_v41 = vld [vmem:[#allocation4 + $0x140] sm:$0xff]  ;;  %v4862_v58 = vpack.c.bf16 %v4842_v27, %v4841_v12  ;;  %v4843_v59 = vld [vmem:[#allocation4 + $0x152] sm:$0xff] }
 0x28d   : > { %v4767_v35 = vpop.permute.xlu0 %4766  ;;  %v4381_v36 = vpop.permute.xlu1 %4380  ;;  %v4604_v42 = vpack.c.bf16 %v4584_v41, %v4583_v37  ;;  %v4713_v16 = vld [vmem:[#allocation4 + $0x141] sm:$0xff]  ;;  %3913 = vst.msk [vmem:[#allocation3 + $0x70] sm:$0xff] %vm3772_vm5, %v4605_v1  ;;  %v4712_v45 = vld [vmem:[#allocation4 + $0x139] sm:$0xff] }
 0x28e   : > { %4905 = vrot.lane.b32.xlu0 %v4862_v58, %s6269_s14  ;;  %v4733_v46 = vpack.c.bf16 %v4713_v16, %v4712_v45  ;;  %v4715_v55 = vld [vmem:[#allocation4 + $0x159] sm:$0xff] }
 0x28f   : > { %4647 = vrot.lane.b32.xlu1 %v4604_v42, %s6267_s10  ;;  %3912 = vst.msk [vmem:[#allocation3 + $0x68] sm:$0xff] %vm3772_vm5, %v4604_v42  ;;  %v4734_v57 = vpack.c.bf16 %v4715_v55, %v4714_v7  ;;  %v4849_v7 = vld [vmem:[#allocation4 + $0x19a] sm:$0xff] }
 0x291   : > { %v4896_v39 = vpop.permute.xlu0 %4895  ;;  %v4510_v40 = vpop.permute.xlu1 %4509 }
 0x292   : > { %4132 = vrot.lane.b32.xlu0 %v4474_v21, %s6264_s16 }
 0x293   : > { %4776 = vrot.lane.b32.xlu1 %v4733_v46, %s6268_s13 }
 0x295   : > { %v4125_v6 = vpop.permute.xlu0 %4124  ;;  %v3996_v44 = vpop.permute.xlu1 %3995 }
 0x296   : > { %4036 = vst.msk [vmem:[#allocation3 + $0x40] sm:$0xff] %vm4027_vm15, %v3996_v44  ;;  %4261 = vrot.lane.b32.xlu0 %v4604_v42, %s6260_s12 }
 0x297   : > { %4165 = vst.msk [vmem:[#allocation3 + $0x40] sm:$0xff] %vm4156_vm7, %v4125_v6  ;;  %4003 = vrot.lane.b32.xlu1 %v7379_v60, %s6259_s11  ;;  %v4844_v60 = vld [vmem:[#allocation4 + $0x15a] sm:$0xff] }
 0x298   : > { %v4863_v5 = vpack.c.bf16 %v4844_v60, %v4843_v59 }
 0x299   : > { %v4894_v47 = vpop.permute.xlu0 %4893  ;;  %v4636_v0 = vpop.permute.xlu1 %4635 }
 0x29a   : > { %4679 = vst.msk [vmem:[#allocation3 + $0x28] sm:$0xff] %vm4673_vm4, %v4636_v0  ;;  %4390 = vrot.lane.b32.xlu0 %v4733_v46, %s6263_s15  ;;  %v4592_v0 = vld [vmem:[#allocation4 + $0x1a0] sm:$0xff] }
 0x29b   : > { %4005 = vrot.lane.b32.xlu1 %v4733_v46, %s6259_s11 }
 0x29d   : > { %v4250_v50 = vpop.permute.xlu0 %4249  ;;  %v4765_v51 = vpop.permute.xlu1 %4764 }
 0x29e   : > { %4292 = vst.msk [vmem:[#allocation3 + $0x30] sm:$0xff] %vm4285_vm8, %v4250_v50  ;;  %4519 = vrot.lane.b32.xlu0 %v4862_v58, %s6270_s17 }
 0x29f   : > { %4808 = vst.msk [vmem:[#allocation3 + $0x28] sm:$0xff] %vm4802_vm0, %v4765_v51  ;;  %4134 = vrot.lane.b32.xlu1 %v4862_v58, %s6264_s16 }
 0x2a0   : > { %4937 = vst.msk [vmem:[#allocation3 + $0x28] sm:$0xff] %vm4931_vm9, %v4894_v47  ;;  %v4591_v47 = vld [vmem:[#allocation4 + $0x198] sm:$0xff] }
 0x2a1   : > { %v4379_v52 = vpop.permute.xlu0 %4378  ;;  %v3994_v48 = vpop.permute.xlu1 %3993  ;;  %v4608_v51 = vpack.c.bf16 %v4592_v0, %v4591_v47 }
 0x2a2   : > { %4421 = vst.msk [vmem:[#allocation3 + $0x30] sm:$0xff] %vm4414_vm11, %v4379_v52  ;;  %4649 = vrot.lane.b32.xlu0 %v4605_v1, %s6267_s10  ;;  %v5844_v62 = vpop.f32.mrb[28].mxu0 }
 0x2a3   : > { %4035 = vst.msk [vmem:[#allocation3 + $0x38] sm:$0xff] %vm4027_vm15, %v3994_v48  ;;  %4263 = vrot.lane.b32.xlu1 %v4605_v1, %s6260_s12  ;;  %v3734_v63 = vadd.f32 %v6192_v49, %v5844_v62  ;;  %v3725_v3 = vpop.f32.mrb[29].mxu0  ;;  %v4720_v48 = vld [vmem:[#allocation4 + $0x199] sm:$0xff] }
 0x2a4   : > { %v3726_v13 = vadd.f32 %v6192_v49, %v3725_v3  ;;  %v5845_v20 = vpop.f32.mrb[30].mxu0 }
 0x2a5   : > { %v4508_v53 = vpop.permute.xlu0 %4507  ;;  %v4123_v11 = vpop.permute.xlu1 %4122  ;;  %v3770_v9 = vmax.f32 %v3734_v63, 0.0  ;;  %v3737_v61 = vadd.f32 %v6192_v49, %v5845_v20 }
 0x2a6   : > { %4550 = vst.msk [vmem:[#allocation3 + $0x30] sm:$0xff] %vm4543_vm12, %v4508_v53  ;;  %4778 = vrot.lane.b32.xlu0 %v4734_v57, %s6268_s13  ;;  %v3728_v10 = vpop.f32.mrb[31].mxu0  ;;  %v3768_v15 = vmax.f32 %v3726_v13, 0.0  ;;  %v4721_v53 = vld [vmem:[#allocation4 + $0x1a1] sm:$0xff] }
 0x2a7   : > { %4164 = vst.msk [vmem:[#allocation3 + $0x38] sm:$0xff] %vm4156_vm7, %v4123_v11  ;;  %v4953_v54 = vld [vmem:[#allocation3 + $0x28] sm:$0xff]  ;;  %4392 = vrot.lane.b32.xlu1 %v4734_v57, %s6263_s15  ;;  %v3729_v18 = vadd.f32 %v6192_v49, %v3728_v10  ;;  %v3771_v21 = vmax.f32 %v3737_v61, 0.0 }
 0x2a8   : > { %4680 = vst.msk [vmem:[#allocation3 + $0x30] sm:$0xff] %vm4673_vm4, %v4638_v33  ;;  %5865 = vmatmul.mubr.msk.bf16.gmra.mrb[8].mxu1 %vm5007_vm10, %v4953_v54  ;;  %v4737_v54 = vpack.c.bf16 %v4721_v53, %v4720_v48 }
 0x2a9   : > { %4293 = vst.msk [vmem:[#allocation3 + $0x38] sm:$0xff] %vm4285_vm8, %v4252_v34  ;;  %v3769_v22 = vmax.f32 %v3729_v18, 0.0 }
 0x2aa   : > { %4809 = vst.msk [vmem:[#allocation3 + $0x30] sm:$0xff] %vm4802_vm0, %v4767_v35  ;;  %4907 = vrot.lane.b32.xlu0 %v4863_v5, %s6269_s14 }
 0x2ab   : > { %4422 = vst.msk [vmem:[#allocation3 + $0x38] sm:$0xff] %vm4414_vm11, %v4381_v36  ;;  %4521 = vrot.lane.b32.xlu1 %v4863_v5, %s6270_s17 }
 0x2ac   : > { %4938 = vst.msk [vmem:[#allocation3 + $0x30] sm:$0xff] %vm4931_vm9, %v4896_v39 }
 0x2ad   : > { %4551 = vst.msk [vmem:[#allocation3 + $0x38] sm:$0xff] %vm4543_vm12, %v4510_v40  ;;  %v4642_v4 = vpop.permute.xlu0 %4641  ;;  %v4256_v14 = vpop.permute.xlu1 %4255 }
 0x2ae   : > { %3849 = vst.msk [vmem:[#allocation4 + $0x181] sm:$0xff] %vm3772_vm5, %v3770_v9  ;;  %3847 = vst.msk [vmem:[#allocation4 + $0x169] sm:$0xff] %vm3772_vm5, %v3768_v15 }
 0x2af   : > { %3850 = vst.msk [vmem:[#allocation4 + $0x189] sm:$0xff] %vm3772_vm5, %v3771_v21  ;;  %3848 = vst.msk [vmem:[#allocation4 + $0x171] sm:$0xff] %vm3772_vm5, %v3769_v22 }
 0x2b1   : > { %v4771_v23 = vpop.permute.xlu0 %4770  ;;  %v4385_v24 = vpop.permute.xlu1 %4384 }
 0x2b3   : > { %v4954_v8 = vld [vmem:[#allocation3 + $0x30] sm:$0xff] }
 0x2b4   : > { %5868 = vmatprep.mubr.msk.bf16.mxu1 %vm5007_vm10, %v4954_v8 }
 0x2b5   : > { %v4900_v25 = vpop.permute.xlu0 %4899  ;;  %v4514_v26 = vpop.permute.xlu1 %4513  ;;  %v4587_v28 = vld [vmem:[#allocation4 + $0x168] sm:$0xff]  ;;  %v4589_v41 = vld [vmem:[#allocation4 + $0x180] sm:$0xff] }
 0x2b6   : > { %v4845_v29 = vld [vmem:[#allocation4 + $0x16a] sm:$0xff]  ;;  %v4846_v56 = vld [vmem:[#allocation4 + $0x172] sm:$0xff]  ;;  %v4718_v42 = vld [vmem:[#allocation4 + $0x181] sm:$0xff] }
 0x2b7   : > { %v4588_v30 = vld [vmem:[#allocation4 + $0x170] sm:$0xff]  ;;  %v4864_v32 = vpack.c.bf16 %v4846_v56, %v4845_v29  ;;  %v4590_v1 = vld [vmem:[#allocation4 + $0x188] sm:$0xff] }
 0x2b8   : > { %v4606_v43 = vpack.c.bf16 %v4588_v30, %v4587_v28  ;;  %v4716_v33 = vld [vmem:[#allocation4 + $0x169] sm:$0xff]  ;;  %v4717_v34 = vld [vmem:[#allocation4 + $0x171] sm:$0xff]  ;;  %v4607_v58 = vpack.c.bf16 %v4590_v1, %v4589_v41 }
 0x2b9   : > { %v4129_v17 = vpop.permute.xlu0 %4128  ;;  %v4000_v31 = vpop.permute.xlu1 %3999  ;;  %4909 = vrot.lane.b32.xlu0 %v4864_v32, %s6269_s14  ;;  %v4735_v36 = vpack.c.bf16 %v4717_v34, %v4716_v33  ;;  %v4719_v16 = vld [vmem:[#allocation4 + $0x189] sm:$0xff]  ;;  %v7539_v33 = vld [vmem:[%s7722_s4] ss:$0 sm:$0xff] }
 0x2ba   : > { %4038 = vst.msk [vmem:[#allocation3 + $0x50] sm:$0xff] %vm4027_vm15, %v4000_v31  ;;  %4651 = vrot.lane.b32.xlu1 %v4606_v43, %s6267_s10  ;;  %v4736_v6 = vpack.c.bf16 %v4719_v16, %v4718_v42  ;;  %v4847_v44 = vld [vmem:[#allocation4 + $0x182] sm:$0xff]  ;;  %v4848_v45 = vld [vmem:[#allocation4 + $0x18a] sm:$0xff] }
 0x2bb   : > { %4167 = vst.msk [vmem:[#allocation3 + $0x50] sm:$0xff] %vm4156_vm7, %v4129_v17  ;;  %v4865_v50 = vpack.c.bf16 %v4848_v45, %v4847_v44 }
 0x2bc   : > { %3914 = vst.msk [vmem:[#allocation3 + $0x78] sm:$0xff] %vm3772_vm5, %v4606_v43 }
 0x2bd   : > { %v4898_v19 = vpop.permute.xlu0 %4897  ;;  %v4640_v35 = vpop.permute.xlu1 %4639  ;;  %4136 = vrot.lane.b32.xlu0 %v4863_v5, %s6264_s16 }
 0x2be   : > { %4681 = vst.msk [vmem:[#allocation3 + $0x38] sm:$0xff] %vm4673_vm4, %v4640_v35  ;;  %4780 = vrot.lane.b32.xlu1 %v4735_v36, %s6268_s13 }
 0x2c1   : > { %v4254_v37 = vpop.permute.xlu0 %4253  ;;  %v4769_v38 = vpop.permute.xlu1 %4768  ;;  %4265 = vrot.lane.b32.xlu0 %v4606_v43, %s6260_s12 }
 0x2c2   : > { %4294 = vst.msk [vmem:[#allocation3 + $0x40] sm:$0xff] %vm4285_vm8, %v4254_v37  ;;  %4007 = vrot.lane.b32.xlu1 %v4734_v57, %s6259_s11  ;;  %v4850_v57 = vld [vmem:[#allocation4 + $0x1a2] sm:$0xff] }
 0x2c3   : > { %4810 = vst.msk [vmem:[#allocation3 + $0x38] sm:$0xff] %vm4802_vm0, %v4769_v38  ;;  %v4866_v60 = vpack.c.bf16 %v4850_v57, %v4849_v7 }
 0x2c4   : > { %4939 = vst.msk [vmem:[#allocation3 + $0x38] sm:$0xff] %vm4931_vm9, %v4898_v19 }
 0x2c5   : > { %v4383_v2 = vpop.permute.xlu0 %4382  ;;  %v3998_v39 = vpop.permute.xlu1 %3997  ;;  %4394 = vrot.lane.b32.xlu0 %v4735_v36, %s6263_s15 }
 0x2c6   : > { %4423 = vst.msk [vmem:[#allocation3 + $0x40] sm:$0xff] %vm4414_vm11, %v4383_v2  ;;  %4009 = vrot.lane.b32.xlu1 %v4735_v36, %s6259_s11 }
 0x2c7   : > { %4037 = vst.msk [vmem:[#allocation3 + $0x48] sm:$0xff] %vm4027_vm15, %v3998_v39 }
 0x2c9   : > { %v4512_v40 = vpop.permute.xlu0 %4511  ;;  %v4127_v12 = vpop.permute.xlu1 %4126  ;;  %4523 = vrot.lane.b32.xlu0 %v4864_v32, %s6270_s17 }
 0x2ca   : > { %4552 = vst.msk [vmem:[#allocation3 + $0x40] sm:$0xff] %vm4543_vm12, %v4512_v40  ;;  %4138 = vrot.lane.b32.xlu1 %v4864_v32, %s6264_s16  ;;  %s215_s16 = sand.u32 1, %s6247_s19  }
 0x2cb   : > { %4682 = vst.msk [vmem:[#allocation3 + $0x40] sm:$0xff] %vm4673_vm4, %v4642_v4  ;;  %v4955_v27 = vld [vmem:[#allocation3 + $0x38] sm:$0xff]  ;;  %s7676_s9 = scalar_lea.sflag [#allocation6], %s215_s16 }
 0x2cc   : > { %4166 = vst.msk [vmem:[#allocation3 + $0x48] sm:$0xff] %vm4156_vm7, %v4127_v12  ;;  %5869 = vmatmul.mubr.msk.bf16.gmra.mrb[12].mxu1 %vm5007_vm10, %v4955_v27 }
 0x2cd   : > { %4811 = vst.msk [vmem:[#allocation3 + $0x40] sm:$0xff] %vm4802_vm0, %v4771_v23  ;;  %4653 = vrot.lane.b32.xlu0 %v4607_v58, %s6267_s10 }
 0x2ce   : > { %4295 = vst.msk [vmem:[#allocation3 + $0x48] sm:$0xff] %vm4285_vm8, %v4256_v14  ;;  %4267 = vrot.lane.b32.xlu1 %v4607_v58, %s6260_s12 }
 0x2cf   : > { %4940 = vst.msk [vmem:[#allocation3 + $0x40] sm:$0xff] %vm4931_vm9, %v4900_v25 }
 0x2d0   : > { %4424 = vst.msk [vmem:[#allocation3 + $0x48] sm:$0xff] %vm4414_vm11, %v4385_v24 }
 0x2d1   : > { %4553 = vst.msk [vmem:[#allocation3 + $0x48] sm:$0xff] %vm4543_vm12, %v4514_v26  ;;  %4782 = vrot.lane.b32.xlu0 %v4736_v6, %s6268_s13 }
 0x2d2   : > { %4396 = vrot.lane.b32.xlu1 %v4736_v6, %s6263_s15  ;;  %v4260_v52 = vpop.permute.xlu1 %4259 }
 0x2d5   : > { %4911 = vrot.lane.b32.xlu0 %v4865_v50, %s6269_s14 }
 0x2d6   : > { %v4956_v46 = vld [vmem:[#allocation3 + $0x40] sm:$0xff]  ;;  %4525 = vrot.lane.b32.xlu1 %v4865_v50, %s6270_s17  ;;  %v4389_v55 = vpop.permute.xlu1 %4388 }
 0x2d7   : > { %5872 = vmatprep.mubr.msk.bf16.mxu1 %vm5007_vm10, %v4956_v46 }
 0x2da   : > { %4655 = vrot.lane.b32.xlu1 %v4608_v51, %s6267_s10  ;;  %s5476_s10 = sshll.u32 %s215_s16, 6 }
 0x2db   : > { %v4902_v11 = vpop.permute.xlu0 %4901 }
 0x2dc   : > { %v4644_v62 = vpop.permute.xlu1 %4643 }
 0x2dd   : > { %4683 = vst.msk [vmem:[#allocation3 + $0x48] sm:$0xff] %vm4673_vm4, %v4644_v62 }
 0x2de   : > { %4784 = vrot.lane.b32.xlu1 %v4737_v54, %s6268_s13  ;;  %s7566_s13 = scalar_lea.vmem [#allocation5], %s5476_s10 }
 0x2df   : > { %v4258_v59 = vpop.permute.xlu0 %4257  ;;  %s5410_s17 = sshll.u32 %s7566_s13, 4  ;;  %s7670_s17 = int_to_ptr.vmem [resolvable:$true] %s5410_s17 }
 0x2e0   : > { %4296 = vst.msk [vmem:[#allocation3 + $0x50] sm:$0xff] %vm4285_vm8, %v4258_v59  ;;  %v4773_v63 = vpop.permute.xlu1 %4772  ;;  %p6200_p0 = scmp.lt.s32.totalorder %s7670_s17, %s6198_s25 }
 0x2e1   : > { %4812 = vst.msk [vmem:[#allocation3 + $0x48] sm:$0xff] %vm4802_vm0, %v4773_v63 }
 0x2e2   : > { %4913 = vrot.lane.b32.xlu1 %v4866_v60, %s6269_s14  ;;  %4941 = vst.msk [vmem:[#allocation3 + $0x48] sm:$0xff] %vm4931_vm9, %v4902_v11  ;;  %s5767_s14 = sshll.u32 %s6324_s22, 10  ;;  %s6193_s22 = scalar_lea.vmem %s7670_s17, 1024 }
 0x2e3   : > { %v4387_v49 = vpop.permute.xlu0 %4386  ;;  %s7668_s8 = scalar_lea.hbm %s7723_s5, %s5767_s14  ;;  %p6194_p11 = scmp.ne.s32.totalorder %s7670_s17, %s6193_s22 }
 0x2e4   : > { %4425 = vst.msk [vmem:[#allocation3 + $0x50] sm:$0xff] %vm4414_vm11, %v4387_v49  ;;  %v4002_v5 = vpop.permute.xlu1 %4001  ;;  %p6201_p1 = scmp.lt.s32.totalorder %s6199_s26, %s6193_s22 }
 0x2e5   : > { %4039 = vst.msk [vmem:[#allocation3 + $0x58] sm:$0xff] %vm4027_vm15, %v4002_v5  ;;  %p6195_p12 = pnand %p6194_p11, %p6341_p5 }
 0x2e6   : > { %p6202_p2 = por %p6201_p1, %p6200_p0 }
 0x2e7   : > { %v4516_v3 = vpop.permute.xlu0 %4515  ;;  %p6196_p13 = pneg %p6195_p12 }
 0x2e8   : > { %4554 = vst.msk [vmem:[#allocation3 + $0x50] sm:$0xff] %vm4543_vm12, %v4516_v3  ;;  %v4131_v20 = vpop.permute.xlu1 %4130 }
 0x2e9   : > { %4168 = vst.msk [vmem:[#allocation3 + $0x58] sm:$0xff] %vm4156_vm7, %v4131_v20  ;;  %v4957_v8 = vld [vmem:[#allocation3 + $0x48] sm:$0xff]  ;;  %p6203_p3 = pnand %p6202_p2, %p6196_p13 }
 0x2ea   : > { %4297 = vst.msk [vmem:[#allocation3 + $0x58] sm:$0xff] %vm4285_vm8, %v4260_v52  ;;  %5873 = vmatmul.mubr.msk.bf16.gmra.mrb[16].mxu1 %vm5007_vm10, %v4957_v8 }
 0x2eb   : > { %v4646_v13 = vpop.permute.xlu0 %4645  ;;  %4426 = vst.msk [vmem:[#allocation3 + $0x58] sm:$0xff] %vm4414_vm11, %v4389_v55 }
 0x2ec   : > { %4684 = vst.msk [vmem:[#allocation3 + $0x50] sm:$0xff] %vm4673_vm4, %v4646_v13  ;;  %v4518_v9 = vpop.permute.xlu1 %4517 }
 0x2ed   : > { %4555 = vst.msk [vmem:[#allocation3 + $0x58] sm:$0xff] %vm4543_vm12, %v4518_v9 }
 0x2ef   : > { %v4775_v4 = vpop.permute.xlu0 %4774 }
 0x2f0   : > { %4813 = vst.msk [vmem:[#allocation3 + $0x50] sm:$0xff] %vm4802_vm0, %v4775_v4 }
 0x2f3   : > { %v4904_v61 = vpop.permute.xlu0 %4903 }
 0x2f4   : > { %4942 = vst.msk [vmem:[#allocation3 + $0x50] sm:$0xff] %vm4931_vm9, %v4904_v61 }
 0x2fb   : > { %v4958_v10 = vld [vmem:[#allocation3 + $0x50] sm:$0xff] }
 0x2fc   : > { %5876 = vmatprep.mubr.msk.bf16.mxu1 %vm5007_vm10, %v4958_v10 }
 0x300   : > { %v4906_v14 = vpop.permute.xlu0 %4905 }
 0x301   : > { %v4648_v15 = vpop.permute.xlu1 %4647 }
 0x302   : > { %4685 = vst.msk [vmem:[#allocation3 + $0x58] sm:$0xff] %vm4673_vm4, %v4648_v15 }
 0x304   : > { %v4133_v18 = vpop.permute.xlu0 %4132 }
 0x305   : > { %v4777_v21 = vpop.permute.xlu1 %4776 }
 0x306   : > { %4814 = vst.msk [vmem:[#allocation3 + $0x58] sm:$0xff] %vm4802_vm0, %v4777_v21 }
 0x307   : > { %4943 = vst.msk [vmem:[#allocation3 + $0x58] sm:$0xff] %vm4931_vm9, %v4906_v14 }
 0x308   : > { %v4262_v22 = vpop.permute.xlu0 %4261 }
 0x309   : > { %v4004_v23 = vpop.permute.xlu1 %4003 }
 0x30a   : > { %4040 = vst.msk [vmem:[#allocation3 + $0x60] sm:$0xff] %vm4027_vm15, %v4004_v23 }
 0x30b   : > { %4169 = vst.msk [vmem:[#allocation3 + $0x60] sm:$0xff] %vm4156_vm7, %v4133_v18 }
 0x30c   : > { %4298 = vst.msk [vmem:[#allocation3 + $0x60] sm:$0xff] %vm4285_vm8, %v4262_v22  ;;  %v4391_v24 = vpop.permute.xlu0 %4390 }
 0x30d   : > { %v4006_v25 = vpop.permute.xlu1 %4005  ;;  %4427 = vst.msk [vmem:[#allocation3 + $0x60] sm:$0xff] %vm4414_vm11, %v4391_v24 }
 0x30e   : > { %4041 = vst.msk [vmem:[#allocation3 + $0x68] sm:$0xff] %vm4027_vm15, %v4006_v25  ;;  %v4959_v26 = vld [vmem:[#allocation3 + $0x58] sm:$0xff] }
 0x30f   : > { %5877 = vmatmul.mubr.msk.bf16.gmra.mrb[20].mxu1 %vm5007_vm10, %v4959_v26 }
 0x310   : > { %v4520_v28 = vpop.permute.xlu0 %4519 }
 0x311   : > { %v4135_v17 = vpop.permute.xlu1 %4134  ;;  %4556 = vst.msk [vmem:[#allocation3 + $0x60] sm:$0xff] %vm4543_vm12, %v4520_v28 }
 0x312   : > { %4170 = vst.msk [vmem:[#allocation3 + $0x68] sm:$0xff] %vm4156_vm7, %v4135_v17 }
 0x314   : > { %v4650_v29 = vpop.permute.xlu0 %4649 }
 0x315   : > { %v4264_v56 = vpop.permute.xlu1 %4263  ;;  %4686 = vst.msk [vmem:[#allocation3 + $0x60] sm:$0xff] %vm4673_vm4, %v4650_v29 }
 0x316   : > { %4299 = vst.msk [vmem:[#allocation3 + $0x68] sm:$0xff] %vm4285_vm8, %v4264_v56 }
 0x318   : > { %v4779_v30 = vpop.permute.xlu0 %4778 }
 0x319   : > { %v4393_v31 = vpop.permute.xlu1 %4392  ;;  %4815 = vst.msk [vmem:[#allocation3 + $0x60] sm:$0xff] %vm4802_vm0, %v4779_v30 }
 0x31a   : > { %4428 = vst.msk [vmem:[#allocation3 + $0x68] sm:$0xff] %vm4414_vm11, %v4393_v31 }
 0x31c   : > { %v4908_v32 = vpop.permute.xlu0 %4907 }
 0x31d   : > { %v4522_v43 = vpop.permute.xlu1 %4521  ;;  %4944 = vst.msk [vmem:[#allocation3 + $0x60] sm:$0xff] %vm4931_vm9, %v4908_v32 }
 0x31e   : > { %4557 = vst.msk [vmem:[#allocation3 + $0x68] sm:$0xff] %vm4543_vm12, %v4522_v43 }
 0x324   : > { %v4960_v19 = vld [vmem:[#allocation3 + $0x60] sm:$0xff] }
 0x325   : > { %5880 = vmatprep.mubr.msk.bf16.mxu1 %vm5007_vm10, %v4960_v19 }
 0x32b   : > { %v5858_v34 = vpop.f32.mrb[0].mxu1  ;;  %v4910_v58 = vpop.permute.xlu0 %4909 }
 0x32c   : > { %v5103_v35 = vadd.f32 %v5858_v34, %v7539_v33  ;;  %v5094_v36 = vpop.f32.mrb[1].mxu1  ;;  %v4652_v42 = vpop.permute.xlu1 %4651 }
 0x32d   : > { %v5095_v37 = vadd.f32 %v7539_v33, %v5094_v36  ;;  %v5859_v38 = vpop.f32.mrb[2].mxu1  ;;  %4687 = vst.msk [vmem:[#allocation3 + $0x68] sm:$0xff] %vm4673_vm4, %v4652_v42 }
 0x32e   : > { %v5223_v2 = vmax.f32 %v5103_v35, 0.0  ;;  %v5106_v39 = vadd.f32 %v5859_v38, %v7539_v33  ;;  %v5097_v40 = vpop.f32.mrb[3].mxu1 }
 0x32f   : > { %v5221_v12 = vmax.f32 %v5095_v37, 0.0  ;;  %v5098_v27 = vadd.f32 %v7539_v33, %v5097_v40  ;;  %v4137_v16 = vpop.permute.xlu0 %4136 }
 0x330   : > { %5255 = vst.msk [vmem:[#allocation4 + $0x18] sm:$0xff] %vm3772_vm5, %v5223_v2  ;;  %v5224_v41 = vmax.f32 %v5106_v39, 0.0  ;;  %v4781_v6 = vpop.permute.xlu1 %4780 }
 0x331   : > { %5253 = vst.msk [vmem:[#allocation4] sm:$0xff] %vm3772_vm5, %v5221_v12  ;;  %v5222_v1 = vmax.f32 %v5098_v27, 0.0 }
 0x332   : > { %5256 = vst.msk [vmem:[#allocation4 + $0x20] sm:$0xff] %vm3772_vm5, %v5224_v41 }
 0x333   : > { %5254 = vst.msk [vmem:[#allocation4 + $0x8] sm:$0xff] %vm3772_vm5, %v5222_v1  ;;  %v4266_v50 = vpop.permute.xlu0 %4265 }
 0x334   : > { %4816 = vst.msk [vmem:[#allocation3 + $0x68] sm:$0xff] %vm4802_vm0, %v4781_v6  ;;  %v4008_v51 = vpop.permute.xlu1 %4007 }
 0x335   : > { %4945 = vst.msk [vmem:[#allocation3 + $0x68] sm:$0xff] %vm4931_vm9, %v4910_v58 }
 0x336   : > { %4042 = vst.msk [vmem:[#allocation3 + $0x70] sm:$0xff] %vm4027_vm15, %v4008_v51 }
 0x337   : > { %v5301_v44 = vld [vmem:[#allocation4 + $0x18] sm:$0xff]  ;;  %4171 = vst.msk [vmem:[#allocation3 + $0x70] sm:$0xff] %vm4156_vm7, %v4137_v16  ;;  %v4395_v48 = vpop.permute.xlu0 %4394 }
 0x338   : > { %v5285_v45 = vld [vmem:[#allocation4] sm:$0xff]  ;;  %4300 = vst.msk [vmem:[#allocation3 + $0x70] sm:$0xff] %vm4285_vm8, %v4266_v50  ;;  %v4010_v53 = vpop.permute.xlu1 %4009 }
 0x339   : > { %v5317_v46 = vmax.f32 %v5285_v45, %v5301_v44  ;;  %v5302_v47 = vld [vmem:[#allocation4 + $0x20] sm:$0xff]  ;;  %4429 = vst.msk [vmem:[#allocation3 + $0x70] sm:$0xff] %vm4414_vm11, %v4395_v48 }
 0x33a   : > { %v5286_v0 = vld [vmem:[#allocation4 + $0x8] sm:$0xff]  ;;  %4043 = vst.msk [vmem:[#allocation3 + $0x78] sm:$0xff] %vm4027_vm15, %v4010_v53 }
 0x33b   : > { %5333 = vst.msk [vmem:[#allocation4] sm:$0xff] %vm3772_vm5, %v5317_v46  ;;  %v5318_v52 = vmax.f32 %v5286_v0, %v5302_v47  ;;  %v4524_v54 = vpop.permute.xlu0 %4523 }
 0x33c   : > { %v4961_v11 = vld [vmem:[#allocation3 + $0x68] sm:$0xff]  ;;  %v4139_v55 = vpop.permute.xlu1 %4138  ;;  %4558 = vst.msk [vmem:[#allocation3 + $0x70] sm:$0xff] %vm4543_vm12, %v4524_v54 }
 0x33d   : > { %5334 = vst.msk [vmem:[#allocation4 + $0x8] sm:$0xff] %vm3772_vm5, %v5318_v52  ;;  %5881 = vmatmul.mubr.msk.bf16.gmra.mrb[24].mxu1 %vm5007_vm10, %v4961_v11 }
 0x33e   : > { %4172 = vst.msk [vmem:[#allocation3 + $0x78] sm:$0xff] %vm4156_vm7, %v4139_v55 }
 0x33f   : > { %v4654_v60 = vpop.permute.xlu0 %4653 }
 0x340   : > { %v4268_v62 = vpop.permute.xlu1 %4267  ;;  %4688 = vst.msk [vmem:[#allocation3 + $0x70] sm:$0xff] %vm4673_vm4, %v4654_v60 }
 0x341   : > { %4301 = vst.msk [vmem:[#allocation3 + $0x78] sm:$0xff] %vm4285_vm8, %v4268_v62 }
 0x343   : > { %v4783_v49 = vpop.permute.xlu0 %4782 }
 0x344   : > { %v5349_v7 = vld [vmem:[#allocation4] ss:$2 sm:$0xff]  ;;  %v5365_v57 = vld [vmem:[#allocation4 + $0x1] ss:$2 sm:$0xff]  ;;  %v4397_v63 = vpop.permute.xlu1 %4396  ;;  %4817 = vst.msk [vmem:[#allocation3 + $0x70] sm:$0xff] %vm4802_vm0, %v4783_v49 }
 0x345   : > { %v5380_v59 = vmax.f32 %v5349_v7, %v5365_v57  ;;  %4430 = vst.msk [vmem:[#allocation3 + $0x78] sm:$0xff] %vm4414_vm11, %v4397_v63 }
 0x347   : > { %5388 = vst.msk [vmem:[%s7566_s13] sm:$0xff] %vm3772_vm5, %v5380_v59  ;;  %v4912_v3 = vpop.permute.xlu0 %4911 }
 0x348   : > { %v4526_v5 = vpop.permute.xlu1 %4525  ;;  %4946 = vst.msk [vmem:[#allocation3 + $0x70] sm:$0xff] %vm4931_vm9, %v4912_v3 }
 0x349   : > { %4559 = vst.msk [vmem:[#allocation3 + $0x78] sm:$0xff] %vm4543_vm12, %v4526_v5 }
 0x34c   : > { %v4656_v13 = vpop.permute.xlu1 %4655  ;;  %v5862_v20 = vpop.f32.mrb[4].mxu1 }
 0x34d   : > { %4689 = vst.msk [vmem:[#allocation3 + $0x78] sm:$0xff] %vm4673_vm4, %v4656_v13  ;;  %v5119_v4 = vadd.f32 %v5862_v20, %v7539_v33  ;;  %v5110_v8 = vpop.f32.mrb[5].mxu1 }
 0x34e   : > { %v5111_v10 = vadd.f32 %v7539_v33, %v5110_v8  ;;  %v5863_v14 = vpop.f32.mrb[6].mxu1 }
 0x34f   : > { %v4962_v61 = vld [vmem:[#allocation3 + $0x70] sm:$0xff]  ;;  %v5227_v15 = vmax.f32 %v5119_v4, 0.0  ;;  %v5122_v18 = vadd.f32 %v5863_v14, %v7539_v33  ;;  %v5113_v21 = vpop.f32.mrb[7].mxu1 }
 0x350   : > { %v4785_v9 = vpop.permute.xlu1 %4784  ;;  %5884 = vmatprep.mubr.msk.bf16.mxu1 %vm5007_vm10, %v4962_v61  ;;  %v5225_v22 = vmax.f32 %v5111_v10, 0.0  ;;  %v5114_v23 = vadd.f32 %v7539_v33, %v5113_v21 }
 0x351   : > { %4818 = vst.msk [vmem:[#allocation3 + $0x78] sm:$0xff] %vm4802_vm0, %v4785_v9  ;;  %v5228_v24 = vmax.f32 %v5122_v18, 0.0 }
 0x352   : > { %5259 = vst.msk [vmem:[#allocation4 + $0x48] sm:$0xff] %vm3772_vm5, %v5227_v15  ;;  %5257 = vst.msk [vmem:[#allocation4 + $0x30] sm:$0xff] %vm3772_vm5, %v5225_v22  ;;  %v5226_v26 = vmax.f32 %v5114_v23, 0.0 }
 0x353   : > { %5260 = vst.msk [vmem:[#allocation4 + $0x50] sm:$0xff] %vm3772_vm5, %v5228_v24 }
 0x354   : > { %v4914_v25 = vpop.permute.xlu1 %4913  ;;  %5258 = vst.msk [vmem:[#allocation4 + $0x38] sm:$0xff] %vm3772_vm5, %v5226_v26 }
 0x355   : > { %4947 = vst.msk [vmem:[#allocation3 + $0x78] sm:$0xff] %vm4931_vm9, %v4914_v25 }
 0x359   : > { %v5303_v28 = vld [vmem:[#allocation4 + $0x48] sm:$0xff]  ;;  %v5287_v17 = vld [vmem:[#allocation4 + $0x30] sm:$0xff] }
 0x35a   : > { %v5304_v56 = vld [vmem:[#allocation4 + $0x50] sm:$0xff]  ;;  %v5319_v30 = vmax.f32 %v5287_v17, %v5303_v28 }
 0x35b   : > { %v5288_v31 = vld [vmem:[#allocation4 + $0x38] sm:$0xff] }
 0x35c   : > { %v4963_v29 = vld [vmem:[#allocation3 + $0x78] sm:$0xff]  ;;  %v5320_v32 = vmax.f32 %v5288_v31, %v5304_v56  ;;  %5335 = vst.msk [vmem:[#allocation4 + $0x18] sm:$0xff] %vm3772_vm5, %v5319_v30 }
 0x35d   : > { %5885 = vmatmul.mubr.msk.bf16.gmra.mrb[28].mxu1 %vm5007_vm10, %v4963_v29 }
 0x35e   : > { %5336 = vst.msk [vmem:[#allocation4 + $0x20] sm:$0xff] %vm3772_vm5, %v5320_v32 }
 0x365   : > { %v5351_v43 = vld [vmem:[#allocation4 + $0x18] ss:$2 sm:$0xff]  ;;  %v5367_v34 = vld [vmem:[#allocation4 + $0x19] ss:$2 sm:$0xff] }
 0x366   : > { %v5381_v19 = vmax.f32 %v5351_v43, %v5367_v34 }
 0x368   : > { %5389 = vst.msk [vmem:[%s7566_s13 + $0x8] sm:$0xff] %vm3772_vm5, %v5381_v19 }
 0x37b   : > { %v5866_v35 = vpop.f32.mrb[8].mxu1 }
 0x37c   : > { %v5135_v36 = vadd.f32 %v5866_v35, %v7539_v33  ;;  %v5126_v37 = vpop.f32.mrb[9].mxu1 }
 0x37d   : > { %v5127_v38 = vadd.f32 %v7539_v33, %v5126_v37  ;;  %v5867_v2 = vpop.f32.mrb[10].mxu1 }
 0x37e   : > { %v5231_v39 = vmax.f32 %v5135_v36, 0.0  ;;  %v5138_v40 = vadd.f32 %v5867_v2, %v7539_v33  ;;  %v5129_v12 = vpop.f32.mrb[11].mxu1 }
 0x37f   : > { %v5229_v27 = vmax.f32 %v5127_v38, 0.0  ;;  %v5130_v41 = vadd.f32 %v7539_v33, %v5129_v12 }
 0x380   : > { %5263 = vst.msk [vmem:[#allocation4 + $0x78] sm:$0xff] %vm3772_vm5, %v5231_v39  ;;  %v5232_v1 = vmax.f32 %v5138_v40, 0.0 }
 0x381   : > { %5261 = vst.msk [vmem:[#allocation4 + $0x60] sm:$0xff] %vm3772_vm5, %v5229_v27  ;;  %v5230_v58 = vmax.f32 %v5130_v41, 0.0 }
 0x382   : > { %5264 = vst.msk [vmem:[#allocation4 + $0x80] sm:$0xff] %vm3772_vm5, %v5232_v1 }
 0x383   : > { %5262 = vst.msk [vmem:[#allocation4 + $0x68] sm:$0xff] %vm3772_vm5, %v5230_v58 }
 0x387   : > { %v5305_v42 = vld [vmem:[#allocation4 + $0x78] sm:$0xff] }
 0x388   : > { %v5289_v16 = vld [vmem:[#allocation4 + $0x60] sm:$0xff] }
 0x389   : > { %v5306_v6 = vld [vmem:[#allocation4 + $0x80] sm:$0xff]  ;;  %v5321_v44 = vmax.f32 %v5289_v16, %v5305_v42 }
 0x38a   : > { %v5290_v45 = vld [vmem:[#allocation4 + $0x68] sm:$0xff] }
 0x38b   : > { %v5322_v46 = vmax.f32 %v5290_v45, %v5306_v6  ;;  %5337 = vst.msk [vmem:[#allocation4 + $0x30] sm:$0xff] %vm3772_vm5, %v5321_v44 }
 0x38d   : > { %5338 = vst.msk [vmem:[#allocation4 + $0x38] sm:$0xff] %vm3772_vm5, %v5322_v46 }
 0x394   : > { %v5353_v47 = vld [vmem:[#allocation4 + $0x30] ss:$2 sm:$0xff]  ;;  %v5369_v0 = vld [vmem:[#allocation4 + $0x31] ss:$2 sm:$0xff] }
 0x395   : > { %v5382_v50 = vmax.f32 %v5353_v47, %v5369_v0 }
 0x397   : > { %5390 = vst.msk [vmem:[%s7566_s13 + $0x10] sm:$0xff] %vm3772_vm5, %v5382_v50 }
 0x39f   : > { %v5870_v51 = vpop.f32.mrb[12].mxu1 }
 0x3a0   : > { %v5151_v52 = vadd.f32 %v5870_v51, %v7539_v33  ;;  %v5142_v48 = vpop.f32.mrb[13].mxu1 }
 0x3a1   : > { %v5143_v53 = vadd.f32 %v7539_v33, %v5142_v48  ;;  %v5871_v11 = vpop.f32.mrb[14].mxu1 }
 0x3a2   : > { %v5235_v54 = vmax.f32 %v5151_v52, 0.0  ;;  %v5154_v55 = vadd.f32 %v5871_v11, %v7539_v33  ;;  %v5145_v7 = vpop.f32.mrb[15].mxu1 }
 0x3a3   : > { %v5233_v57 = vmax.f32 %v5143_v53, 0.0  ;;  %v5146_v59 = vadd.f32 %v7539_v33, %v5145_v7 }
 0x3a4   : > { %5267 = vst.msk [vmem:[#allocation4 + $0xa8] sm:$0xff] %vm3772_vm5, %v5235_v54  ;;  %v5236_v60 = vmax.f32 %v5154_v55, 0.0 }
 0x3a5   : > { %5265 = vst.msk [vmem:[#allocation4 + $0x90] sm:$0xff] %vm3772_vm5, %v5233_v57  ;;  %v5234_v62 = vmax.f32 %v5146_v59, 0.0 }
 0x3a6   : > { %5268 = vst.msk [vmem:[#allocation4 + $0xb0] sm:$0xff] %vm3772_vm5, %v5236_v60 }
 0x3a7   : > { %5266 = vst.msk [vmem:[#allocation4 + $0x98] sm:$0xff] %vm3772_vm5, %v5234_v62 }
 0x3ab   : > { %v5307_v49 = vld [vmem:[#allocation4 + $0xa8] sm:$0xff] }
 0x3ac   : > { %v5291_v63 = vld [vmem:[#allocation4 + $0x90] sm:$0xff] }
 0x3ad   : > { %v5308_v3 = vld [vmem:[#allocation4 + $0xb0] sm:$0xff]  ;;  %v5323_v5 = vmax.f32 %v5291_v63, %v5307_v49 }
 0x3ae   : > { %v5292_v13 = vld [vmem:[#allocation4 + $0x98] sm:$0xff] }
 0x3af   : > { %v5324_v20 = vmax.f32 %v5292_v13, %v5308_v3  ;;  %5339 = vst.msk [vmem:[#allocation4 + $0x48] sm:$0xff] %vm3772_vm5, %v5323_v5 }
 0x3b1   : > { %5340 = vst.msk [vmem:[#allocation4 + $0x50] sm:$0xff] %vm3772_vm5, %v5324_v20 }
 0x3b8   : > { %v5355_v4 = vld [vmem:[#allocation4 + $0x48] ss:$2 sm:$0xff]  ;;  %v5371_v8 = vld [vmem:[#allocation4 + $0x49] ss:$2 sm:$0xff] }
 0x3b9   : > { %v5383_v9 = vmax.f32 %v5355_v4, %v5371_v8 }
 0x3bb   : > { %5391 = vst.msk [vmem:[%s7566_s13 + $0x18] sm:$0xff] %vm3772_vm5, %v5383_v9 }
 0x3bd   : > { %v5874_v61 = vpop.f32.mrb[16].mxu1 }
 0x3be   : > { %v5167_v10 = vadd.f32 %v5874_v61, %v7539_v33  ;;  %v5158_v14 = vpop.f32.mrb[17].mxu1 }
 0x3bf   : > { %v5159_v15 = vadd.f32 %v7539_v33, %v5158_v14  ;;  %v5875_v18 = vpop.f32.mrb[18].mxu1 }
 0x3c0   : > { %v5239_v21 = vmax.f32 %v5167_v10, 0.0  ;;  %v5170_v22 = vadd.f32 %v5875_v18, %v7539_v33  ;;  %v5161_v23 = vpop.f32.mrb[19].mxu1 }
 0x3c1   : > { %v5237_v24 = vmax.f32 %v5159_v15, 0.0  ;;  %v5162_v25 = vadd.f32 %v7539_v33, %v5161_v23 }
 0x3c2   : > { %5271 = vst.msk [vmem:[#allocation4 + $0xd8] sm:$0xff] %vm3772_vm5, %v5239_v21  ;;  %v5240_v26 = vmax.f32 %v5170_v22, 0.0 }
 0x3c3   : > { %5269 = vst.msk [vmem:[#allocation4 + $0xc0] sm:$0xff] %vm3772_vm5, %v5237_v24  ;;  %v5238_v28 = vmax.f32 %v5162_v25, 0.0 }
 0x3c4   : > { %5272 = vst.msk [vmem:[#allocation4 + $0xe0] sm:$0xff] %vm3772_vm5, %v5240_v26 }
 0x3c5   : > { %5270 = vst.msk [vmem:[#allocation4 + $0xc8] sm:$0xff] %vm3772_vm5, %v5238_v28 }
 0x3c9   : > { %v5309_v17 = vld [vmem:[#allocation4 + $0xd8] sm:$0xff] }
 0x3ca   : > { %v5293_v29 = vld [vmem:[#allocation4 + $0xc0] sm:$0xff] }
 0x3cb   : > { %v5325_v56 = vmax.f32 %v5293_v29, %v5309_v17  ;;  %v5310_v30 = vld [vmem:[#allocation4 + $0xe0] sm:$0xff] }
 0x3cc   : > { %v5294_v31 = vld [vmem:[#allocation4 + $0xc8] sm:$0xff] }
 0x3cd   : > { %v5326_v32 = vmax.f32 %v5294_v31, %v5310_v30  ;;  %5341 = vst.msk [vmem:[#allocation4 + $0x60] sm:$0xff] %vm3772_vm5, %v5325_v56 }
 0x3cf   : > { %5342 = vst.msk [vmem:[#allocation4 + $0x68] sm:$0xff] %vm3772_vm5, %v5326_v32 }
 0x3d6   : > { %v5357_v43 = vld [vmem:[#allocation4 + $0x60] ss:$2 sm:$0xff]  ;;  %v5373_v34 = vld [vmem:[#allocation4 + $0x61] ss:$2 sm:$0xff] }
 0x3d7   : > { %v5384_v19 = vmax.f32 %v5357_v43, %v5373_v34 }
 0x3d9   : > { %5392 = vst.msk [vmem:[%s7566_s13 + $0x20] sm:$0xff] %vm3772_vm5, %v5384_v19 }
 0x3e2   : > { %v5878_v35 = vpop.f32.mrb[20].mxu1 }
 0x3e3   : > { %v5183_v36 = vadd.f32 %v5878_v35, %v7539_v33  ;;  %v5174_v37 = vpop.f32.mrb[21].mxu1 }
 0x3e4   : > { %v5175_v38 = vadd.f32 %v7539_v33, %v5174_v37  ;;  %v5879_v2 = vpop.f32.mrb[22].mxu1 }
 0x3e5   : > { %v5243_v39 = vmax.f32 %v5183_v36, 0.0  ;;  %v5186_v40 = vadd.f32 %v5879_v2, %v7539_v33  ;;  %v5177_v12 = vpop.f32.mrb[23].mxu1 }
 0x3e6   : > { %v5241_v27 = vmax.f32 %v5175_v38, 0.0  ;;  %v5178_v41 = vadd.f32 %v7539_v33, %v5177_v12 }
 0x3e7   : > { %5275 = vst.msk [vmem:[#allocation4 + $0x108] sm:$0xff] %vm3772_vm5, %v5243_v39  ;;  %v5244_v1 = vmax.f32 %v5186_v40, 0.0 }
 0x3e8   : > { %5273 = vst.msk [vmem:[#allocation4 + $0xf0] sm:$0xff] %vm3772_vm5, %v5241_v27  ;;  %v5242_v58 = vmax.f32 %v5178_v41, 0.0 }
 0x3e9   : > { %5276 = vst.msk [vmem:[#allocation4 + $0x110] sm:$0xff] %vm3772_vm5, %v5244_v1 }
 0x3ea   : > { %5274 = vst.msk [vmem:[#allocation4 + $0xf8] sm:$0xff] %vm3772_vm5, %v5242_v58 }
 0x3ee   : > { %v5311_v42 = vld [vmem:[#allocation4 + $0x108] sm:$0xff] }
 0x3ef   : > { %v5295_v16 = vld [vmem:[#allocation4 + $0xf0] sm:$0xff] }
 0x3f0   : > { %v5327_v6 = vmax.f32 %v5295_v16, %v5311_v42  ;;  %v5312_v44 = vld [vmem:[#allocation4 + $0x110] sm:$0xff] }
 0x3f1   : > { %v5296_v45 = vld [vmem:[#allocation4 + $0xf8] sm:$0xff] }
 0x3f2   : > { %v5328_v46 = vmax.f32 %v5296_v45, %v5312_v44  ;;  %5343 = vst.msk [vmem:[#allocation4 + $0x78] sm:$0xff] %vm3772_vm5, %v5327_v6 }
 0x3f4   : > { %5344 = vst.msk [vmem:[#allocation4 + $0x80] sm:$0xff] %vm3772_vm5, %v5328_v46 }
 0x3fb   : > { %v5359_v47 = vld [vmem:[#allocation4 + $0x78] ss:$2 sm:$0xff]  ;;  %v5375_v0 = vld [vmem:[#allocation4 + $0x79] ss:$2 sm:$0xff] }
 0x3fc   : > { %v5385_v50 = vmax.f32 %v5359_v47, %v5375_v0 }
 0x3fe   : > { %5393 = vst.msk [vmem:[%s7566_s13 + $0x28] sm:$0xff] %vm3772_vm5, %v5385_v50 }
 0x410   : > { %v5882_v51 = vpop.f32.mrb[24].mxu1 }
 0x411   : > { %v5199_v52 = vadd.f32 %v5882_v51, %v7539_v33  ;;  %v5190_v48 = vpop.f32.mrb[25].mxu1 }
 0x412   : > { %v5191_v53 = vadd.f32 %v7539_v33, %v5190_v48  ;;  %v5883_v11 = vpop.f32.mrb[26].mxu1 }
 0x413   : > { %v5247_v54 = vmax.f32 %v5199_v52, 0.0  ;;  %v5202_v55 = vadd.f32 %v5883_v11, %v7539_v33  ;;  %v5193_v7 = vpop.f32.mrb[27].mxu1 }
 0x414   : > { %v5245_v57 = vmax.f32 %v5191_v53, 0.0  ;;  %v5194_v59 = vadd.f32 %v7539_v33, %v5193_v7 }
 0x415   : > { %5279 = vst.msk [vmem:[#allocation4 + $0x138] sm:$0xff] %vm3772_vm5, %v5247_v54  ;;  %v5248_v60 = vmax.f32 %v5202_v55, 0.0 }
 0x416   : > { %5277 = vst.msk [vmem:[#allocation4 + $0x120] sm:$0xff] %vm3772_vm5, %v5245_v57  ;;  %v5246_v62 = vmax.f32 %v5194_v59, 0.0 }
 0x417   : > { %5280 = vst.msk [vmem:[#allocation4 + $0x140] sm:$0xff] %vm3772_vm5, %v5248_v60 }
 0x418   : > { %5278 = vst.msk [vmem:[#allocation4 + $0x128] sm:$0xff] %vm3772_vm5, %v5246_v62 }
 0x41c   : > { %v5313_v49 = vld [vmem:[#allocation4 + $0x138] sm:$0xff] }
 0x41d   : > { %v5297_v63 = vld [vmem:[#allocation4 + $0x120] sm:$0xff] }
 0x41e   : > { %v5329_v3 = vmax.f32 %v5297_v63, %v5313_v49  ;;  %v5314_v5 = vld [vmem:[#allocation4 + $0x140] sm:$0xff] }
 0x41f   : > { %v5298_v13 = vld [vmem:[#allocation4 + $0x128] sm:$0xff] }
 0x420   : > { %v5330_v20 = vmax.f32 %v5298_v13, %v5314_v5  ;;  %5345 = vst.msk [vmem:[#allocation4 + $0x90] sm:$0xff] %vm3772_vm5, %v5329_v3 }
 0x422   : > { %5346 = vst.msk [vmem:[#allocation4 + $0x98] sm:$0xff] %vm3772_vm5, %v5330_v20 }
 0x429   : > { %v5361_v4 = vld [vmem:[#allocation4 + $0x90] ss:$2 sm:$0xff]  ;;  %v5377_v8 = vld [vmem:[#allocation4 + $0x91] ss:$2 sm:$0xff] }
 0x42a   : > { %v5386_v9 = vmax.f32 %v5361_v4, %v5377_v8 }
 0x42c   : > { %5394 = vst.msk [vmem:[%s7566_s13 + $0x30] sm:$0xff] %vm3772_vm5, %v5386_v9 }
 0x430   : > { %v5886_v61 = vpop.f32.mrb[28].mxu1 }
 0x431   : > { %v5215_v10 = vadd.f32 %v5886_v61, %v7539_v33  ;;  %v5206_v14 = vpop.f32.mrb[29].mxu1 }
 0x432   : > { %v5207_v15 = vadd.f32 %v7539_v33, %v5206_v14  ;;  %v5887_v18 = vpop.f32.mrb[30].mxu1 }
 0x433   : > { %v5251_v21 = vmax.f32 %v5215_v10, 0.0  ;;  %v5218_v22 = vadd.f32 %v5887_v18, %v7539_v33  ;;  %v5209_v23 = vpop.f32.mrb[31].mxu1 }
 0x434   : > { %v5249_v24 = vmax.f32 %v5207_v15, 0.0  ;;  %v5210_v25 = vadd.f32 %v7539_v33, %v5209_v23 }
 0x435   : > { %5283 = vst.msk [vmem:[#allocation4 + $0x168] sm:$0xff] %vm3772_vm5, %v5251_v21  ;;  %v5252_v26 = vmax.f32 %v5218_v22, 0.0 }
 0x436   : > { %5281 = vst.msk [vmem:[#allocation4 + $0x150] sm:$0xff] %vm3772_vm5, %v5249_v24  ;;  %v5250_v28 = vmax.f32 %v5210_v25, 0.0 }
 0x437   : > { %5284 = vst.msk [vmem:[#allocation4 + $0x170] sm:$0xff] %vm3772_vm5, %v5252_v26 }
 0x438   : > { %5282 = vst.msk [vmem:[#allocation4 + $0x158] sm:$0xff] %vm3772_vm5, %v5250_v28 }
 0x43c   : > { %v5315_v17 = vld [vmem:[#allocation4 + $0x168] sm:$0xff] }
 0x43d   : > { %v5299_v29 = vld [vmem:[#allocation4 + $0x150] sm:$0xff] }
 0x43e   : > { %v5331_v56 = vmax.f32 %v5299_v29, %v5315_v17  ;;  %v5316_v30 = vld [vmem:[#allocation4 + $0x170] sm:$0xff] }
 0x43f   : > { %v5300_v31 = vld [vmem:[#allocation4 + $0x158] sm:$0xff] }
 0x440   : > { %v5332_v33 = vmax.f32 %v5300_v31, %v5316_v30  ;;  %5347 = vst.msk [vmem:[#allocation4 + $0xa8] sm:$0xff] %vm3772_vm5, %v5331_v56 }
 0x442   : > { %5348 = vst.msk [vmem:[#allocation4 + $0xb0] sm:$0xff] %vm3772_vm5, %v5332_v33 }
 0x449   : > { %v5363_v32 = vld [vmem:[#allocation4 + $0xa8] ss:$2 sm:$0xff]  ;;  %v5379_v43 = vld [vmem:[#allocation4 + $0xa9] ss:$2 sm:$0xff] }
 0x44a   : > { %v5387_v34 = vmax.f32 %v5363_v32, %v5379_v43 }
 0x44c   : > { %5395 = vst.msk [vmem:[%s7566_s13 + $0x38] sm:$0xff] %vm3772_vm5, %v5387_v34 }
 0x44d   : > { %6206 = shalt.err (!%p6203_p3)
}
 0x44e   : > { %s6207_s30 = scalar_lea.hbm %s7668_s8, 1024  ;;  %s6211_s16 = scalar_lea.hbm %s7723_s5, 2048 }
 0x44f   : > { %p6208_p4 = scmp.ne.s32.totalorder %s7668_s8, %s6207_s30  ;;  %p6212_p9 = scmp.lt.u32.totalorder %s7668_s8, %s7723_s5 }
 0x450   : > { %p6213_p10 = scmp.lt.u32.totalorder %s6211_s16, %s6207_s30  ;;  %p6215_p12 = scmp.lt.u32.totalorder %s6207_s30, %s7668_s8 }
 0x451   : > { %p6209_p7 = pnand %p6208_p4, %p6341_p5 }
 0x452   : > { %p6214_p11 = por %p6213_p10, %p6212_p9 }
 0x453   : > { %p6210_p8 = pneg %p6209_p7 }
 0x454   : > { %p6216_p13 = por %p6215_p12, %p6214_p11 }
 0x456   : > { %p6217_p0 = pnand %p6216_p13, %p6210_p8 }
 0x458   : > { %6220 = shalt.err (!%p6217_p0)
}
 0x459   : > { %s6272_s14 = smov 128  }
 0x45a   : > { %5890 = dma.vmem_to_hbm [thread:$0]  (%p6341_p5), %s7670_s17, 1024, %s7668_s8, %s7676_s9, %s6272_s14, %s6272_s14, %s6259_s11  }
 0x45b PF: > { %p5896_p1 = scmp.ge.s32.totalorder %s6255_s21, 2  ;;  %s5425_s6 = sand.u32 1, %s6243_s18  }
 0x45c   : > { %s5426_s7 = scalar_lea.sflag [#allocation6], %s5425_s6 }
 0x45d   : > { %p5893_p2 = pnand %p5896_p1, %p6345_p6 }
 0x45f   : > { %6238 = dma.done.wait (!%p5893_p2), %s5426_s7, 1024  }
 0x460   : > { %6240 = vsyncadd (!%p5893_p2), %s5426_s7, 4294966272  ;;  %p15_p3 = scmp.ge.s32.totalorder %s6328_s24, 4   ;;  %s7769_s18 = smov %s6247_s19 }
 0x461   : > { %s7770_s19 = smov %s6251_s20  ;;  %s7771_s20 = smov %s6339_s27 }
 0x462   : > { %s7772_s21 = smov %s6328_s24  ;;  %17 = sbr.rel (!%p15_p3) target bundleno = 3 (0x3), region = 96 }
 0x469   :  { %5431 = vsyncpa [#allocation6], 1 }
 0x46a   :  { %5433 = vsyncpa [#allocation6 + $0x1], 1 }

</bundles_post_ra>
